<compile_context>
chip_gen: v7x
topology: tpu7x:2x2x1
jax: 0.10.0
libtpu: 0.0.40
codegen_flags: <defaults>
</compile_context>

<pallas_src>
import jax
import jax.numpy as jnp
from jax import lax
from jax.experimental import pallas as pl
from jax.experimental.pallas import tpu as pltpu

# Small synthetic configuration consistent with the module's __init__
# (embeddings_dim shrunk from 1024 -> 32 so the example is tiny and fast).
E = 32          # embeddings_dim
OUT = 10        # output_dim
HID = 32        # hidden width of the linear head
K = 7           # kernel_size
PAD = K // 2    # "same"-style padding
B = 8           # batch (8 -> 2 parallel grid steps of 4 samples each)
L = 16          # sequence length (multiple of 4 -> both stride-2 convs exact)

LP = L + 2 * PAD   # padded band length per sample inside the band scratch
L2 = L // 2        # length after conv3 (stride 2)
L4 = L // 4        # length after conv4 (stride 2)


def _round_up(v, m):
    return ((v + m - 1) // m) * m


KCE = K * E                       # 224 used contraction lanes (E-channel convs)
KC2E = K * 2 * E                  # 448 used contraction lanes (conv3)
CWE = _round_up(KCE, 128)         # 256 lane-padded contraction width
CW2E = _round_up(KC2E, 128)       # 512 lane-padded contraction width


def _conv_relu(pad_ref, col_ref, w_ref, b_ref, *, bb, cin, lout, stride):
    """Same-padded conv + bias + ReLU for all bb samples as ONE im2col matmul.

    pad_ref : [bb*LP, cin] f32 band scratch.  Sample b occupies rows
              [b*LP, (b+1)*LP); data at rows [b*LP+PAD, ...), pad rows zero.
    col_ref : [>=bb*lout, CW] bf16 im2col scratch; lanes >= K*cin stay zero.
    w_ref   : [CW, Cout] bf16 (tap-major, channel-minor, zero-row padded).
    b_ref   : [1, Cout] f32.
    Returns [bb*lout, Cout] f32 (post-ReLU).
    """
    for b in range(bb):
        base = b * LP
        for k in range(K):
            if stride == 1:
                tap = pad_ref[base + k: base + k + lout, :]
            else:
                # Only the even output rows are computed: sublane-strided read.
                tap = pad_ref[pl.ds(base + k, lout, stride=stride), :]
            col_ref[b * lout:(b + 1) * lout, k * cin:(k + 1) * cin] = (
                tap.astype(jnp.bfloat16))
    m = bb * lout
    y = jnp.dot(col_ref[0:m, :], w_ref[...],
                preferred_element_type=jnp.float32)                 # MXU, f32 acc
    return jnp.maximum(y + b_ref[...], 0.0)                         # bias + ReLU


def fused_kernel(x_ref,
                 w1_ref, b1_ref, w2_ref, b2_ref,
                 w3_ref, b3_ref, w4_ref, b4_ref,
                 wl_ref, bl_ref, wo_ref, bo_ref,
                 out_ref,
                 padE_ref, pad2E_ref, colE_ref, col2E_ref):
    bb = x_ref.shape[0]

    # Zero the pad bands (and the never-written lane strips of the im2col
    # scratches) EVERY grid step: with a "parallel" leading axis each v7x
    # TensorCore owns its own scratch, so a program_id==0 guard would leave the
    # second core's scratch uninitialised.  Cost is trivial at this size.
    padE_ref[...] = jnp.zeros_like(padE_ref)
    pad2E_ref[...] = jnp.zeros_like(pad2E_ref)
    if CWE > KCE:
        colE_ref[:, KCE:] = jnp.zeros((colE_ref.shape[0], CWE - KCE), jnp.bfloat16)
    if CW2E > KC2E:
        col2E_ref[:, KC2E:] = jnp.zeros((col2E_ref.shape[0], CW2E - KC2E),
                                        jnp.bfloat16)

    # ---- conv1 (stride 1, Cin=E) -------------------------------------------
    for b in range(bb):
        base = b * LP
        padE_ref[base + PAD:base + PAD + L, :] = x_ref[b].astype(jnp.float32)
    y1 = _conv_relu(padE_ref, colE_ref, w1_ref, b1_ref,
                    bb=bb, cin=E, lout=L, stride=1)

    # ---- conv2 (stride 1, Cin=E) -------------------------------------------
    for b in range(bb):
        base = b * LP
        padE_ref[base + PAD:base + PAD + L, :] = y1[b * L:(b + 1) * L]
    y2 = _conv_relu(padE_ref, colE_ref, w2_ref, b2_ref,
                    bb=bb, cin=E, lout=L, stride=1)

    # ---- conv3 (stride 2, Cin=2E) on cat([conv2_out, x], channels) ----------
    # Channel concat == write the two halves to different lane ranges.
    for b in range(bb):
        base = b * LP
        pad2E_ref[base + PAD:base + PAD + L, 0:E] = y2[b * L:(b + 1) * L]
        pad2E_ref[base + PAD:base + PAD + L, E:2 * E] = x_ref[b].astype(jnp.float32)
    y3 = _conv_relu(pad2E_ref, col2E_ref, w3_ref, b3_ref,
                    bb=bb, cin=2 * E, lout=L2, stride=2)

    # ---- conv4 (stride 2, Cin=E) -------------------------------------------
    # No full band re-zero: write y3 plus an explicit zero tail over the only
    # rows ([PAD+L2, PAD+L) per sample) that still hold stale conv2 data.
    for b in range(bb):
        base = b * LP
        padE_ref[base + PAD:base + PAD + L2, :] = y3[b * L2:(b + 1) * L2]
        padE_ref[base + PAD + L2:base + PAD + L, :] = jnp.zeros((L - L2, E),
                                                                jnp.float32)
    y4 = _conv_relu(padE_ref, colE_ref, w4_ref, b4_ref,
                    bb=bb, cin=E, lout=L4, stride=2)

    # ---- mean / max pool over time + 2-layer head (f32 elementwise) ---------
    means, maxs = [], []
    for b in range(bb):
        yb = y4[b * L4:(b + 1) * L4]                                 # [L4, E] f32
        means.append(jnp.mean(yb, axis=0, keepdims=True))
        maxs.append(jnp.max(yb, axis=0, keepdims=True))
    feat = jnp.concatenate(
        [jnp.concatenate(means, axis=0), jnp.concatenate(maxs, axis=0)],
        axis=-1)                                                     # [bb, 2E]

    h = jnp.maximum(
        jnp.dot(feat.astype(jnp.bfloat16), wl_ref[...],
                preferred_element_type=jnp.float32) + bl_ref[...], 0.0)
    logits = jnp.dot(h.astype(jnp.bfloat16), wo_ref[...],
                     preferred_element_type=jnp.float32) + bo_ref[...]
    out_ref[...] = logits[None]                                      # one store


def pack_params(torch_params):
    """PyTorch layouts -> kernel layouts (bf16 matmul weights, f32 2D biases).

    Conv weights go [Cout, Cin, K] -> [K*Cin, Cout] (tap-major, channel-minor)
    and are zero-row padded to the lane-aligned contraction width.
    """
    (w1, b1, w2, b2, w3, b3, w4, b4, wl, bl, wo, bo) = torch_params

    def conv_w(w, padded_rows):
        cout, cin, k = w.shape
        wk = jnp.transpose(w, (2, 1, 0)).reshape(k * cin, cout)
        wk = jnp.pad(wk, ((0, padded_rows - k * cin), (0, 0)))
        return wk.astype(jnp.bfloat16)

    def lin_w(w):    # [out, in] -> [in, out]
        return jnp.transpose(w).astype(jnp.bfloat16)

    def bias(b):
        return b[None, :].astype(jnp.float32)

    return (conv_w(w1, CWE), bias(b1), conv_w(w2, CWE), bias(b2),
            conv_w(w3, CW2E), bias(b3), conv_w(w4, CWE), bias(b4),
            lin_w(wl), bias(bl), lin_w(wo), bias(bo))


def _pick_bb(batch):
    """Samples folded into the matmul M dimension per grid step.

    Largest divisor of `batch` such that (a) bb stays at/below the count that
    would give the smallest conv (L4 rows/sample) ~128 MXU rows, and (b) at
    least two grid steps remain on the leading "parallel" axis so both v7x
    TensorCores get work.  Tiny batches fall back to a single fused step.
    """
    target = max(1, pl.cdiv(128, L4))
    for cand in range(min(batch, target), 0, -1):
        if batch % cand == 0 and batch // cand >= 2:
            return cand
    return batch


def _cost_estimate(batch):
    conv_flops = 2 * batch * (L * KCE * E            # conv1
                              + L * KCE * E          # conv2
                              + L2 * KC2E * E        # conv3
                              + L4 * KCE * E)        # conv4
    head_flops = 2 * batch * ((2 * E) * HID + HID * OUT)
    weight_bytes = 2 * (3 * CWE * E + CW2E * E + 2 * E * HID + HID * OUT)
    bias_bytes = 4 * (4 * E + HID + OUT)
    io_bytes = batch * L * E * 2 + batch * OUT * 4
    return pl.CostEstimate(flops=conv_flops + head_flops, transcendentals=0,
                           bytes_accessed=weight_bytes + bias_bytes + io_bytes)


def _const_spec(shape):
    """Constant (grid-invariant) block: single-buffered weight/bias residency."""
    idx = lambda i: (0,) * len(shape)
    try:
        return pl.BlockSpec(shape, idx, pipeline_mode=pl.Buffered(buffer_count=1))
    except TypeError:   # older BlockSpec without pipeline_mode: fall back
        return pl.BlockSpec(shape, idx)


def multi_conv_max_avg_pool(x_ncl, params, mask=None, sequence_lengths=None,
                            frequencies=None):
    """x_ncl: [B, E, L] (PyTorch NCL).  mask/sequence_lengths/frequencies are
    unused (they are unused in the PyTorch forward as well)."""
    del mask, sequence_lengths, frequencies
    batch = x_ncl.shape[0]
    assert L % 4 == 0
    # bf16 input: x is only ever consumed through bf16 MXU matmuls, so this
    # halves the HBM->VMEM input DMA with no numerical change vs. the kernel's
    # previous behaviour.
    x_nlc = jnp.transpose(x_ncl, (0, 2, 1)).astype(jnp.bfloat16)      # [B, L, E]

    (w1, b1, w2, b2, w3, b3, w4, b4, wl, bl, wo, bo) = params

    bb = _pick_bb(batch)
    n_steps = batch // bb

    in_specs = [
        pl.BlockSpec((bb, L, E), lambda i: (i, 0, 0)),
        _const_spec((CWE, E)), _const_spec((1, E)),
        _const_spec((CWE, E)), _const_spec((1, E)),
        _const_spec((CW2E, E)), _const_spec((1, E)),
        _const_spec((CWE, E)), _const_spec((1, E)),
        _const_spec((2 * E, HID)), _const_spec((1, HID)),
        _const_spec((HID, OUT)), _const_spec((1, OUT)),
    ]

    out = pl.pallas_call(
        fused_kernel,
        # (steps, bb, OUT) so the output block's minor-two dims equal the full
        # array dims (clean layout); reshaped to (batch, OUT) below.
        out_shape=jax.ShapeDtypeStruct((n_steps, bb, OUT), jnp.float32),
        grid_spec=pltpu.PrefetchScalarGridSpec(
            num_scalar_prefetch=0,
            grid=(n_steps,),
            in_specs=in_specs,
            out_specs=pl.BlockSpec((1, bb, OUT), lambda i: (i, 0, 0)),
            scratch_shapes=[
                pltpu.VMEM((bb * LP, E), jnp.float32),        # padded band, E ch
                pltpu.VMEM((bb * LP, 2 * E), jnp.float32),    # padded band, 2E ch
                pltpu.VMEM((bb * L, CWE), jnp.bfloat16),      # im2col, E-ch convs
                pltpu.VMEM((bb * L2, CW2E), jnp.bfloat16),    # im2col, conv3
            ],
        ),
        compiler_params=pltpu.CompilerParams(
            dimension_semantics=("parallel",),
            vmem_limit_bytes=32 * 1024 * 1024),
        cost_estimate=_cost_estimate(batch),
    )(x_nlc, w1, b1, w2, b2, w3, b3, w4, b4, wl, bl, wo, bo)

    return out.reshape(batch, OUT)


def _reference(x_ncl, torch_params):
    """Pure-JAX f32 reference mirroring the PyTorch forward (eval mode)."""
    (w1, b1, w2, b2, w3, b3, w4, b4, wl, bl, wo, bo) = torch_params

    def conv(x, w, b, stride):
        y = lax.conv_general_dilated(
            x, w, window_strides=(stride,), padding=[(PAD, PAD)],
            dimension_numbers=("NCH", "OIH", "NCH"),
            precision=lax.Precision.HIGHEST)
        return jax.nn.relu(y + b[None, :, None])

    o = conv(x_ncl, w1, b1, 1)
    o = conv(o, w2, b2, 1)
    o = jnp.concatenate([o, x_ncl], axis=1)
    o = conv(o, w3, b3, 2)
    o = conv(o, w4, b4, 2)
    o1 = jnp.mean(o, axis=-1)
    o2 = jnp.max(o, axis=-1)
    o = jnp.concatenate([o1, o2], axis=-1)
    h = jax.nn.relu(jnp.dot(o, wl.T, precision=lax.Precision.HIGHEST) + bl)
    return jnp.dot(h, wo.T, precision=lax.Precision.HIGHEST) + bo


if __name__ == "__main__":
    key = jax.random.PRNGKey(0)
    keys = jax.random.split(key, 13)

    def rnd(k, shape, scale=0.1):
        return (scale * jax.random.normal(k, shape)).astype(jnp.float32)

    # Deterministic parameters in PyTorch layouts
    # (Conv1d weight: [Cout, Cin, K]; Linear weight: [out, in]).
    torch_params = (
        rnd(keys[0], (E, E, K)),       rnd(keys[1], (E,)),
        rnd(keys[2], (E, E, K)),       rnd(keys[3], (E,)),
        rnd(keys[4], (E, 2 * E, K)),   rnd(keys[5], (E,)),
        rnd(keys[6], (E, E, K)),       rnd(keys[7], (E,)),
        rnd(keys[8], (HID, 2 * E)),    rnd(keys[9], (HID,)),
        rnd(keys[10], (OUT, HID)),     rnd(keys[11], (OUT,)),
    )
    kernel_params = pack_params(torch_params)

    x = rnd(keys[12], (B, E, L), scale=1.0)   # [batch, embeddings_dim, seq_len]

    out = multi_conv_max_avg_pool(x, kernel_params)
    out = jax.block_until_ready(out)

    ref = _reference(x, torch_params)
    assert out.shape == (B, OUT)
    # bf16 MXU operands (with f32 accumulation) -> slightly looser tolerance.
    assert jnp.allclose(out, ref, atol=5e-2, rtol=5e-2), (out, ref)

    print("KERNEL_OK")
</pallas_src>

<mosaic_0001>
module attributes {stable_mosaic.version = 11 : i64} {
  func.func @fused_kernel(%arg0: i32, %arg1: memref<4x16x32xbf16, #tpu.memory_space<vmem>>, %arg2: memref<256x32xbf16, #tpu.memory_space<vmem>>, %arg3: memref<1x32xf32, #tpu.memory_space<vmem>>, %arg4: memref<256x32xbf16, #tpu.memory_space<vmem>>, %arg5: memref<1x32xf32, #tpu.memory_space<vmem>>, %arg6: memref<512x32xbf16, #tpu.memory_space<vmem>>, %arg7: memref<1x32xf32, #tpu.memory_space<vmem>>, %arg8: memref<256x32xbf16, #tpu.memory_space<vmem>>, %arg9: memref<1x32xf32, #tpu.memory_space<vmem>>, %arg10: memref<64x32xbf16, #tpu.memory_space<vmem>>, %arg11: memref<1x32xf32, #tpu.memory_space<vmem>>, %arg12: memref<32x10xbf16, #tpu.memory_space<vmem>>, %arg13: memref<1x10xf32, #tpu.memory_space<vmem>>, %arg14: memref<1x4x10xf32, #tpu.memory_space<vmem>>, %arg15: memref<88x32xf32, #tpu.memory_space<vmem>>, %arg16: memref<88x64xf32, #tpu.memory_space<vmem>>, %arg17: memref<64x256xbf16, #tpu.memory_space<vmem>>, %arg18: memref<32x512xbf16, #tpu.memory_space<vmem>>) attributes {dimension_semantics = [#tpu.dimension_semantics<parallel>], iteration_bounds = array<i64: 2>, scalar_prefetch = 0 : i64, scratch_operands = 4 : i64, tpu.core_type = #tpu.core_type<tc>, window_params = [{transform_indices = @transform_0, window_bounds = array<i64: 4, 16, 32>}, {pipeline_mode = #tpu.pipeline_mode<synchronous>, transform_indices = @transform_1, window_bounds = array<i64: 256, 32>}, {pipeline_mode = #tpu.pipeline_mode<synchronous>, transform_indices = @transform_2, window_bounds = array<i64: 1, 32>}, {pipeline_mode = #tpu.pipeline_mode<synchronous>, transform_indices = @transform_3, window_bounds = array<i64: 256, 32>}, {pipeline_mode = #tpu.pipeline_mode<synchronous>, transform_indices = @transform_4, window_bounds = array<i64: 1, 32>}, {pipeline_mode = #tpu.pipeline_mode<synchronous>, transform_indices = @transform_5, window_bounds = array<i64: 512, 32>}, {pipeline_mode = #tpu.pipeline_mode<synchronous>, transform_indices = @transform_6, window_bounds = array<i64: 1, 32>}, {pipeline_mode = #tpu.pipeline_mode<synchronous>, transform_indices = @transform_7, window_bounds = array<i64: 256, 32>}, {pipeline_mode = #tpu.pipeline_mode<synchronous>, transform_indices = @transform_8, window_bounds = array<i64: 1, 32>}, {pipeline_mode = #tpu.pipeline_mode<synchronous>, transform_indices = @transform_9, window_bounds = array<i64: 64, 32>}, {pipeline_mode = #tpu.pipeline_mode<synchronous>, transform_indices = @transform_10, window_bounds = array<i64: 1, 32>}, {pipeline_mode = #tpu.pipeline_mode<synchronous>, transform_indices = @transform_11, window_bounds = array<i64: 32, 10>}, {pipeline_mode = #tpu.pipeline_mode<synchronous>, transform_indices = @transform_12, window_bounds = array<i64: 1, 10>}, {transform_indices = @transform_13, window_bounds = array<i64: 1, 4, 10>}]} {
    %cst = arith.constant 0.000000e+00 : f32
    %0 = vector.broadcast %cst : f32 to vector<88x32xf32>
    %c0 = arith.constant 0 : index
    %c0_0 = arith.constant 0 : index
    %1 = vector.load %arg15[%c0, %c0_0] : memref<88x32xf32, #tpu.memory_space<vmem>>, vector<88x32xf32>
    tpu.vector_store %arg15[%c0, %c0_0], %0 {strides = array<i32>} : memref<88x32xf32, #tpu.memory_space<vmem>>, vector<88x32xf32>,
    %cst_1 = arith.constant 0.000000e+00 : f32
    %2 = vector.broadcast %cst_1 : f32 to vector<88x64xf32>
    %c0_2 = arith.constant 0 : index
    %c0_3 = arith.constant 0 : index
    %3 = vector.load %arg16[%c0_2, %c0_3] : memref<88x64xf32, #tpu.memory_space<vmem>>, vector<88x64xf32>
    tpu.vector_store %arg16[%c0_2, %c0_3], %2 {strides = array<i32>} : memref<88x64xf32, #tpu.memory_space<vmem>>, vector<88x64xf32>,
    %cst_4 = arith.constant 0.000000e+00 : bf16
    %4 = vector.broadcast %cst_4 : bf16 to vector<64x32xbf16>
    %c0_5 = arith.constant 0 : index
    %c224 = arith.constant 224 : index
    %5 = vector.load %arg17[%c0_5, %c224] : memref<64x256xbf16, #tpu.memory_space<vmem>>, vector<64x32xbf16>
    tpu.vector_store %arg17[%c0_5, %c224], %4 {strides = array<i32>} : memref<64x256xbf16, #tpu.memory_space<vmem>>, vector<64x32xbf16>,
    %cst_6 = arith.constant 0.000000e+00 : bf16
    %6 = vector.broadcast %cst_6 : bf16 to vector<32x64xbf16>
    %c0_7 = arith.constant 0 : index
    %c448 = arith.constant 448 : index
    %7 = vector.load %arg18[%c0_7, %c448] : memref<32x512xbf16, #tpu.memory_space<vmem>>, vector<32x64xbf16>
    tpu.vector_store %arg18[%c0_7, %c448], %6 {strides = array<i32>} : memref<32x512xbf16, #tpu.memory_space<vmem>>, vector<32x64xbf16>,
    %c0_8 = arith.constant 0 : index
    %c0_9 = arith.constant 0 : index
    %c0_10 = arith.constant 0 : index
    %8 = vector.load %arg1[%c0_8, %c0_9, %c0_10] : memref<4x16x32xbf16, #tpu.memory_space<vmem>>, vector<1x16x32xbf16>
    %9 = vector.shape_cast %8 : vector<1x16x32xbf16> to vector<16x32xbf16>
    %10 = arith.extf %9 : vector<16x32xbf16> to vector<16x32xf32>
    %c3 = arith.constant 3 : index
    %c0_11 = arith.constant 0 : index
    %11 = vector.load %arg15[%c3, %c0_11] : memref<88x32xf32, #tpu.memory_space<vmem>>, vector<16x32xf32>
    tpu.vector_store %arg15[%c3, %c0_11], %10 {strides = array<i32>} : memref<88x32xf32, #tpu.memory_space<vmem>>, vector<16x32xf32>,
    %c1 = arith.constant 1 : index
    %c0_12 = arith.constant 0 : index
    %c0_13 = arith.constant 0 : index
    %12 = vector.load %arg1[%c1, %c0_12, %c0_13] : memref<4x16x32xbf16, #tpu.memory_space<vmem>>, vector<1x16x32xbf16>
    %13 = vector.shape_cast %12 : vector<1x16x32xbf16> to vector<16x32xbf16>
    %14 = arith.extf %13 : vector<16x32xbf16> to vector<16x32xf32>
    %c25 = arith.constant 25 : index
    %c0_14 = arith.constant 0 : index
    %15 = vector.load %arg15[%c25, %c0_14] : memref<88x32xf32, #tpu.memory_space<vmem>>, vector<16x32xf32>
    tpu.vector_store %arg15[%c25, %c0_14], %14 {strides = array<i32>} : memref<88x32xf32, #tpu.memory_space<vmem>>, vector<16x32xf32>,
    %c2 = arith.constant 2 : index
    %c0_15 = arith.constant 0 : index
    %c0_16 = arith.constant 0 : index
    %16 = vector.load %arg1[%c2, %c0_15, %c0_16] : memref<4x16x32xbf16, #tpu.memory_space<vmem>>, vector<1x16x32xbf16>
    %17 = vector.shape_cast %16 : vector<1x16x32xbf16> to vector<16x32xbf16>
    %18 = arith.extf %17 : vector<16x32xbf16> to vector<16x32xf32>
    %c47 = arith.constant 47 : index
    %c0_17 = arith.constant 0 : index
    %19 = vector.load %arg15[%c47, %c0_17] : memref<88x32xf32, #tpu.memory_space<vmem>>, vector<16x32xf32>
    tpu.vector_store %arg15[%c47, %c0_17], %18 {strides = array<i32>} : memref<88x32xf32, #tpu.memory_space<vmem>>, vector<16x32xf32>,
    %c3_18 = arith.constant 3 : index
    %c0_19 = arith.constant 0 : index
    %c0_20 = arith.constant 0 : index
    %20 = vector.load %arg1[%c3_18, %c0_19, %c0_20] : memref<4x16x32xbf16, #tpu.memory_space<vmem>>, vector<1x16x32xbf16>
    %21 = vector.shape_cast %20 : vector<1x16x32xbf16> to vector<16x32xbf16>
    %22 = arith.extf %21 : vector<16x32xbf16> to vector<16x32xf32>
    %c69 = arith.constant 69 : index
    %c0_21 = arith.constant 0 : index
    %23 = vector.load %arg15[%c69, %c0_21] : memref<88x32xf32, #tpu.memory_space<vmem>>, vector<16x32xf32>
    tpu.vector_store %arg15[%c69, %c0_21], %22 {strides = array<i32>} : memref<88x32xf32, #tpu.memory_space<vmem>>, vector<16x32xf32>,
    %c0_22 = arith.constant 0 : index
    %c0_23 = arith.constant 0 : index
    %24 = vector.load %arg15[%c0_22, %c0_23] : memref<88x32xf32, #tpu.memory_space<vmem>>, vector<16x32xf32>
    %25 = arith.truncf %24 : vector<16x32xf32> to vector<16x32xbf16>
    %c0_24 = arith.constant 0 : index
    %c0_25 = arith.constant 0 : index
    %26 = vector.load %arg17[%c0_24, %c0_25] : memref<64x256xbf16, #tpu.memory_space<vmem>>, vector<16x32xbf16>
    tpu.vector_store %arg17[%c0_24, %c0_25], %25 {strides = array<i32>} : memref<64x256xbf16, #tpu.memory_space<vmem>>, vector<16x32xbf16>,
    %c1_26 = arith.constant 1 : index
    %c0_27 = arith.constant 0 : index
    %27 = vector.load %arg15[%c1_26, %c0_27] : memref<88x32xf32, #tpu.memory_space<vmem>>, vector<16x32xf32>
    %28 = arith.truncf %27 : vector<16x32xf32> to vector<16x32xbf16>
    %c0_28 = arith.constant 0 : index
    %c32 = arith.constant 32 : index
    %29 = vector.load %arg17[%c0_28, %c32] : memref<64x256xbf16, #tpu.memory_space<vmem>>, vector<16x32xbf16>
    tpu.vector_store %arg17[%c0_28, %c32], %28 {strides = array<i32>} : memref<64x256xbf16, #tpu.memory_space<vmem>>, vector<16x32xbf16>,
    %c2_29 = arith.constant 2 : index
    %c0_30 = arith.constant 0 : index
    %30 = vector.load %arg15[%c2_29, %c0_30] : memref<88x32xf32, #tpu.memory_space<vmem>>, vector<16x32xf32>
    %31 = arith.truncf %30 : vector<16x32xf32> to vector<16x32xbf16>
    %c0_31 = arith.constant 0 : index
    %c64 = arith.constant 64 : index
    %32 = vector.load %arg17[%c0_31, %c64] : memref<64x256xbf16, #tpu.memory_space<vmem>>, vector<16x32xbf16>
    tpu.vector_store %arg17[%c0_31, %c64], %31 {strides = array<i32>} : memref<64x256xbf16, #tpu.memory_space<vmem>>, vector<16x32xbf16>,
    %c3_32 = arith.constant 3 : index
    %c0_33 = arith.constant 0 : index
    %33 = vector.load %arg15[%c3_32, %c0_33] : memref<88x32xf32, #tpu.memory_space<vmem>>, vector<16x32xf32>
    %34 = arith.truncf %33 : vector<16x32xf32> to vector<16x32xbf16>
    %c0_34 = arith.constant 0 : index
    %c96 = arith.constant 96 : index
    %35 = vector.load %arg17[%c0_34, %c96] : memref<64x256xbf16, #tpu.memory_space<vmem>>, vector<16x32xbf16>
    tpu.vector_store %arg17[%c0_34, %c96], %34 {strides = array<i32>} : memref<64x256xbf16, #tpu.memory_space<vmem>>, vector<16x32xbf16>,
    %c4 = arith.constant 4 : index
    %c0_35 = arith.constant 0 : index
    %36 = vector.load %arg15[%c4, %c0_35] : memref<88x32xf32, #tpu.memory_space<vmem>>, vector<16x32xf32>
    %37 = arith.truncf %36 : vector<16x32xf32> to vector<16x32xbf16>
    %c0_36 = arith.constant 0 : index
    %c128 = arith.constant 128 : index
    %38 = vector.load %arg17[%c0_36, %c128] : memref<64x256xbf16, #tpu.memory_space<vmem>>, vector<16x32xbf16>
    tpu.vector_store %arg17[%c0_36, %c128], %37 {strides = array<i32>} : memref<64x256xbf16, #tpu.memory_space<vmem>>, vector<16x32xbf16>,
    %c5 = arith.constant 5 : index
    %c0_37 = arith.constant 0 : index
    %39 = vector.load %arg15[%c5, %c0_37] : memref<88x32xf32, #tpu.memory_space<vmem>>, vector<16x32xf32>
    %40 = arith.truncf %39 : vector<16x32xf32> to vector<16x32xbf16>
    %c0_38 = arith.constant 0 : index
    %c160 = arith.constant 160 : index
    %41 = vector.load %arg17[%c0_38, %c160] : memref<64x256xbf16, #tpu.memory_space<vmem>>, vector<16x32xbf16>
    tpu.vector_store %arg17[%c0_38, %c160], %40 {strides = array<i32>} : memref<64x256xbf16, #tpu.memory_space<vmem>>, vector<16x32xbf16>,
    %c6 = arith.constant 6 : index
    %c0_39 = arith.constant 0 : index
    %42 = vector.load %arg15[%c6, %c0_39] : memref<88x32xf32, #tpu.memory_space<vmem>>, vector<16x32xf32>
    %43 = arith.truncf %42 : vector<16x32xf32> to vector<16x32xbf16>
    %c0_40 = arith.constant 0 : index
    %c192 = arith.constant 192 : index
    %44 = vector.load %arg17[%c0_40, %c192] : memref<64x256xbf16, #tpu.memory_space<vmem>>, vector<16x32xbf16>
    tpu.vector_store %arg17[%c0_40, %c192], %43 {strides = array<i32>} : memref<64x256xbf16, #tpu.memory_space<vmem>>, vector<16x32xbf16>,
    %c22 = arith.constant 22 : index
    %c0_41 = arith.constant 0 : index
    %45 = vector.load %arg15[%c22, %c0_41] : memref<88x32xf32, #tpu.memory_space<vmem>>, vector<16x32xf32>
    %46 = arith.truncf %45 : vector<16x32xf32> to vector<16x32xbf16>
    %c16 = arith.constant 16 : index
    %c0_42 = arith.constant 0 : index
    %47 = vector.load %arg17[%c16, %c0_42] : memref<64x256xbf16, #tpu.memory_space<vmem>>, vector<16x32xbf16>
    tpu.vector_store %arg17[%c16, %c0_42], %46 {strides = array<i32>} : memref<64x256xbf16, #tpu.memory_space<vmem>>, vector<16x32xbf16>,
    %c23 = arith.constant 23 : index
    %c0_43 = arith.constant 0 : index
    %48 = vector.load %arg15[%c23, %c0_43] : memref<88x32xf32, #tpu.memory_space<vmem>>, vector<16x32xf32>
    %49 = arith.truncf %48 : vector<16x32xf32> to vector<16x32xbf16>
    %c16_44 = arith.constant 16 : index
    %c32_45 = arith.constant 32 : index
    %50 = vector.load %arg17[%c16_44, %c32_45] : memref<64x256xbf16, #tpu.memory_space<vmem>>, vector<16x32xbf16>
    tpu.vector_store %arg17[%c16_44, %c32_45], %49 {strides = array<i32>} : memref<64x256xbf16, #tpu.memory_space<vmem>>, vector<16x32xbf16>,
    %c24 = arith.constant 24 : index
    %c0_46 = arith.constant 0 : index
    %51 = vector.load %arg15[%c24, %c0_46] : memref<88x32xf32, #tpu.memory_space<vmem>>, vector<16x32xf32>
    %52 = arith.truncf %51 : vector<16x32xf32> to vector<16x32xbf16>
    %c16_47 = arith.constant 16 : index
    %c64_48 = arith.constant 64 : index
    %53 = vector.load %arg17[%c16_47, %c64_48] : memref<64x256xbf16, #tpu.memory_space<vmem>>, vector<16x32xbf16>
    tpu.vector_store %arg17[%c16_47, %c64_48], %52 {strides = array<i32>} : memref<64x256xbf16, #tpu.memory_space<vmem>>, vector<16x32xbf16>,
    %c25_49 = arith.constant 25 : index
    %c0_50 = arith.constant 0 : index
    %54 = vector.load %arg15[%c25_49, %c0_50] : memref<88x32xf32, #tpu.memory_space<vmem>>, vector<16x32xf32>
    %55 = arith.truncf %54 : vector<16x32xf32> to vector<16x32xbf16>
    %c16_51 = arith.constant 16 : index
    %c96_52 = arith.constant 96 : index
    %56 = vector.load %arg17[%c16_51, %c96_52] : memref<64x256xbf16, #tpu.memory_space<vmem>>, vector<16x32xbf16>
    tpu.vector_store %arg17[%c16_51, %c96_52], %55 {strides = array<i32>} : memref<64x256xbf16, #tpu.memory_space<vmem>>, vector<16x32xbf16>,
    %c26 = arith.constant 26 : index
    %c0_53 = arith.constant 0 : index
    %57 = vector.load %arg15[%c26, %c0_53] : memref<88x32xf32, #tpu.memory_space<vmem>>, vector<16x32xf32>
    %58 = arith.truncf %57 : vector<16x32xf32> to vector<16x32xbf16>
    %c16_54 = arith.constant 16 : index
    %c128_55 = arith.constant 128 : index
    %59 = vector.load %arg17[%c16_54, %c128_55] : memref<64x256xbf16, #tpu.memory_space<vmem>>, vector<16x32xbf16>
    tpu.vector_store %arg17[%c16_54, %c128_55], %58 {strides = array<i32>} : memref<64x256xbf16, #tpu.memory_space<vmem>>, vector<16x32xbf16>,
    %c27 = arith.constant 27 : index
    %c0_56 = arith.constant 0 : index
    %60 = vector.load %arg15[%c27, %c0_56] : memref<88x32xf32, #tpu.memory_space<vmem>>, vector<16x32xf32>
    %61 = arith.truncf %60 : vector<16x32xf32> to vector<16x32xbf16>
    %c16_57 = arith.constant 16 : index
    %c160_58 = arith.constant 160 : index
    %62 = vector.load %arg17[%c16_57, %c160_58] : memref<64x256xbf16, #tpu.memory_space<vmem>>, vector<16x32xbf16>
    tpu.vector_store %arg17[%c16_57, %c160_58], %61 {strides = array<i32>} : memref<64x256xbf16, #tpu.memory_space<vmem>>, vector<16x32xbf16>,
    %c28 = arith.constant 28 : index
    %c0_59 = arith.constant 0 : index
    %63 = vector.load %arg15[%c28, %c0_59] : memref<88x32xf32, #tpu.memory_space<vmem>>, vector<16x32xf32>
    %64 = arith.truncf %63 : vector<16x32xf32> to vector<16x32xbf16>
    %c16_60 = arith.constant 16 : index
    %c192_61 = arith.constant 192 : index
    %65 = vector.load %arg17[%c16_60, %c192_61] : memref<64x256xbf16, #tpu.memory_space<vmem>>, vector<16x32xbf16>
    tpu.vector_store %arg17[%c16_60, %c192_61], %64 {strides = array<i32>} : memref<64x256xbf16, #tpu.memory_space<vmem>>, vector<16x32xbf16>,
    %c44 = arith.constant 44 : index
    %c0_62 = arith.constant 0 : index
    %66 = vector.load %arg15[%c44, %c0_62] : memref<88x32xf32, #tpu.memory_space<vmem>>, vector<16x32xf32>
    %67 = arith.truncf %66 : vector<16x32xf32> to vector<16x32xbf16>
    %c32_63 = arith.constant 32 : index
    %c0_64 = arith.constant 0 : index
    %68 = vector.load %arg17[%c32_63, %c0_64] : memref<64x256xbf16, #tpu.memory_space<vmem>>, vector<16x32xbf16>
    tpu.vector_store %arg17[%c32_63, %c0_64], %67 {strides = array<i32>} : memref<64x256xbf16, #tpu.memory_space<vmem>>, vector<16x32xbf16>,
    %c45 = arith.constant 45 : index
    %c0_65 = arith.constant 0 : index
    %69 = vector.load %arg15[%c45, %c0_65] : memref<88x32xf32, #tpu.memory_space<vmem>>, vector<16x32xf32>
    %70 = arith.truncf %69 : vector<16x32xf32> to vector<16x32xbf16>
    %c32_66 = arith.constant 32 : index
    %c32_67 = arith.constant 32 : index
    %71 = vector.load %arg17[%c32_66, %c32_67] : memref<64x256xbf16, #tpu.memory_space<vmem>>, vector<16x32xbf16>
    tpu.vector_store %arg17[%c32_66, %c32_67], %70 {strides = array<i32>} : memref<64x256xbf16, #tpu.memory_space<vmem>>, vector<16x32xbf16>,
    %c46 = arith.constant 46 : index
    %c0_68 = arith.constant 0 : index
    %72 = vector.load %arg15[%c46, %c0_68] : memref<88x32xf32, #tpu.memory_space<vmem>>, vector<16x32xf32>
    %73 = arith.truncf %72 : vector<16x32xf32> to vector<16x32xbf16>
    %c32_69 = arith.constant 32 : index
    %c64_70 = arith.constant 64 : index
    %74 = vector.load %arg17[%c32_69, %c64_70] : memref<64x256xbf16, #tpu.memory_space<vmem>>, vector<16x32xbf16>
    tpu.vector_store %arg17[%c32_69, %c64_70], %73 {strides = array<i32>} : memref<64x256xbf16, #tpu.memory_space<vmem>>, vector<16x32xbf16>,
    %c47_71 = arith.constant 47 : index
    %c0_72 = arith.constant 0 : index
    %75 = vector.load %arg15[%c47_71, %c0_72] : memref<88x32xf32, #tpu.memory_space<vmem>>, vector<16x32xf32>
    %76 = arith.truncf %75 : vector<16x32xf32> to vector<16x32xbf16>
    %c32_73 = arith.constant 32 : index
    %c96_74 = arith.constant 96 : index
    %77 = vector.load %arg17[%c32_73, %c96_74] : memref<64x256xbf16, #tpu.memory_space<vmem>>, vector<16x32xbf16>
    tpu.vector_store %arg17[%c32_73, %c96_74], %76 {strides = array<i32>} : memref<64x256xbf16, #tpu.memory_space<vmem>>, vector<16x32xbf16>,
    %c48 = arith.constant 48 : index
    %c0_75 = arith.constant 0 : index
    %78 = vector.load %arg15[%c48, %c0_75] : memref<88x32xf32, #tpu.memory_space<vmem>>, vector<16x32xf32>
    %79 = arith.truncf %78 : vector<16x32xf32> to vector<16x32xbf16>
    %c32_76 = arith.constant 32 : index
    %c128_77 = arith.constant 128 : index
    %80 = vector.load %arg17[%c32_76, %c128_77] : memref<64x256xbf16, #tpu.memory_space<vmem>>, vector<16x32xbf16>
    tpu.vector_store %arg17[%c32_76, %c128_77], %79 {strides = array<i32>} : memref<64x256xbf16, #tpu.memory_space<vmem>>, vector<16x32xbf16>,
    %c49 = arith.constant 49 : index
    %c0_78 = arith.constant 0 : index
    %81 = vector.load %arg15[%c49, %c0_78] : memref<88x32xf32, #tpu.memory_space<vmem>>, vector<16x32xf32>
    %82 = arith.truncf %81 : vector<16x32xf32> to vector<16x32xbf16>
    %c32_79 = arith.constant 32 : index
    %c160_80 = arith.constant 160 : index
    %83 = vector.load %arg17[%c32_79, %c160_80] : memref<64x256xbf16, #tpu.memory_space<vmem>>, vector<16x32xbf16>
    tpu.vector_store %arg17[%c32_79, %c160_80], %82 {strides = array<i32>} : memref<64x256xbf16, #tpu.memory_space<vmem>>, vector<16x32xbf16>,
    %c50 = arith.constant 50 : index
    %c0_81 = arith.constant 0 : index
    %84 = vector.load %arg15[%c50, %c0_81] : memref<88x32xf32, #tpu.memory_space<vmem>>, vector<16x32xf32>
    %85 = arith.truncf %84 : vector<16x32xf32> to vector<16x32xbf16>
    %c32_82 = arith.constant 32 : index
    %c192_83 = arith.constant 192 : index
    %86 = vector.load %arg17[%c32_82, %c192_83] : memref<64x256xbf16, #tpu.memory_space<vmem>>, vector<16x32xbf16>
    tpu.vector_store %arg17[%c32_82, %c192_83], %85 {strides = array<i32>} : memref<64x256xbf16, #tpu.memory_space<vmem>>, vector<16x32xbf16>,
    %c66 = arith.constant 66 : index
    %c0_84 = arith.constant 0 : index
    %87 = vector.load %arg15[%c66, %c0_84] : memref<88x32xf32, #tpu.memory_space<vmem>>, vector<16x32xf32>
    %88 = arith.truncf %87 : vector<16x32xf32> to vector<16x32xbf16>
    %c48_85 = arith.constant 48 : index
    %c0_86 = arith.constant 0 : index
    %89 = vector.load %arg17[%c48_85, %c0_86] : memref<64x256xbf16, #tpu.memory_space<vmem>>, vector<16x32xbf16>
    tpu.vector_store %arg17[%c48_85, %c0_86], %88 {strides = array<i32>} : memref<64x256xbf16, #tpu.memory_space<vmem>>, vector<16x32xbf16>,
    %c67 = arith.constant 67 : index
    %c0_87 = arith.constant 0 : index
    %90 = vector.load %arg15[%c67, %c0_87] : memref<88x32xf32, #tpu.memory_space<vmem>>, vector<16x32xf32>
    %91 = arith.truncf %90 : vector<16x32xf32> to vector<16x32xbf16>
    %c48_88 = arith.constant 48 : index
    %c32_89 = arith.constant 32 : index
    %92 = vector.load %arg17[%c48_88, %c32_89] : memref<64x256xbf16, #tpu.memory_space<vmem>>, vector<16x32xbf16>
    tpu.vector_store %arg17[%c48_88, %c32_89], %91 {strides = array<i32>} : memref<64x256xbf16, #tpu.memory_space<vmem>>, vector<16x32xbf16>,
    %c68 = arith.constant 68 : index
    %c0_90 = arith.constant 0 : index
    %93 = vector.load %arg15[%c68, %c0_90] : memref<88x32xf32, #tpu.memory_space<vmem>>, vector<16x32xf32>
    %94 = arith.truncf %93 : vector<16x32xf32> to vector<16x32xbf16>
    %c48_91 = arith.constant 48 : index
    %c64_92 = arith.constant 64 : index
    %95 = vector.load %arg17[%c48_91, %c64_92] : memref<64x256xbf16, #tpu.memory_space<vmem>>, vector<16x32xbf16>
    tpu.vector_store %arg17[%c48_91, %c64_92], %94 {strides = array<i32>} : memref<64x256xbf16, #tpu.memory_space<vmem>>, vector<16x32xbf16>,
    %c69_93 = arith.constant 69 : index
    %c0_94 = arith.constant 0 : index
    %96 = vector.load %arg15[%c69_93, %c0_94] : memref<88x32xf32, #tpu.memory_space<vmem>>, vector<16x32xf32>
    %97 = arith.truncf %96 : vector<16x32xf32> to vector<16x32xbf16>
    %c48_95 = arith.constant 48 : index
    %c96_96 = arith.constant 96 : index
    %98 = vector.load %arg17[%c48_95, %c96_96] : memref<64x256xbf16, #tpu.memory_space<vmem>>, vector<16x32xbf16>
    tpu.vector_store %arg17[%c48_95, %c96_96], %97 {strides = array<i32>} : memref<64x256xbf16, #tpu.memory_space<vmem>>, vector<16x32xbf16>,
    %c70 = arith.constant 70 : index
    %c0_97 = arith.constant 0 : index
    %99 = vector.load %arg15[%c70, %c0_97] : memref<88x32xf32, #tpu.memory_space<vmem>>, vector<16x32xf32>
    %100 = arith.truncf %99 : vector<16x32xf32> to vector<16x32xbf16>
    %c48_98 = arith.constant 48 : index
    %c128_99 = arith.constant 128 : index
    %101 = vector.load %arg17[%c48_98, %c128_99] : memref<64x256xbf16, #tpu.memory_space<vmem>>, vector<16x32xbf16>
    tpu.vector_store %arg17[%c48_98, %c128_99], %100 {strides = array<i32>} : memref<64x256xbf16, #tpu.memory_space<vmem>>, vector<16x32xbf16>,
    %c71 = arith.constant 71 : index
    %c0_100 = arith.constant 0 : index
    %102 = vector.load %arg15[%c71, %c0_100] : memref<88x32xf32, #tpu.memory_space<vmem>>, vector<16x32xf32>
    %103 = arith.truncf %102 : vector<16x32xf32> to vector<16x32xbf16>
    %c48_101 = arith.constant 48 : index
    %c160_102 = arith.constant 160 : index
    %104 = vector.load %arg17[%c48_101, %c160_102] : memref<64x256xbf16, #tpu.memory_space<vmem>>, vector<16x32xbf16>
    tpu.vector_store %arg17[%c48_101, %c160_102], %103 {strides = array<i32>} : memref<64x256xbf16, #tpu.memory_space<vmem>>, vector<16x32xbf16>,
    %c72 = arith.constant 72 : index
    %c0_103 = arith.constant 0 : index
    %105 = vector.load %arg15[%c72, %c0_103] : memref<88x32xf32, #tpu.memory_space<vmem>>, vector<16x32xf32>
    %106 = arith.truncf %105 : vector<16x32xf32> to vector<16x32xbf16>
    %c48_104 = arith.constant 48 : index
    %c192_105 = arith.constant 192 : index
    %107 = vector.load %arg17[%c48_104, %c192_105] : memref<64x256xbf16, #tpu.memory_space<vmem>>, vector<16x32xbf16>
    tpu.vector_store %arg17[%c48_104, %c192_105], %106 {strides = array<i32>} : memref<64x256xbf16, #tpu.memory_space<vmem>>, vector<16x32xbf16>,
    %c0_106 = arith.constant 0 : index
    %c0_107 = arith.constant 0 : index
    %108 = vector.load %arg17[%c0_106, %c0_107] : memref<64x256xbf16, #tpu.memory_space<vmem>>, vector<64x256xbf16>
    %c0_108 = arith.constant 0 : index
    %c0_109 = arith.constant 0 : index
    %109 = vector.load %arg2[%c0_108, %c0_109] : memref<256x32xbf16, #tpu.memory_space<vmem>>, vector<256x32xbf16>
    %cst_110 = arith.constant dense<0.000000e+00> : vector<64x32xf32>
    %110 = tpu.matmul %108, %109, %cst_110 {dimension_numbers = #tpu.dot_dimension_numbers<[1], [0], [0], [1], [0, 0, 1, 1], [], []>} : vector<64x256xbf16>, vector<256x32xbf16>, vector<64x32xf32> -> vector<64x32xf32>
    %c0_111 = arith.constant 0 : index
    %c0_112 = arith.constant 0 : index
    %111 = vector.load %arg3[%c0_111, %c0_112] : memref<1x32xf32, #tpu.memory_space<vmem>>, vector<1x32xf32>
    %112 = vector.broadcast %111 : vector<1x32xf32> to vector<64x32xf32>
    %113 = arith.addf %110, %112 : vector<64x32xf32>
    %cst_113 = arith.constant 0.000000e+00 : f32
    %114 = vector.broadcast %cst_113 : f32 to vector<64x32xf32>
    %115 = arith.maximumf %113, %114 : vector<64x32xf32>
    %116 = vector.extract_strided_slice %115 {offsets = [0, 0], sizes = [16, 32], strides = [1, 1]} : vector<64x32xf32> to vector<16x32xf32>
    %c3_114 = arith.constant 3 : index
    %c0_115 = arith.constant 0 : index
    %117 = vector.load %arg15[%c3_114, %c0_115] : memref<88x32xf32, #tpu.memory_space<vmem>>, vector<16x32xf32>
    tpu.vector_store %arg15[%c3_114, %c0_115], %116 {strides = array<i32>} : memref<88x32xf32, #tpu.memory_space<vmem>>, vector<16x32xf32>,
    %118 = vector.extract_strided_slice %115 {offsets = [16, 0], sizes = [16, 32], strides = [1, 1]} : vector<64x32xf32> to vector<16x32xf32>
    %c25_116 = arith.constant 25 : index
    %c0_117 = arith.constant 0 : index
    %119 = vector.load %arg15[%c25_116, %c0_117] : memref<88x32xf32, #tpu.memory_space<vmem>>, vector<16x32xf32>
    tpu.vector_store %arg15[%c25_116, %c0_117], %118 {strides = array<i32>} : memref<88x32xf32, #tpu.memory_space<vmem>>, vector<16x32xf32>,
    %120 = vector.extract_strided_slice %115 {offsets = [32, 0], sizes = [16, 32], strides = [1, 1]} : vector<64x32xf32> to vector<16x32xf32>
    %c47_118 = arith.constant 47 : index
    %c0_119 = arith.constant 0 : index
    %121 = vector.load %arg15[%c47_118, %c0_119] : memref<88x32xf32, #tpu.memory_space<vmem>>, vector<16x32xf32>
    tpu.vector_store %arg15[%c47_118, %c0_119], %120 {strides = array<i32>} : memref<88x32xf32, #tpu.memory_space<vmem>>, vector<16x32xf32>,
    %122 = vector.extract_strided_slice %115 {offsets = [48, 0], sizes = [16, 32], strides = [1, 1]} : vector<64x32xf32> to vector<16x32xf32>
    %c69_120 = arith.constant 69 : index
    %c0_121 = arith.constant 0 : index
    %123 = vector.load %arg15[%c69_120, %c0_121] : memref<88x32xf32, #tpu.memory_space<vmem>>, vector<16x32xf32>
    tpu.vector_store %arg15[%c69_120, %c0_121], %122 {strides = array<i32>} : memref<88x32xf32, #tpu.memory_space<vmem>>, vector<16x32xf32>,
    %c0_122 = arith.constant 0 : index
    %c0_123 = arith.constant 0 : index
    %124 = vector.load %arg15[%c0_122, %c0_123] : memref<88x32xf32, #tpu.memory_space<vmem>>, vector<16x32xf32>
    %125 = arith.truncf %124 : vector<16x32xf32> to vector<16x32xbf16>
    %c0_124 = arith.constant 0 : index
    %c0_125 = arith.constant 0 : index
    %126 = vector.load %arg17[%c0_124, %c0_125] : memref<64x256xbf16, #tpu.memory_space<vmem>>, vector<16x32xbf16>
    tpu.vector_store %arg17[%c0_124, %c0_125], %125 {strides = array<i32>} : memref<64x256xbf16, #tpu.memory_space<vmem>>, vector<16x32xbf16>,
    %c1_126 = arith.constant 1 : index
    %c0_127 = arith.constant 0 : index
    %127 = vector.load %arg15[%c1_126, %c0_127] : memref<88x32xf32, #tpu.memory_space<vmem>>, vector<16x32xf32>
    %128 = arith.truncf %127 : vector<16x32xf32> to vector<16x32xbf16>
    %c0_128 = arith.constant 0 : index
    %c32_129 = arith.constant 32 : index
    %129 = vector.load %arg17[%c0_128, %c32_129] : memref<64x256xbf16, #tpu.memory_space<vmem>>, vector<16x32xbf16>
    tpu.vector_store %arg17[%c0_128, %c32_129], %128 {strides = array<i32>} : memref<64x256xbf16, #tpu.memory_space<vmem>>, vector<16x32xbf16>,
    %c2_130 = arith.constant 2 : index
    %c0_131 = arith.constant 0 : index
    %130 = vector.load %arg15[%c2_130, %c0_131] : memref<88x32xf32, #tpu.memory_space<vmem>>, vector<16x32xf32>
    %131 = arith.truncf %130 : vector<16x32xf32> to vector<16x32xbf16>
    %c0_132 = arith.constant 0 : index
    %c64_133 = arith.constant 64 : index
    %132 = vector.load %arg17[%c0_132, %c64_133] : memref<64x256xbf16, #tpu.memory_space<vmem>>, vector<16x32xbf16>
    tpu.vector_store %arg17[%c0_132, %c64_133], %131 {strides = array<i32>} : memref<64x256xbf16, #tpu.memory_space<vmem>>, vector<16x32xbf16>,
    %c3_134 = arith.constant 3 : index
    %c0_135 = arith.constant 0 : index
    %133 = vector.load %arg15[%c3_134, %c0_135] : memref<88x32xf32, #tpu.memory_space<vmem>>, vector<16x32xf32>
    %134 = arith.truncf %133 : vector<16x32xf32> to vector<16x32xbf16>
    %c0_136 = arith.constant 0 : index
    %c96_137 = arith.constant 96 : index
    %135 = vector.load %arg17[%c0_136, %c96_137] : memref<64x256xbf16, #tpu.memory_space<vmem>>, vector<16x32xbf16>
    tpu.vector_store %arg17[%c0_136, %c96_137], %134 {strides = array<i32>} : memref<64x256xbf16, #tpu.memory_space<vmem>>, vector<16x32xbf16>,
    %c4_138 = arith.constant 4 : index
    %c0_139 = arith.constant 0 : index
    %136 = vector.load %arg15[%c4_138, %c0_139] : memref<88x32xf32, #tpu.memory_space<vmem>>, vector<16x32xf32>
    %137 = arith.truncf %136 : vector<16x32xf32> to vector<16x32xbf16>
    %c0_140 = arith.constant 0 : index
    %c128_141 = arith.constant 128 : index
    %138 = vector.load %arg17[%c0_140, %c128_141] : memref<64x256xbf16, #tpu.memory_space<vmem>>, vector<16x32xbf16>
    tpu.vector_store %arg17[%c0_140, %c128_141], %137 {strides = array<i32>} : memref<64x256xbf16, #tpu.memory_space<vmem>>, vector<16x32xbf16>,
    %c5_142 = arith.constant 5 : index
    %c0_143 = arith.constant 0 : index
    %139 = vector.load %arg15[%c5_142, %c0_143] : memref<88x32xf32, #tpu.memory_space<vmem>>, vector<16x32xf32>
    %140 = arith.truncf %139 : vector<16x32xf32> to vector<16x32xbf16>
    %c0_144 = arith.constant 0 : index
    %c160_145 = arith.constant 160 : index
    %141 = vector.load %arg17[%c0_144, %c160_145] : memref<64x256xbf16, #tpu.memory_space<vmem>>, vector<16x32xbf16>
    tpu.vector_store %arg17[%c0_144, %c160_145], %140 {strides = array<i32>} : memref<64x256xbf16, #tpu.memory_space<vmem>>, vector<16x32xbf16>,
    %c6_146 = arith.constant 6 : index
    %c0_147 = arith.constant 0 : index
    %142 = vector.load %arg15[%c6_146, %c0_147] : memref<88x32xf32, #tpu.memory_space<vmem>>, vector<16x32xf32>
    %143 = arith.truncf %142 : vector<16x32xf32> to vector<16x32xbf16>
    %c0_148 = arith.constant 0 : index
    %c192_149 = arith.constant 192 : index
    %144 = vector.load %arg17[%c0_148, %c192_149] : memref<64x256xbf16, #tpu.memory_space<vmem>>, vector<16x32xbf16>
    tpu.vector_store %arg17[%c0_148, %c192_149], %143 {strides = array<i32>} : memref<64x256xbf16, #tpu.memory_space<vmem>>, vector<16x32xbf16>,
    %c22_150 = arith.constant 22 : index
    %c0_151 = arith.constant 0 : index
    %145 = vector.load %arg15[%c22_150, %c0_151] : memref<88x32xf32, #tpu.memory_space<vmem>>, vector<16x32xf32>
    %146 = arith.truncf %145 : vector<16x32xf32> to vector<16x32xbf16>
    %c16_152 = arith.constant 16 : index
    %c0_153 = arith.constant 0 : index
    %147 = vector.load %arg17[%c16_152, %c0_153] : memref<64x256xbf16, #tpu.memory_space<vmem>>, vector<16x32xbf16>
    tpu.vector_store %arg17[%c16_152, %c0_153], %146 {strides = array<i32>} : memref<64x256xbf16, #tpu.memory_space<vmem>>, vector<16x32xbf16>,
    %c23_154 = arith.constant 23 : index
    %c0_155 = arith.constant 0 : index
    %148 = vector.load %arg15[%c23_154, %c0_155] : memref<88x32xf32, #tpu.memory_space<vmem>>, vector<16x32xf32>
    %149 = arith.truncf %148 : vector<16x32xf32> to vector<16x32xbf16>
    %c16_156 = arith.constant 16 : index
    %c32_157 = arith.constant 32 : index
    %150 = vector.load %arg17[%c16_156, %c32_157] : memref<64x256xbf16, #tpu.memory_space<vmem>>, vector<16x32xbf16>
    tpu.vector_store %arg17[%c16_156, %c32_157], %149 {strides = array<i32>} : memref<64x256xbf16, #tpu.memory_space<vmem>>, vector<16x32xbf16>,
    %c24_158 = arith.constant 24 : index
    %c0_159 = arith.constant 0 : index
    %151 = vector.load %arg15[%c24_158, %c0_159] : memref<88x32xf32, #tpu.memory_space<vmem>>, vector<16x32xf32>
    %152 = arith.truncf %151 : vector<16x32xf32> to vector<16x32xbf16>
    %c16_160 = arith.constant 16 : index
    %c64_161 = arith.constant 64 : index
    %153 = vector.load %arg17[%c16_160, %c64_161] : memref<64x256xbf16, #tpu.memory_space<vmem>>, vector<16x32xbf16>
    tpu.vector_store %arg17[%c16_160, %c64_161], %152 {strides = array<i32>} : memref<64x256xbf16, #tpu.memory_space<vmem>>, vector<16x32xbf16>,
    %c25_162 = arith.constant 25 : index
    %c0_163 = arith.constant 0 : index
    %154 = vector.load %arg15[%c25_162, %c0_163] : memref<88x32xf32, #tpu.memory_space<vmem>>, vector<16x32xf32>
    %155 = arith.truncf %154 : vector<16x32xf32> to vector<16x32xbf16>
    %c16_164 = arith.constant 16 : index
    %c96_165 = arith.constant 96 : index
    %156 = vector.load %arg17[%c16_164, %c96_165] : memref<64x256xbf16, #tpu.memory_space<vmem>>, vector<16x32xbf16>
    tpu.vector_store %arg17[%c16_164, %c96_165], %155 {strides = array<i32>} : memref<64x256xbf16, #tpu.memory_space<vmem>>, vector<16x32xbf16>,
    %c26_166 = arith.constant 26 : index
    %c0_167 = arith.constant 0 : index
    %157 = vector.load %arg15[%c26_166, %c0_167] : memref<88x32xf32, #tpu.memory_space<vmem>>, vector<16x32xf32>
    %158 = arith.truncf %157 : vector<16x32xf32> to vector<16x32xbf16>
    %c16_168 = arith.constant 16 : index
    %c128_169 = arith.constant 128 : index
    %159 = vector.load %arg17[%c16_168, %c128_169] : memref<64x256xbf16, #tpu.memory_space<vmem>>, vector<16x32xbf16>
    tpu.vector_store %arg17[%c16_168, %c128_169], %158 {strides = array<i32>} : memref<64x256xbf16, #tpu.memory_space<vmem>>, vector<16x32xbf16>,
    %c27_170 = arith.constant 27 : index
    %c0_171 = arith.constant 0 : index
    %160 = vector.load %arg15[%c27_170, %c0_171] : memref<88x32xf32, #tpu.memory_space<vmem>>, vector<16x32xf32>
    %161 = arith.truncf %160 : vector<16x32xf32> to vector<16x32xbf16>
    %c16_172 = arith.constant 16 : index
    %c160_173 = arith.constant 160 : index
    %162 = vector.load %arg17[%c16_172, %c160_173] : memref<64x256xbf16, #tpu.memory_space<vmem>>, vector<16x32xbf16>
    tpu.vector_store %arg17[%c16_172, %c160_173], %161 {strides = array<i32>} : memref<64x256xbf16, #tpu.memory_space<vmem>>, vector<16x32xbf16>,
    %c28_174 = arith.constant 28 : index
    %c0_175 = arith.constant 0 : index
    %163 = vector.load %arg15[%c28_174, %c0_175] : memref<88x32xf32, #tpu.memory_space<vmem>>, vector<16x32xf32>
    %164 = arith.truncf %163 : vector<16x32xf32> to vector<16x32xbf16>
    %c16_176 = arith.constant 16 : index
    %c192_177 = arith.constant 192 : index
    %165 = vector.load %arg17[%c16_176, %c192_177] : memref<64x256xbf16, #tpu.memory_space<vmem>>, vector<16x32xbf16>
    tpu.vector_store %arg17[%c16_176, %c192_177], %164 {strides = array<i32>} : memref<64x256xbf16, #tpu.memory_space<vmem>>, vector<16x32xbf16>,
    %c44_178 = arith.constant 44 : index
    %c0_179 = arith.constant 0 : index
    %166 = vector.load %arg15[%c44_178, %c0_179] : memref<88x32xf32, #tpu.memory_space<vmem>>, vector<16x32xf32>
    %167 = arith.truncf %166 : vector<16x32xf32> to vector<16x32xbf16>
    %c32_180 = arith.constant 32 : index
    %c0_181 = arith.constant 0 : index
    %168 = vector.load %arg17[%c32_180, %c0_181] : memref<64x256xbf16, #tpu.memory_space<vmem>>, vector<16x32xbf16>
    tpu.vector_store %arg17[%c32_180, %c0_181], %167 {strides = array<i32>} : memref<64x256xbf16, #tpu.memory_space<vmem>>, vector<16x32xbf16>,
    %c45_182 = arith.constant 45 : index
    %c0_183 = arith.constant 0 : index
    %169 = vector.load %arg15[%c45_182, %c0_183] : memref<88x32xf32, #tpu.memory_space<vmem>>, vector<16x32xf32>
    %170 = arith.truncf %169 : vector<16x32xf32> to vector<16x32xbf16>
    %c32_184 = arith.constant 32 : index
    %c32_185 = arith.constant 32 : index
    %171 = vector.load %arg17[%c32_184, %c32_185] : memref<64x256xbf16, #tpu.memory_space<vmem>>, vector<16x32xbf16>
    tpu.vector_store %arg17[%c32_184, %c32_185], %170 {strides = array<i32>} : memref<64x256xbf16, #tpu.memory_space<vmem>>, vector<16x32xbf16>,
    %c46_186 = arith.constant 46 : index
    %c0_187 = arith.constant 0 : index
    %172 = vector.load %arg15[%c46_186, %c0_187] : memref<88x32xf32, #tpu.memory_space<vmem>>, vector<16x32xf32>
    %173 = arith.truncf %172 : vector<16x32xf32> to vector<16x32xbf16>
    %c32_188 = arith.constant 32 : index
    %c64_189 = arith.constant 64 : index
    %174 = vector.load %arg17[%c32_188, %c64_189] : memref<64x256xbf16, #tpu.memory_space<vmem>>, vector<16x32xbf16>
    tpu.vector_store %arg17[%c32_188, %c64_189], %173 {strides = array<i32>} : memref<64x256xbf16, #tpu.memory_space<vmem>>, vector<16x32xbf16>,
    %c47_190 = arith.constant 47 : index
    %c0_191 = arith.constant 0 : index
    %175 = vector.load %arg15[%c47_190, %c0_191] : memref<88x32xf32, #tpu.memory_space<vmem>>, vector<16x32xf32>
    %176 = arith.truncf %175 : vector<16x32xf32> to vector<16x32xbf16>
    %c32_192 = arith.constant 32 : index
    %c96_193 = arith.constant 96 : index
    %177 = vector.load %arg17[%c32_192, %c96_193] : memref<64x256xbf16, #tpu.memory_space<vmem>>, vector<16x32xbf16>
    tpu.vector_store %arg17[%c32_192, %c96_193], %176 {strides = array<i32>} : memref<64x256xbf16, #tpu.memory_space<vmem>>, vector<16x32xbf16>,
    %c48_194 = arith.constant 48 : index
    %c0_195 = arith.constant 0 : index
    %178 = vector.load %arg15[%c48_194, %c0_195] : memref<88x32xf32, #tpu.memory_space<vmem>>, vector<16x32xf32>
    %179 = arith.truncf %178 : vector<16x32xf32> to vector<16x32xbf16>
    %c32_196 = arith.constant 32 : index
    %c128_197 = arith.constant 128 : index
    %180 = vector.load %arg17[%c32_196, %c128_197] : memref<64x256xbf16, #tpu.memory_space<vmem>>, vector<16x32xbf16>
    tpu.vector_store %arg17[%c32_196, %c128_197], %179 {strides = array<i32>} : memref<64x256xbf16, #tpu.memory_space<vmem>>, vector<16x32xbf16>,
    %c49_198 = arith.constant 49 : index
    %c0_199 = arith.constant 0 : index
    %181 = vector.load %arg15[%c49_198, %c0_199] : memref<88x32xf32, #tpu.memory_space<vmem>>, vector<16x32xf32>
    %182 = arith.truncf %181 : vector<16x32xf32> to vector<16x32xbf16>
    %c32_200 = arith.constant 32 : index
    %c160_201 = arith.constant 160 : index
    %183 = vector.load %arg17[%c32_200, %c160_201] : memref<64x256xbf16, #tpu.memory_space<vmem>>, vector<16x32xbf16>
    tpu.vector_store %arg17[%c32_200, %c160_201], %182 {strides = array<i32>} : memref<64x256xbf16, #tpu.memory_space<vmem>>, vector<16x32xbf16>,
    %c50_202 = arith.constant 50 : index
    %c0_203 = arith.constant 0 : index
    %184 = vector.load %arg15[%c50_202, %c0_203] : memref<88x32xf32, #tpu.memory_space<vmem>>, vector<16x32xf32>
    %185 = arith.truncf %184 : vector<16x32xf32> to vector<16x32xbf16>
    %c32_204 = arith.constant 32 : index
    %c192_205 = arith.constant 192 : index
    %186 = vector.load %arg17[%c32_204, %c192_205] : memref<64x256xbf16, #tpu.memory_space<vmem>>, vector<16x32xbf16>
    tpu.vector_store %arg17[%c32_204, %c192_205], %185 {strides = array<i32>} : memref<64x256xbf16, #tpu.memory_space<vmem>>, vector<16x32xbf16>,
    %c66_206 = arith.constant 66 : index
    %c0_207 = arith.constant 0 : index
    %187 = vector.load %arg15[%c66_206, %c0_207] : memref<88x32xf32, #tpu.memory_space<vmem>>, vector<16x32xf32>
    %188 = arith.truncf %187 : vector<16x32xf32> to vector<16x32xbf16>
    %c48_208 = arith.constant 48 : index
    %c0_209 = arith.constant 0 : index
    %189 = vector.load %arg17[%c48_208, %c0_209] : memref<64x256xbf16, #tpu.memory_space<vmem>>, vector<16x32xbf16>
    tpu.vector_store %arg17[%c48_208, %c0_209], %188 {strides = array<i32>} : memref<64x256xbf16, #tpu.memory_space<vmem>>, vector<16x32xbf16>,
    %c67_210 = arith.constant 67 : index
    %c0_211 = arith.constant 0 : index
    %190 = vector.load %arg15[%c67_210, %c0_211] : memref<88x32xf32, #tpu.memory_space<vmem>>, vector<16x32xf32>
    %191 = arith.truncf %190 : vector<16x32xf32> to vector<16x32xbf16>
    %c48_212 = arith.constant 48 : index
    %c32_213 = arith.constant 32 : index
    %192 = vector.load %arg17[%c48_212, %c32_213] : memref<64x256xbf16, #tpu.memory_space<vmem>>, vector<16x32xbf16>
    tpu.vector_store %arg17[%c48_212, %c32_213], %191 {strides = array<i32>} : memref<64x256xbf16, #tpu.memory_space<vmem>>, vector<16x32xbf16>,
    %c68_214 = arith.constant 68 : index
    %c0_215 = arith.constant 0 : index
    %193 = vector.load %arg15[%c68_214, %c0_215] : memref<88x32xf32, #tpu.memory_space<vmem>>, vector<16x32xf32>
    %194 = arith.truncf %193 : vector<16x32xf32> to vector<16x32xbf16>
    %c48_216 = arith.constant 48 : index
    %c64_217 = arith.constant 64 : index
    %195 = vector.load %arg17[%c48_216, %c64_217] : memref<64x256xbf16, #tpu.memory_space<vmem>>, vector<16x32xbf16>
    tpu.vector_store %arg17[%c48_216, %c64_217], %194 {strides = array<i32>} : memref<64x256xbf16, #tpu.memory_space<vmem>>, vector<16x32xbf16>,
    %c69_218 = arith.constant 69 : index
    %c0_219 = arith.constant 0 : index
    %196 = vector.load %arg15[%c69_218, %c0_219] : memref<88x32xf32, #tpu.memory_space<vmem>>, vector<16x32xf32>
    %197 = arith.truncf %196 : vector<16x32xf32> to vector<16x32xbf16>
    %c48_220 = arith.constant 48 : index
    %c96_221 = arith.constant 96 : index
    %198 = vector.load %arg17[%c48_220, %c96_221] : memref<64x256xbf16, #tpu.memory_space<vmem>>, vector<16x32xbf16>
    tpu.vector_store %arg17[%c48_220, %c96_221], %197 {strides = array<i32>} : memref<64x256xbf16, #tpu.memory_space<vmem>>, vector<16x32xbf16>,
    %c70_222 = arith.constant 70 : index
    %c0_223 = arith.constant 0 : index
    %199 = vector.load %arg15[%c70_222, %c0_223] : memref<88x32xf32, #tpu.memory_space<vmem>>, vector<16x32xf32>
    %200 = arith.truncf %199 : vector<16x32xf32> to vector<16x32xbf16>
    %c48_224 = arith.constant 48 : index
    %c128_225 = arith.constant 128 : index
    %201 = vector.load %arg17[%c48_224, %c128_225] : memref<64x256xbf16, #tpu.memory_space<vmem>>, vector<16x32xbf16>
    tpu.vector_store %arg17[%c48_224, %c128_225], %200 {strides = array<i32>} : memref<64x256xbf16, #tpu.memory_space<vmem>>, vector<16x32xbf16>,
    %c71_226 = arith.constant 71 : index
    %c0_227 = arith.constant 0 : index
    %202 = vector.load %arg15[%c71_226, %c0_227] : memref<88x32xf32, #tpu.memory_space<vmem>>, vector<16x32xf32>
    %203 = arith.truncf %202 : vector<16x32xf32> to vector<16x32xbf16>
    %c48_228 = arith.constant 48 : index
    %c160_229 = arith.constant 160 : index
    %204 = vector.load %arg17[%c48_228, %c160_229] : memref<64x256xbf16, #tpu.memory_space<vmem>>, vector<16x32xbf16>
    tpu.vector_store %arg17[%c48_228, %c160_229], %203 {strides = array<i32>} : memref<64x256xbf16, #tpu.memory_space<vmem>>, vector<16x32xbf16>,
    %c72_230 = arith.constant 72 : index
    %c0_231 = arith.constant 0 : index
    %205 = vector.load %arg15[%c72_230, %c0_231] : memref<88x32xf32, #tpu.memory_space<vmem>>, vector<16x32xf32>
    %206 = arith.truncf %205 : vector<16x32xf32> to vector<16x32xbf16>
    %c48_232 = arith.constant 48 : index
    %c192_233 = arith.constant 192 : index
    %207 = vector.load %arg17[%c48_232, %c192_233] : memref<64x256xbf16, #tpu.memory_space<vmem>>, vector<16x32xbf16>
    tpu.vector_store %arg17[%c48_232, %c192_233], %206 {strides = array<i32>} : memref<64x256xbf16, #tpu.memory_space<vmem>>, vector<16x32xbf16>,
    %c0_234 = arith.constant 0 : index
    %c0_235 = arith.constant 0 : index
    %208 = vector.load %arg17[%c0_234, %c0_235] : memref<64x256xbf16, #tpu.memory_space<vmem>>, vector<64x256xbf16>
    %c0_236 = arith.constant 0 : index
    %c0_237 = arith.constant 0 : index
    %209 = vector.load %arg4[%c0_236, %c0_237] : memref<256x32xbf16, #tpu.memory_space<vmem>>, vector<256x32xbf16>
    %cst_238 = arith.constant dense<0.000000e+00> : vector<64x32xf32>
    %210 = tpu.matmul %208, %209, %cst_238 {dimension_numbers = #tpu.dot_dimension_numbers<[1], [0], [0], [1], [0, 0, 1, 1], [], []>} : vector<64x256xbf16>, vector<256x32xbf16>, vector<64x32xf32> -> vector<64x32xf32>
    %c0_239 = arith.constant 0 : index
    %c0_240 = arith.constant 0 : index
    %211 = vector.load %arg5[%c0_239, %c0_240] : memref<1x32xf32, #tpu.memory_space<vmem>>, vector<1x32xf32>
    %212 = vector.broadcast %211 : vector<1x32xf32> to vector<64x32xf32>
    %213 = arith.addf %210, %212 : vector<64x32xf32>
    %cst_241 = arith.constant 0.000000e+00 : f32
    %214 = vector.broadcast %cst_241 : f32 to vector<64x32xf32>
    %215 = arith.maximumf %213, %214 : vector<64x32xf32>
    %216 = vector.extract_strided_slice %215 {offsets = [0, 0], sizes = [16, 32], strides = [1, 1]} : vector<64x32xf32> to vector<16x32xf32>
    %c3_242 = arith.constant 3 : index
    %c0_243 = arith.constant 0 : index
    %217 = vector.load %arg16[%c3_242, %c0_243] : memref<88x64xf32, #tpu.memory_space<vmem>>, vector<16x32xf32>
    tpu.vector_store %arg16[%c3_242, %c0_243], %216 {strides = array<i32>} : memref<88x64xf32, #tpu.memory_space<vmem>>, vector<16x32xf32>,
    %c0_244 = arith.constant 0 : index
    %c0_245 = arith.constant 0 : index
    %c0_246 = arith.constant 0 : index
    %218 = vector.load %arg1[%c0_244, %c0_245, %c0_246] : memref<4x16x32xbf16, #tpu.memory_space<vmem>>, vector<1x16x32xbf16>
    %219 = vector.shape_cast %218 : vector<1x16x32xbf16> to vector<16x32xbf16>
    %220 = arith.extf %219 : vector<16x32xbf16> to vector<16x32xf32>
    %c3_247 = arith.constant 3 : index
    %c32_248 = arith.constant 32 : index
    %221 = vector.load %arg16[%c3_247, %c32_248] : memref<88x64xf32, #tpu.memory_space<vmem>>, vector<16x32xf32>
    tpu.vector_store %arg16[%c3_247, %c32_248], %220 {strides = array<i32>} : memref<88x64xf32, #tpu.memory_space<vmem>>, vector<16x32xf32>,
    %222 = vector.extract_strided_slice %215 {offsets = [16, 0], sizes = [16, 32], strides = [1, 1]} : vector<64x32xf32> to vector<16x32xf32>
    %c25_249 = arith.constant 25 : index
    %c0_250 = arith.constant 0 : index
    %223 = vector.load %arg16[%c25_249, %c0_250] : memref<88x64xf32, #tpu.memory_space<vmem>>, vector<16x32xf32>
    tpu.vector_store %arg16[%c25_249, %c0_250], %222 {strides = array<i32>} : memref<88x64xf32, #tpu.memory_space<vmem>>, vector<16x32xf32>,
    %c1_251 = arith.constant 1 : index
    %c0_252 = arith.constant 0 : index
    %c0_253 = arith.constant 0 : index
    %224 = vector.load %arg1[%c1_251, %c0_252, %c0_253] : memref<4x16x32xbf16, #tpu.memory_space<vmem>>, vector<1x16x32xbf16>
    %225 = vector.shape_cast %224 : vector<1x16x32xbf16> to vector<16x32xbf16>
    %226 = arith.extf %225 : vector<16x32xbf16> to vector<16x32xf32>
    %c25_254 = arith.constant 25 : index
    %c32_255 = arith.constant 32 : index
    %227 = vector.load %arg16[%c25_254, %c32_255] : memref<88x64xf32, #tpu.memory_space<vmem>>, vector<16x32xf32>
    tpu.vector_store %arg16[%c25_254, %c32_255], %226 {strides = array<i32>} : memref<88x64xf32, #tpu.memory_space<vmem>>, vector<16x32xf32>,
    %228 = vector.extract_strided_slice %215 {offsets = [32, 0], sizes = [16, 32], strides = [1, 1]} : vector<64x32xf32> to vector<16x32xf32>
    %c47_256 = arith.constant 47 : index
    %c0_257 = arith.constant 0 : index
    %229 = vector.load %arg16[%c47_256, %c0_257] : memref<88x64xf32, #tpu.memory_space<vmem>>, vector<16x32xf32>
    tpu.vector_store %arg16[%c47_256, %c0_257], %228 {strides = array<i32>} : memref<88x64xf32, #tpu.memory_space<vmem>>, vector<16x32xf32>,
    %c2_258 = arith.constant 2 : index
    %c0_259 = arith.constant 0 : index
    %c0_260 = arith.constant 0 : index
    %230 = vector.load %arg1[%c2_258, %c0_259, %c0_260] : memref<4x16x32xbf16, #tpu.memory_space<vmem>>, vector<1x16x32xbf16>
    %231 = vector.shape_cast %230 : vector<1x16x32xbf16> to vector<16x32xbf16>
    %232 = arith.extf %231 : vector<16x32xbf16> to vector<16x32xf32>
    %c47_261 = arith.constant 47 : index
    %c32_262 = arith.constant 32 : index
    %233 = vector.load %arg16[%c47_261, %c32_262] : memref<88x64xf32, #tpu.memory_space<vmem>>, vector<16x32xf32>
    tpu.vector_store %arg16[%c47_261, %c32_262], %232 {strides = array<i32>} : memref<88x64xf32, #tpu.memory_space<vmem>>, vector<16x32xf32>,
    %234 = vector.extract_strided_slice %215 {offsets = [48, 0], sizes = [16, 32], strides = [1, 1]} : vector<64x32xf32> to vector<16x32xf32>
    %c69_263 = arith.constant 69 : index
    %c0_264 = arith.constant 0 : index
    %235 = vector.load %arg16[%c69_263, %c0_264] : memref<88x64xf32, #tpu.memory_space<vmem>>, vector<16x32xf32>
    tpu.vector_store %arg16[%c69_263, %c0_264], %234 {strides = array<i32>} : memref<88x64xf32, #tpu.memory_space<vmem>>, vector<16x32xf32>,
    %c3_265 = arith.constant 3 : index
    %c0_266 = arith.constant 0 : index
    %c0_267 = arith.constant 0 : index
    %236 = vector.load %arg1[%c3_265, %c0_266, %c0_267] : memref<4x16x32xbf16, #tpu.memory_space<vmem>>, vector<1x16x32xbf16>
    %237 = vector.shape_cast %236 : vector<1x16x32xbf16> to vector<16x32xbf16>
    %238 = arith.extf %237 : vector<16x32xbf16> to vector<16x32xf32>
    %c69_268 = arith.constant 69 : index
    %c32_269 = arith.constant 32 : index
    %239 = vector.load %arg16[%c69_268, %c32_269] : memref<88x64xf32, #tpu.memory_space<vmem>>, vector<16x32xf32>
    tpu.vector_store %arg16[%c69_268, %c32_269], %238 {strides = array<i32>} : memref<88x64xf32, #tpu.memory_space<vmem>>, vector<16x32xf32>,
    %c0_270 = arith.constant 0 : index
    %c0_271 = arith.constant 0 : index
    %240 = tpu.strided_load %arg16[%c0_270, %c0_271] {strides = array<i32: 2, 1>} : memref<88x64xf32, #tpu.memory_space<vmem>>, vector<8x64xf32>
    %241 = arith.truncf %240 : vector<8x64xf32> to vector<8x64xbf16>
    %c0_272 = arith.constant 0 : index
    %c0_273 = arith.constant 0 : index
    %242 = vector.load %arg18[%c0_272, %c0_273] : memref<32x512xbf16, #tpu.memory_space<vmem>>, vector<8x64xbf16>
    tpu.vector_store %arg18[%c0_272, %c0_273], %241 {strides = array<i32>} : memref<32x512xbf16, #tpu.memory_space<vmem>>, vector<8x64xbf16>,
    %c1_274 = arith.constant 1 : index
    %c0_275 = arith.constant 0 : index
    %243 = tpu.strided_load %arg16[%c1_274, %c0_275] {strides = array<i32: 2, 1>} : memref<88x64xf32, #tpu.memory_space<vmem>>, vector<8x64xf32>
    %244 = arith.truncf %243 : vector<8x64xf32> to vector<8x64xbf16>
    %c0_276 = arith.constant 0 : index
    %c64_277 = arith.constant 64 : index
    %245 = vector.load %arg18[%c0_276, %c64_277] : memref<32x512xbf16, #tpu.memory_space<vmem>>, vector<8x64xbf16>
    tpu.vector_store %arg18[%c0_276, %c64_277], %244 {strides = array<i32>} : memref<32x512xbf16, #tpu.memory_space<vmem>>, vector<8x64xbf16>,
    %c2_278 = arith.constant 2 : index
    %c0_279 = arith.constant 0 : index
    %246 = tpu.strided_load %arg16[%c2_278, %c0_279] {strides = array<i32: 2, 1>} : memref<88x64xf32, #tpu.memory_space<vmem>>, vector<8x64xf32>
    %247 = arith.truncf %246 : vector<8x64xf32> to vector<8x64xbf16>
    %c0_280 = arith.constant 0 : index
    %c128_281 = arith.constant 128 : index
    %248 = vector.load %arg18[%c0_280, %c128_281] : memref<32x512xbf16, #tpu.memory_space<vmem>>, vector<8x64xbf16>
    tpu.vector_store %arg18[%c0_280, %c128_281], %247 {strides = array<i32>} : memref<32x512xbf16, #tpu.memory_space<vmem>>, vector<8x64xbf16>,
    %c3_282 = arith.constant 3 : index
    %c0_283 = arith.constant 0 : index
    %249 = tpu.strided_load %arg16[%c3_282, %c0_283] {strides = array<i32: 2, 1>} : memref<88x64xf32, #tpu.memory_space<vmem>>, vector<8x64xf32>
    %250 = arith.truncf %249 : vector<8x64xf32> to vector<8x64xbf16>
    %c0_284 = arith.constant 0 : index
    %c192_285 = arith.constant 192 : index
    %251 = vector.load %arg18[%c0_284, %c192_285] : memref<32x512xbf16, #tpu.memory_space<vmem>>, vector<8x64xbf16>
    tpu.vector_store %arg18[%c0_284, %c192_285], %250 {strides = array<i32>} : memref<32x512xbf16, #tpu.memory_space<vmem>>, vector<8x64xbf16>,
    %c4_286 = arith.constant 4 : index
    %c0_287 = arith.constant 0 : index
    %252 = tpu.strided_load %arg16[%c4_286, %c0_287] {strides = array<i32: 2, 1>} : memref<88x64xf32, #tpu.memory_space<vmem>>, vector<8x64xf32>
    %253 = arith.truncf %252 : vector<8x64xf32> to vector<8x64xbf16>
    %c0_288 = arith.constant 0 : index
    %c256 = arith.constant 256 : index
    %254 = vector.load %arg18[%c0_288, %c256] : memref<32x512xbf16, #tpu.memory_space<vmem>>, vector<8x64xbf16>
    tpu.vector_store %arg18[%c0_288, %c256], %253 {strides = array<i32>} : memref<32x512xbf16, #tpu.memory_space<vmem>>, vector<8x64xbf16>,
    %c5_289 = arith.constant 5 : index
    %c0_290 = arith.constant 0 : index
    %255 = tpu.strided_load %arg16[%c5_289, %c0_290] {strides = array<i32: 2, 1>} : memref<88x64xf32, #tpu.memory_space<vmem>>, vector<8x64xf32>
    %256 = arith.truncf %255 : vector<8x64xf32> to vector<8x64xbf16>
    %c0_291 = arith.constant 0 : index
    %c320 = arith.constant 320 : index
    %257 = vector.load %arg18[%c0_291, %c320] : memref<32x512xbf16, #tpu.memory_space<vmem>>, vector<8x64xbf16>
    tpu.vector_store %arg18[%c0_291, %c320], %256 {strides = array<i32>} : memref<32x512xbf16, #tpu.memory_space<vmem>>, vector<8x64xbf16>,
    %c6_292 = arith.constant 6 : index
    %c0_293 = arith.constant 0 : index
    %258 = tpu.strided_load %arg16[%c6_292, %c0_293] {strides = array<i32: 2, 1>} : memref<88x64xf32, #tpu.memory_space<vmem>>, vector<8x64xf32>
    %259 = arith.truncf %258 : vector<8x64xf32> to vector<8x64xbf16>
    %c0_294 = arith.constant 0 : index
    %c384 = arith.constant 384 : index
    %260 = vector.load %arg18[%c0_294, %c384] : memref<32x512xbf16, #tpu.memory_space<vmem>>, vector<8x64xbf16>
    tpu.vector_store %arg18[%c0_294, %c384], %259 {strides = array<i32>} : memref<32x512xbf16, #tpu.memory_space<vmem>>, vector<8x64xbf16>,
    %c22_295 = arith.constant 22 : index
    %c0_296 = arith.constant 0 : index
    %261 = tpu.strided_load %arg16[%c22_295, %c0_296] {strides = array<i32: 2, 1>} : memref<88x64xf32, #tpu.memory_space<vmem>>, vector<8x64xf32>
    %262 = arith.truncf %261 : vector<8x64xf32> to vector<8x64xbf16>
    %c8 = arith.constant 8 : index
    %c0_297 = arith.constant 0 : index
    %263 = vector.load %arg18[%c8, %c0_297] : memref<32x512xbf16, #tpu.memory_space<vmem>>, vector<8x64xbf16>
    tpu.vector_store %arg18[%c8, %c0_297], %262 {strides = array<i32>} : memref<32x512xbf16, #tpu.memory_space<vmem>>, vector<8x64xbf16>,
    %c23_298 = arith.constant 23 : index
    %c0_299 = arith.constant 0 : index
    %264 = tpu.strided_load %arg16[%c23_298, %c0_299] {strides = array<i32: 2, 1>} : memref<88x64xf32, #tpu.memory_space<vmem>>, vector<8x64xf32>
    %265 = arith.truncf %264 : vector<8x64xf32> to vector<8x64xbf16>
    %c8_300 = arith.constant 8 : index
    %c64_301 = arith.constant 64 : index
    %266 = vector.load %arg18[%c8_300, %c64_301] : memref<32x512xbf16, #tpu.memory_space<vmem>>, vector<8x64xbf16>
    tpu.vector_store %arg18[%c8_300, %c64_301], %265 {strides = array<i32>} : memref<32x512xbf16, #tpu.memory_space<vmem>>, vector<8x64xbf16>,
    %c24_302 = arith.constant 24 : index
    %c0_303 = arith.constant 0 : index
    %267 = tpu.strided_load %arg16[%c24_302, %c0_303] {strides = array<i32: 2, 1>} : memref<88x64xf32, #tpu.memory_space<vmem>>, vector<8x64xf32>
    %268 = arith.truncf %267 : vector<8x64xf32> to vector<8x64xbf16>
    %c8_304 = arith.constant 8 : index
    %c128_305 = arith.constant 128 : index
    %269 = vector.load %arg18[%c8_304, %c128_305] : memref<32x512xbf16, #tpu.memory_space<vmem>>, vector<8x64xbf16>
    tpu.vector_store %arg18[%c8_304, %c128_305], %268 {strides = array<i32>} : memref<32x512xbf16, #tpu.memory_space<vmem>>, vector<8x64xbf16>,
    %c25_306 = arith.constant 25 : index
    %c0_307 = arith.constant 0 : index
    %270 = tpu.strided_load %arg16[%c25_306, %c0_307] {strides = array<i32: 2, 1>} : memref<88x64xf32, #tpu.memory_space<vmem>>, vector<8x64xf32>
    %271 = arith.truncf %270 : vector<8x64xf32> to vector<8x64xbf16>
    %c8_308 = arith.constant 8 : index
    %c192_309 = arith.constant 192 : index
    %272 = vector.load %arg18[%c8_308, %c192_309] : memref<32x512xbf16, #tpu.memory_space<vmem>>, vector<8x64xbf16>
    tpu.vector_store %arg18[%c8_308, %c192_309], %271 {strides = array<i32>} : memref<32x512xbf16, #tpu.memory_space<vmem>>, vector<8x64xbf16>,
    %c26_310 = arith.constant 26 : index
    %c0_311 = arith.constant 0 : index
    %273 = tpu.strided_load %arg16[%c26_310, %c0_311] {strides = array<i32: 2, 1>} : memref<88x64xf32, #tpu.memory_space<vmem>>, vector<8x64xf32>
    %274 = arith.truncf %273 : vector<8x64xf32> to vector<8x64xbf16>
    %c8_312 = arith.constant 8 : index
    %c256_313 = arith.constant 256 : index
    %275 = vector.load %arg18[%c8_312, %c256_313] : memref<32x512xbf16, #tpu.memory_space<vmem>>, vector<8x64xbf16>
    tpu.vector_store %arg18[%c8_312, %c256_313], %274 {strides = array<i32>} : memref<32x512xbf16, #tpu.memory_space<vmem>>, vector<8x64xbf16>,
    %c27_314 = arith.constant 27 : index
    %c0_315 = arith.constant 0 : index
    %276 = tpu.strided_load %arg16[%c27_314, %c0_315] {strides = array<i32: 2, 1>} : memref<88x64xf32, #tpu.memory_space<vmem>>, vector<8x64xf32>
    %277 = arith.truncf %276 : vector<8x64xf32> to vector<8x64xbf16>
    %c8_316 = arith.constant 8 : index
    %c320_317 = arith.constant 320 : index
    %278 = vector.load %arg18[%c8_316, %c320_317] : memref<32x512xbf16, #tpu.memory_space<vmem>>, vector<8x64xbf16>
    tpu.vector_store %arg18[%c8_316, %c320_317], %277 {strides = array<i32>} : memref<32x512xbf16, #tpu.memory_space<vmem>>, vector<8x64xbf16>,
    %c28_318 = arith.constant 28 : index
    %c0_319 = arith.constant 0 : index
    %279 = tpu.strided_load %arg16[%c28_318, %c0_319] {strides = array<i32: 2, 1>} : memref<88x64xf32, #tpu.memory_space<vmem>>, vector<8x64xf32>
    %280 = arith.truncf %279 : vector<8x64xf32> to vector<8x64xbf16>
    %c8_320 = arith.constant 8 : index
    %c384_321 = arith.constant 384 : index
    %281 = vector.load %arg18[%c8_320, %c384_321] : memref<32x512xbf16, #tpu.memory_space<vmem>>, vector<8x64xbf16>
    tpu.vector_store %arg18[%c8_320, %c384_321], %280 {strides = array<i32>} : memref<32x512xbf16, #tpu.memory_space<vmem>>, vector<8x64xbf16>,
    %c44_322 = arith.constant 44 : index
    %c0_323 = arith.constant 0 : index
    %282 = tpu.strided_load %arg16[%c44_322, %c0_323] {strides = array<i32: 2, 1>} : memref<88x64xf32, #tpu.memory_space<vmem>>, vector<8x64xf32>
    %283 = arith.truncf %282 : vector<8x64xf32> to vector<8x64xbf16>
    %c16_324 = arith.constant 16 : index
    %c0_325 = arith.constant 0 : index
    %284 = vector.load %arg18[%c16_324, %c0_325] : memref<32x512xbf16, #tpu.memory_space<vmem>>, vector<8x64xbf16>
    tpu.vector_store %arg18[%c16_324, %c0_325], %283 {strides = array<i32>} : memref<32x512xbf16, #tpu.memory_space<vmem>>, vector<8x64xbf16>,
    %c45_326 = arith.constant 45 : index
    %c0_327 = arith.constant 0 : index
    %285 = tpu.strided_load %arg16[%c45_326, %c0_327] {strides = array<i32: 2, 1>} : memref<88x64xf32, #tpu.memory_space<vmem>>, vector<8x64xf32>
    %286 = arith.truncf %285 : vector<8x64xf32> to vector<8x64xbf16>
    %c16_328 = arith.constant 16 : index
    %c64_329 = arith.constant 64 : index
    %287 = vector.load %arg18[%c16_328, %c64_329] : memref<32x512xbf16, #tpu.memory_space<vmem>>, vector<8x64xbf16>
    tpu.vector_store %arg18[%c16_328, %c64_329], %286 {strides = array<i32>} : memref<32x512xbf16, #tpu.memory_space<vmem>>, vector<8x64xbf16>,
    %c46_330 = arith.constant 46 : index
    %c0_331 = arith.constant 0 : index
    %288 = tpu.strided_load %arg16[%c46_330, %c0_331] {strides = array<i32: 2, 1>} : memref<88x64xf32, #tpu.memory_space<vmem>>, vector<8x64xf32>
    %289 = arith.truncf %288 : vector<8x64xf32> to vector<8x64xbf16>
    %c16_332 = arith.constant 16 : index
    %c128_333 = arith.constant 128 : index
    %290 = vector.load %arg18[%c16_332, %c128_333] : memref<32x512xbf16, #tpu.memory_space<vmem>>, vector<8x64xbf16>
    tpu.vector_store %arg18[%c16_332, %c128_333], %289 {strides = array<i32>} : memref<32x512xbf16, #tpu.memory_space<vmem>>, vector<8x64xbf16>,
    %c47_334 = arith.constant 47 : index
    %c0_335 = arith.constant 0 : index
    %291 = tpu.strided_load %arg16[%c47_334, %c0_335] {strides = array<i32: 2, 1>} : memref<88x64xf32, #tpu.memory_space<vmem>>, vector<8x64xf32>
    %292 = arith.truncf %291 : vector<8x64xf32> to vector<8x64xbf16>
    %c16_336 = arith.constant 16 : index
    %c192_337 = arith.constant 192 : index
    %293 = vector.load %arg18[%c16_336, %c192_337] : memref<32x512xbf16, #tpu.memory_space<vmem>>, vector<8x64xbf16>
    tpu.vector_store %arg18[%c16_336, %c192_337], %292 {strides = array<i32>} : memref<32x512xbf16, #tpu.memory_space<vmem>>, vector<8x64xbf16>,
    %c48_338 = arith.constant 48 : index
    %c0_339 = arith.constant 0 : index
    %294 = tpu.strided_load %arg16[%c48_338, %c0_339] {strides = array<i32: 2, 1>} : memref<88x64xf32, #tpu.memory_space<vmem>>, vector<8x64xf32>
    %295 = arith.truncf %294 : vector<8x64xf32> to vector<8x64xbf16>
    %c16_340 = arith.constant 16 : index
    %c256_341 = arith.constant 256 : index
    %296 = vector.load %arg18[%c16_340, %c256_341] : memref<32x512xbf16, #tpu.memory_space<vmem>>, vector<8x64xbf16>
    tpu.vector_store %arg18[%c16_340, %c256_341], %295 {strides = array<i32>} : memref<32x512xbf16, #tpu.memory_space<vmem>>, vector<8x64xbf16>,
    %c49_342 = arith.constant 49 : index
    %c0_343 = arith.constant 0 : index
    %297 = tpu.strided_load %arg16[%c49_342, %c0_343] {strides = array<i32: 2, 1>} : memref<88x64xf32, #tpu.memory_space<vmem>>, vector<8x64xf32>
    %298 = arith.truncf %297 : vector<8x64xf32> to vector<8x64xbf16>
    %c16_344 = arith.constant 16 : index
    %c320_345 = arith.constant 320 : index
    %299 = vector.load %arg18[%c16_344, %c320_345] : memref<32x512xbf16, #tpu.memory_space<vmem>>, vector<8x64xbf16>
    tpu.vector_store %arg18[%c16_344, %c320_345], %298 {strides = array<i32>} : memref<32x512xbf16, #tpu.memory_space<vmem>>, vector<8x64xbf16>,
    %c50_346 = arith.constant 50 : index
    %c0_347 = arith.constant 0 : index
    %300 = tpu.strided_load %arg16[%c50_346, %c0_347] {strides = array<i32: 2, 1>} : memref<88x64xf32, #tpu.memory_space<vmem>>, vector<8x64xf32>
    %301 = arith.truncf %300 : vector<8x64xf32> to vector<8x64xbf16>
    %c16_348 = arith.constant 16 : index
    %c384_349 = arith.constant 384 : index
    %302 = vector.load %arg18[%c16_348, %c384_349] : memref<32x512xbf16, #tpu.memory_space<vmem>>, vector<8x64xbf16>
    tpu.vector_store %arg18[%c16_348, %c384_349], %301 {strides = array<i32>} : memref<32x512xbf16, #tpu.memory_space<vmem>>, vector<8x64xbf16>,
    %c66_350 = arith.constant 66 : index
    %c0_351 = arith.constant 0 : index
    %303 = tpu.strided_load %arg16[%c66_350, %c0_351] {strides = array<i32: 2, 1>} : memref<88x64xf32, #tpu.memory_space<vmem>>, vector<8x64xf32>
    %304 = arith.truncf %303 : vector<8x64xf32> to vector<8x64xbf16>
    %c24_352 = arith.constant 24 : index
    %c0_353 = arith.constant 0 : index
    %305 = vector.load %arg18[%c24_352, %c0_353] : memref<32x512xbf16, #tpu.memory_space<vmem>>, vector<8x64xbf16>
    tpu.vector_store %arg18[%c24_352, %c0_353], %304 {strides = array<i32>} : memref<32x512xbf16, #tpu.memory_space<vmem>>, vector<8x64xbf16>,
    %c67_354 = arith.constant 67 : index
    %c0_355 = arith.constant 0 : index
    %306 = tpu.strided_load %arg16[%c67_354, %c0_355] {strides = array<i32: 2, 1>} : memref<88x64xf32, #tpu.memory_space<vmem>>, vector<8x64xf32>
    %307 = arith.truncf %306 : vector<8x64xf32> to vector<8x64xbf16>
    %c24_356 = arith.constant 24 : index
    %c64_357 = arith.constant 64 : index
    %308 = vector.load %arg18[%c24_356, %c64_357] : memref<32x512xbf16, #tpu.memory_space<vmem>>, vector<8x64xbf16>
    tpu.vector_store %arg18[%c24_356, %c64_357], %307 {strides = array<i32>} : memref<32x512xbf16, #tpu.memory_space<vmem>>, vector<8x64xbf16>,
    %c68_358 = arith.constant 68 : index
    %c0_359 = arith.constant 0 : index
    %309 = tpu.strided_load %arg16[%c68_358, %c0_359] {strides = array<i32: 2, 1>} : memref<88x64xf32, #tpu.memory_space<vmem>>, vector<8x64xf32>
    %310 = arith.truncf %309 : vector<8x64xf32> to vector<8x64xbf16>
    %c24_360 = arith.constant 24 : index
    %c128_361 = arith.constant 128 : index
    %311 = vector.load %arg18[%c24_360, %c128_361] : memref<32x512xbf16, #tpu.memory_space<vmem>>, vector<8x64xbf16>
    tpu.vector_store %arg18[%c24_360, %c128_361], %310 {strides = array<i32>} : memref<32x512xbf16, #tpu.memory_space<vmem>>, vector<8x64xbf16>,
    %c69_362 = arith.constant 69 : index
    %c0_363 = arith.constant 0 : index
    %312 = tpu.strided_load %arg16[%c69_362, %c0_363] {strides = array<i32: 2, 1>} : memref<88x64xf32, #tpu.memory_space<vmem>>, vector<8x64xf32>
    %313 = arith.truncf %312 : vector<8x64xf32> to vector<8x64xbf16>
    %c24_364 = arith.constant 24 : index
    %c192_365 = arith.constant 192 : index
    %314 = vector.load %arg18[%c24_364, %c192_365] : memref<32x512xbf16, #tpu.memory_space<vmem>>, vector<8x64xbf16>
    tpu.vector_store %arg18[%c24_364, %c192_365], %313 {strides = array<i32>} : memref<32x512xbf16, #tpu.memory_space<vmem>>, vector<8x64xbf16>,
    %c70_366 = arith.constant 70 : index
    %c0_367 = arith.constant 0 : index
    %315 = tpu.strided_load %arg16[%c70_366, %c0_367] {strides = array<i32: 2, 1>} : memref<88x64xf32, #tpu.memory_space<vmem>>, vector<8x64xf32>
    %316 = arith.truncf %315 : vector<8x64xf32> to vector<8x64xbf16>
    %c24_368 = arith.constant 24 : index
    %c256_369 = arith.constant 256 : index
    %317 = vector.load %arg18[%c24_368, %c256_369] : memref<32x512xbf16, #tpu.memory_space<vmem>>, vector<8x64xbf16>
    tpu.vector_store %arg18[%c24_368, %c256_369], %316 {strides = array<i32>} : memref<32x512xbf16, #tpu.memory_space<vmem>>, vector<8x64xbf16>,
    %c71_370 = arith.constant 71 : index
    %c0_371 = arith.constant 0 : index
    %318 = tpu.strided_load %arg16[%c71_370, %c0_371] {strides = array<i32: 2, 1>} : memref<88x64xf32, #tpu.memory_space<vmem>>, vector<8x64xf32>
    %319 = arith.truncf %318 : vector<8x64xf32> to vector<8x64xbf16>
    %c24_372 = arith.constant 24 : index
    %c320_373 = arith.constant 320 : index
    %320 = vector.load %arg18[%c24_372, %c320_373] : memref<32x512xbf16, #tpu.memory_space<vmem>>, vector<8x64xbf16>
    tpu.vector_store %arg18[%c24_372, %c320_373], %319 {strides = array<i32>} : memref<32x512xbf16, #tpu.memory_space<vmem>>, vector<8x64xbf16>,
    %c72_374 = arith.constant 72 : index
    %c0_375 = arith.constant 0 : index
    %321 = tpu.strided_load %arg16[%c72_374, %c0_375] {strides = array<i32: 2, 1>} : memref<88x64xf32, #tpu.memory_space<vmem>>, vector<8x64xf32>
    %322 = arith.truncf %321 : vector<8x64xf32> to vector<8x64xbf16>
    %c24_376 = arith.constant 24 : index
    %c384_377 = arith.constant 384 : index
    %323 = vector.load %arg18[%c24_376, %c384_377] : memref<32x512xbf16, #tpu.memory_space<vmem>>, vector<8x64xbf16>
    tpu.vector_store %arg18[%c24_376, %c384_377], %322 {strides = array<i32>} : memref<32x512xbf16, #tpu.memory_space<vmem>>, vector<8x64xbf16>,
    %c0_378 = arith.constant 0 : index
    %c0_379 = arith.constant 0 : index
    %324 = vector.load %arg18[%c0_378, %c0_379] : memref<32x512xbf16, #tpu.memory_space<vmem>>, vector<32x512xbf16>
    %c0_380 = arith.constant 0 : index
    %c0_381 = arith.constant 0 : index
    %325 = vector.load %arg6[%c0_380, %c0_381] : memref<512x32xbf16, #tpu.memory_space<vmem>>, vector<512x32xbf16>
    %cst_382 = arith.constant dense<0.000000e+00> : vector<32x32xf32>
    %326 = tpu.matmul %324, %325, %cst_382 {dimension_numbers = #tpu.dot_dimension_numbers<[1], [0], [0], [1], [0, 0, 1, 1], [], []>} : vector<32x512xbf16>, vector<512x32xbf16>, vector<32x32xf32> -> vector<32x32xf32>
    %c0_383 = arith.constant 0 : index
    %c0_384 = arith.constant 0 : index
    %327 = vector.load %arg7[%c0_383, %c0_384] : memref<1x32xf32, #tpu.memory_space<vmem>>, vector<1x32xf32>
    %328 = vector.broadcast %327 : vector<1x32xf32> to vector<32x32xf32>
    %329 = arith.addf %326, %328 : vector<32x32xf32>
    %cst_385 = arith.constant 0.000000e+00 : f32
    %330 = vector.broadcast %cst_385 : f32 to vector<32x32xf32>
    %331 = arith.maximumf %329, %330 : vector<32x32xf32>
    %332 = vector.extract_strided_slice %331 {offsets = [0, 0], sizes = [8, 32], strides = [1, 1]} : vector<32x32xf32> to vector<8x32xf32>
    %c3_386 = arith.constant 3 : index
    %c0_387 = arith.constant 0 : index
    %333 = vector.load %arg15[%c3_386, %c0_387] : memref<88x32xf32, #tpu.memory_space<vmem>>, vector<8x32xf32>
    tpu.vector_store %arg15[%c3_386, %c0_387], %332 {strides = array<i32>} : memref<88x32xf32, #tpu.memory_space<vmem>>, vector<8x32xf32>,
    %cst_388 = arith.constant 0.000000e+00 : f32
    %334 = vector.broadcast %cst_388 : f32 to vector<8x32xf32>
    %c11 = arith.constant 11 : index
    %c0_389 = arith.constant 0 : index
    %335 = vector.load %arg15[%c11, %c0_389] : memref<88x32xf32, #tpu.memory_space<vmem>>, vector<8x32xf32>
    tpu.vector_store %arg15[%c11, %c0_389], %334 {strides = array<i32>} : memref<88x32xf32, #tpu.memory_space<vmem>>, vector<8x32xf32>,
    %336 = vector.extract_strided_slice %331 {offsets = [8, 0], sizes = [8, 32], strides = [1, 1]} : vector<32x32xf32> to vector<8x32xf32>
    %c25_390 = arith.constant 25 : index
    %c0_391 = arith.constant 0 : index
    %337 = vector.load %arg15[%c25_390, %c0_391] : memref<88x32xf32, #tpu.memory_space<vmem>>, vector<8x32xf32>
    tpu.vector_store %arg15[%c25_390, %c0_391], %336 {strides = array<i32>} : memref<88x32xf32, #tpu.memory_space<vmem>>, vector<8x32xf32>,
    %cst_392 = arith.constant 0.000000e+00 : f32
    %338 = vector.broadcast %cst_392 : f32 to vector<8x32xf32>
    %c33 = arith.constant 33 : index
    %c0_393 = arith.constant 0 : index
    %339 = vector.load %arg15[%c33, %c0_393] : memref<88x32xf32, #tpu.memory_space<vmem>>, vector<8x32xf32>
    tpu.vector_store %arg15[%c33, %c0_393], %338 {strides = array<i32>} : memref<88x32xf32, #tpu.memory_space<vmem>>, vector<8x32xf32>,
    %340 = vector.extract_strided_slice %331 {offsets = [16, 0], sizes = [8, 32], strides = [1, 1]} : vector<32x32xf32> to vector<8x32xf32>
    %c47_394 = arith.constant 47 : index
    %c0_395 = arith.constant 0 : index
    %341 = vector.load %arg15[%c47_394, %c0_395] : memref<88x32xf32, #tpu.memory_space<vmem>>, vector<8x32xf32>
    tpu.vector_store %arg15[%c47_394, %c0_395], %340 {strides = array<i32>} : memref<88x32xf32, #tpu.memory_space<vmem>>, vector<8x32xf32>,
    %cst_396 = arith.constant 0.000000e+00 : f32
    %342 = vector.broadcast %cst_396 : f32 to vector<8x32xf32>
    %c55 = arith.constant 55 : index
    %c0_397 = arith.constant 0 : index
    %343 = vector.load %arg15[%c55, %c0_397] : memref<88x32xf32, #tpu.memory_space<vmem>>, vector<8x32xf32>
    tpu.vector_store %arg15[%c55, %c0_397], %342 {strides = array<i32>} : memref<88x32xf32, #tpu.memory_space<vmem>>, vector<8x32xf32>,
    %344 = vector.extract_strided_slice %331 {offsets = [24, 0], sizes = [8, 32], strides = [1, 1]} : vector<32x32xf32> to vector<8x32xf32>
    %c69_398 = arith.constant 69 : index
    %c0_399 = arith.constant 0 : index
    %345 = vector.load %arg15[%c69_398, %c0_399] : memref<88x32xf32, #tpu.memory_space<vmem>>, vector<8x32xf32>
    tpu.vector_store %arg15[%c69_398, %c0_399], %344 {strides = array<i32>} : memref<88x32xf32, #tpu.memory_space<vmem>>, vector<8x32xf32>,
    %cst_400 = arith.constant 0.000000e+00 : f32
    %346 = vector.broadcast %cst_400 : f32 to vector<8x32xf32>
    %c77 = arith.constant 77 : index
    %c0_401 = arith.constant 0 : index
    %347 = vector.load %arg15[%c77, %c0_401] : memref<88x32xf32, #tpu.memory_space<vmem>>, vector<8x32xf32>
    tpu.vector_store %arg15[%c77, %c0_401], %346 {strides = array<i32>} : memref<88x32xf32, #tpu.memory_space<vmem>>, vector<8x32xf32>,
    %c0_402 = arith.constant 0 : index
    %c0_403 = arith.constant 0 : index
    %348 = tpu.strided_load %arg15[%c0_402, %c0_403] {strides = array<i32: 2, 1>} : memref<88x32xf32, #tpu.memory_space<vmem>>, vector<4x32xf32>
    %349 = arith.truncf %348 : vector<4x32xf32> to vector<4x32xbf16>
    %c0_404 = arith.constant 0 : index
    %c0_405 = arith.constant 0 : index
    %350 = vector.load %arg17[%c0_404, %c0_405] : memref<64x256xbf16, #tpu.memory_space<vmem>>, vector<4x32xbf16>
    tpu.vector_store %arg17[%c0_404, %c0_405], %349 {strides = array<i32>} : memref<64x256xbf16, #tpu.memory_space<vmem>>, vector<4x32xbf16>,
    %c1_406 = arith.constant 1 : index
    %c0_407 = arith.constant 0 : index
    %351 = tpu.strided_load %arg15[%c1_406, %c0_407] {strides = array<i32: 2, 1>} : memref<88x32xf32, #tpu.memory_space<vmem>>, vector<4x32xf32>
    %352 = arith.truncf %351 : vector<4x32xf32> to vector<4x32xbf16>
    %c0_408 = arith.constant 0 : index
    %c32_409 = arith.constant 32 : index
    %353 = vector.load %arg17[%c0_408, %c32_409] : memref<64x256xbf16, #tpu.memory_space<vmem>>, vector<4x32xbf16>
    tpu.vector_store %arg17[%c0_408, %c32_409], %352 {strides = array<i32>} : memref<64x256xbf16, #tpu.memory_space<vmem>>, vector<4x32xbf16>,
    %c2_410 = arith.constant 2 : index
    %c0_411 = arith.constant 0 : index
    %354 = tpu.strided_load %arg15[%c2_410, %c0_411] {strides = array<i32: 2, 1>} : memref<88x32xf32, #tpu.memory_space<vmem>>, vector<4x32xf32>
    %355 = arith.truncf %354 : vector<4x32xf32> to vector<4x32xbf16>
    %c0_412 = arith.constant 0 : index
    %c64_413 = arith.constant 64 : index
    %356 = vector.load %arg17[%c0_412, %c64_413] : memref<64x256xbf16, #tpu.memory_space<vmem>>, vector<4x32xbf16>
    tpu.vector_store %arg17[%c0_412, %c64_413], %355 {strides = array<i32>} : memref<64x256xbf16, #tpu.memory_space<vmem>>, vector<4x32xbf16>,
    %c3_414 = arith.constant 3 : index
    %c0_415 = arith.constant 0 : index
    %357 = tpu.strided_load %arg15[%c3_414, %c0_415] {strides = array<i32: 2, 1>} : memref<88x32xf32, #tpu.memory_space<vmem>>, vector<4x32xf32>
    %358 = arith.truncf %357 : vector<4x32xf32> to vector<4x32xbf16>
    %c0_416 = arith.constant 0 : index
    %c96_417 = arith.constant 96 : index
    %359 = vector.load %arg17[%c0_416, %c96_417] : memref<64x256xbf16, #tpu.memory_space<vmem>>, vector<4x32xbf16>
    tpu.vector_store %arg17[%c0_416, %c96_417], %358 {strides = array<i32>} : memref<64x256xbf16, #tpu.memory_space<vmem>>, vector<4x32xbf16>,
    %c4_418 = arith.constant 4 : index
    %c0_419 = arith.constant 0 : index
    %360 = tpu.strided_load %arg15[%c4_418, %c0_419] {strides = array<i32: 2, 1>} : memref<88x32xf32, #tpu.memory_space<vmem>>, vector<4x32xf32>
    %361 = arith.truncf %360 : vector<4x32xf32> to vector<4x32xbf16>
    %c0_420 = arith.constant 0 : index
    %c128_421 = arith.constant 128 : index
    %362 = vector.load %arg17[%c0_420, %c128_421] : memref<64x256xbf16, #tpu.memory_space<vmem>>, vector<4x32xbf16>
    tpu.vector_store %arg17[%c0_420, %c128_421], %361 {strides = array<i32>} : memref<64x256xbf16, #tpu.memory_space<vmem>>, vector<4x32xbf16>,
    %c5_422 = arith.constant 5 : index
    %c0_423 = arith.constant 0 : index
    %363 = tpu.strided_load %arg15[%c5_422, %c0_423] {strides = array<i32: 2, 1>} : memref<88x32xf32, #tpu.memory_space<vmem>>, vector<4x32xf32>
    %364 = arith.truncf %363 : vector<4x32xf32> to vector<4x32xbf16>
    %c0_424 = arith.constant 0 : index
    %c160_425 = arith.constant 160 : index
    %365 = vector.load %arg17[%c0_424, %c160_425] : memref<64x256xbf16, #tpu.memory_space<vmem>>, vector<4x32xbf16>
    tpu.vector_store %arg17[%c0_424, %c160_425], %364 {strides = array<i32>} : memref<64x256xbf16, #tpu.memory_space<vmem>>, vector<4x32xbf16>,
    %c6_426 = arith.constant 6 : index
    %c0_427 = arith.constant 0 : index
    %366 = tpu.strided_load %arg15[%c6_426, %c0_427] {strides = array<i32: 2, 1>} : memref<88x32xf32, #tpu.memory_space<vmem>>, vector<4x32xf32>
    %367 = arith.truncf %366 : vector<4x32xf32> to vector<4x32xbf16>
    %c0_428 = arith.constant 0 : index
    %c192_429 = arith.constant 192 : index
    %368 = vector.load %arg17[%c0_428, %c192_429] : memref<64x256xbf16, #tpu.memory_space<vmem>>, vector<4x32xbf16>
    tpu.vector_store %arg17[%c0_428, %c192_429], %367 {strides = array<i32>} : memref<64x256xbf16, #tpu.memory_space<vmem>>, vector<4x32xbf16>,
    %c22_430 = arith.constant 22 : index
    %c0_431 = arith.constant 0 : index
    %369 = tpu.strided_load %arg15[%c22_430, %c0_431] {strides = array<i32: 2, 1>} : memref<88x32xf32, #tpu.memory_space<vmem>>, vector<4x32xf32>
    %370 = arith.truncf %369 : vector<4x32xf32> to vector<4x32xbf16>
    %c4_432 = arith.constant 4 : index
    %c0_433 = arith.constant 0 : index
    %371 = vector.load %arg17[%c4_432, %c0_433] : memref<64x256xbf16, #tpu.memory_space<vmem>>, vector<4x32xbf16>
    tpu.vector_store %arg17[%c4_432, %c0_433], %370 {strides = array<i32>} : memref<64x256xbf16, #tpu.memory_space<vmem>>, vector<4x32xbf16>,
    %c23_434 = arith.constant 23 : index
    %c0_435 = arith.constant 0 : index
    %372 = tpu.strided_load %arg15[%c23_434, %c0_435] {strides = array<i32: 2, 1>} : memref<88x32xf32, #tpu.memory_space<vmem>>, vector<4x32xf32>
    %373 = arith.truncf %372 : vector<4x32xf32> to vector<4x32xbf16>
    %c4_436 = arith.constant 4 : index
    %c32_437 = arith.constant 32 : index
    %374 = vector.load %arg17[%c4_436, %c32_437] : memref<64x256xbf16, #tpu.memory_space<vmem>>, vector<4x32xbf16>
    tpu.vector_store %arg17[%c4_436, %c32_437], %373 {strides = array<i32>} : memref<64x256xbf16, #tpu.memory_space<vmem>>, vector<4x32xbf16>,
    %c24_438 = arith.constant 24 : index
    %c0_439 = arith.constant 0 : index
    %375 = tpu.strided_load %arg15[%c24_438, %c0_439] {strides = array<i32: 2, 1>} : memref<88x32xf32, #tpu.memory_space<vmem>>, vector<4x32xf32>
    %376 = arith.truncf %375 : vector<4x32xf32> to vector<4x32xbf16>
    %c4_440 = arith.constant 4 : index
    %c64_441 = arith.constant 64 : index
    %377 = vector.load %arg17[%c4_440, %c64_441] : memref<64x256xbf16, #tpu.memory_space<vmem>>, vector<4x32xbf16>
    tpu.vector_store %arg17[%c4_440, %c64_441], %376 {strides = array<i32>} : memref<64x256xbf16, #tpu.memory_space<vmem>>, vector<4x32xbf16>,
    %c25_442 = arith.constant 25 : index
    %c0_443 = arith.constant 0 : index
    %378 = tpu.strided_load %arg15[%c25_442, %c0_443] {strides = array<i32: 2, 1>} : memref<88x32xf32, #tpu.memory_space<vmem>>, vector<4x32xf32>
    %379 = arith.truncf %378 : vector<4x32xf32> to vector<4x32xbf16>
    %c4_444 = arith.constant 4 : index
    %c96_445 = arith.constant 96 : index
    %380 = vector.load %arg17[%c4_444, %c96_445] : memref<64x256xbf16, #tpu.memory_space<vmem>>, vector<4x32xbf16>
    tpu.vector_store %arg17[%c4_444, %c96_445], %379 {strides = array<i32>} : memref<64x256xbf16, #tpu.memory_space<vmem>>, vector<4x32xbf16>,
    %c26_446 = arith.constant 26 : index
    %c0_447 = arith.constant 0 : index
    %381 = tpu.strided_load %arg15[%c26_446, %c0_447] {strides = array<i32: 2, 1>} : memref<88x32xf32, #tpu.memory_space<vmem>>, vector<4x32xf32>
    %382 = arith.truncf %381 : vector<4x32xf32> to vector<4x32xbf16>
    %c4_448 = arith.constant 4 : index
    %c128_449 = arith.constant 128 : index
    %383 = vector.load %arg17[%c4_448, %c128_449] : memref<64x256xbf16, #tpu.memory_space<vmem>>, vector<4x32xbf16>
    tpu.vector_store %arg17[%c4_448, %c128_449], %382 {strides = array<i32>} : memref<64x256xbf16, #tpu.memory_space<vmem>>, vector<4x32xbf16>,
    %c27_450 = arith.constant 27 : index
    %c0_451 = arith.constant 0 : index
    %384 = tpu.strided_load %arg15[%c27_450, %c0_451] {strides = array<i32: 2, 1>} : memref<88x32xf32, #tpu.memory_space<vmem>>, vector<4x32xf32>
    %385 = arith.truncf %384 : vector<4x32xf32> to vector<4x32xbf16>
    %c4_452 = arith.constant 4 : index
    %c160_453 = arith.constant 160 : index
    %386 = vector.load %arg17[%c4_452, %c160_453] : memref<64x256xbf16, #tpu.memory_space<vmem>>, vector<4x32xbf16>
    tpu.vector_store %arg17[%c4_452, %c160_453], %385 {strides = array<i32>} : memref<64x256xbf16, #tpu.memory_space<vmem>>, vector<4x32xbf16>,
    %c28_454 = arith.constant 28 : index
    %c0_455 = arith.constant 0 : index
    %387 = tpu.strided_load %arg15[%c28_454, %c0_455] {strides = array<i32: 2, 1>} : memref<88x32xf32, #tpu.memory_space<vmem>>, vector<4x32xf32>
    %388 = arith.truncf %387 : vector<4x32xf32> to vector<4x32xbf16>
    %c4_456 = arith.constant 4 : index
    %c192_457 = arith.constant 192 : index
    %389 = vector.load %arg17[%c4_456, %c192_457] : memref<64x256xbf16, #tpu.memory_space<vmem>>, vector<4x32xbf16>
    tpu.vector_store %arg17[%c4_456, %c192_457], %388 {strides = array<i32>} : memref<64x256xbf16, #tpu.memory_space<vmem>>, vector<4x32xbf16>,
    %c44_458 = arith.constant 44 : index
    %c0_459 = arith.constant 0 : index
    %390 = tpu.strided_load %arg15[%c44_458, %c0_459] {strides = array<i32: 2, 1>} : memref<88x32xf32, #tpu.memory_space<vmem>>, vector<4x32xf32>
    %391 = arith.truncf %390 : vector<4x32xf32> to vector<4x32xbf16>
    %c8_460 = arith.constant 8 : index
    %c0_461 = arith.constant 0 : index
    %392 = vector.load %arg17[%c8_460, %c0_461] : memref<64x256xbf16, #tpu.memory_space<vmem>>, vector<4x32xbf16>
    tpu.vector_store %arg17[%c8_460, %c0_461], %391 {strides = array<i32>} : memref<64x256xbf16, #tpu.memory_space<vmem>>, vector<4x32xbf16>,
    %c45_462 = arith.constant 45 : index
    %c0_463 = arith.constant 0 : index
    %393 = tpu.strided_load %arg15[%c45_462, %c0_463] {strides = array<i32: 2, 1>} : memref<88x32xf32, #tpu.memory_space<vmem>>, vector<4x32xf32>
    %394 = arith.truncf %393 : vector<4x32xf32> to vector<4x32xbf16>
    %c8_464 = arith.constant 8 : index
    %c32_465 = arith.constant 32 : index
    %395 = vector.load %arg17[%c8_464, %c32_465] : memref<64x256xbf16, #tpu.memory_space<vmem>>, vector<4x32xbf16>
    tpu.vector_store %arg17[%c8_464, %c32_465], %394 {strides = array<i32>} : memref<64x256xbf16, #tpu.memory_space<vmem>>, vector<4x32xbf16>,
    %c46_466 = arith.constant 46 : index
    %c0_467 = arith.constant 0 : index
    %396 = tpu.strided_load %arg15[%c46_466, %c0_467] {strides = array<i32: 2, 1>} : memref<88x32xf32, #tpu.memory_space<vmem>>, vector<4x32xf32>
    %397 = arith.truncf %396 : vector<4x32xf32> to vector<4x32xbf16>
    %c8_468 = arith.constant 8 : index
    %c64_469 = arith.constant 64 : index
    %398 = vector.load %arg17[%c8_468, %c64_469] : memref<64x256xbf16, #tpu.memory_space<vmem>>, vector<4x32xbf16>
    tpu.vector_store %arg17[%c8_468, %c64_469], %397 {strides = array<i32>} : memref<64x256xbf16, #tpu.memory_space<vmem>>, vector<4x32xbf16>,
    %c47_470 = arith.constant 47 : index
    %c0_471 = arith.constant 0 : index
    %399 = tpu.strided_load %arg15[%c47_470, %c0_471] {strides = array<i32: 2, 1>} : memref<88x32xf32, #tpu.memory_space<vmem>>, vector<4x32xf32>
    %400 = arith.truncf %399 : vector<4x32xf32> to vector<4x32xbf16>
    %c8_472 = arith.constant 8 : index
    %c96_473 = arith.constant 96 : index
    %401 = vector.load %arg17[%c8_472, %c96_473] : memref<64x256xbf16, #tpu.memory_space<vmem>>, vector<4x32xbf16>
    tpu.vector_store %arg17[%c8_472, %c96_473], %400 {strides = array<i32>} : memref<64x256xbf16, #tpu.memory_space<vmem>>, vector<4x32xbf16>,
    %c48_474 = arith.constant 48 : index
    %c0_475 = arith.constant 0 : index
    %402 = tpu.strided_load %arg15[%c48_474, %c0_475] {strides = array<i32: 2, 1>} : memref<88x32xf32, #tpu.memory_space<vmem>>, vector<4x32xf32>
    %403 = arith.truncf %402 : vector<4x32xf32> to vector<4x32xbf16>
    %c8_476 = arith.constant 8 : index
    %c128_477 = arith.constant 128 : index
    %404 = vector.load %arg17[%c8_476, %c128_477] : memref<64x256xbf16, #tpu.memory_space<vmem>>, vector<4x32xbf16>
    tpu.vector_store %arg17[%c8_476, %c128_477], %403 {strides = array<i32>} : memref<64x256xbf16, #tpu.memory_space<vmem>>, vector<4x32xbf16>,
    %c49_478 = arith.constant 49 : index
    %c0_479 = arith.constant 0 : index
    %405 = tpu.strided_load %arg15[%c49_478, %c0_479] {strides = array<i32: 2, 1>} : memref<88x32xf32, #tpu.memory_space<vmem>>, vector<4x32xf32>
    %406 = arith.truncf %405 : vector<4x32xf32> to vector<4x32xbf16>
    %c8_480 = arith.constant 8 : index
    %c160_481 = arith.constant 160 : index
    %407 = vector.load %arg17[%c8_480, %c160_481] : memref<64x256xbf16, #tpu.memory_space<vmem>>, vector<4x32xbf16>
    tpu.vector_store %arg17[%c8_480, %c160_481], %406 {strides = array<i32>} : memref<64x256xbf16, #tpu.memory_space<vmem>>, vector<4x32xbf16>,
    %c50_482 = arith.constant 50 : index
    %c0_483 = arith.constant 0 : index
    %408 = tpu.strided_load %arg15[%c50_482, %c0_483] {strides = array<i32: 2, 1>} : memref<88x32xf32, #tpu.memory_space<vmem>>, vector<4x32xf32>
    %409 = arith.truncf %408 : vector<4x32xf32> to vector<4x32xbf16>
    %c8_484 = arith.constant 8 : index
    %c192_485 = arith.constant 192 : index
    %410 = vector.load %arg17[%c8_484, %c192_485] : memref<64x256xbf16, #tpu.memory_space<vmem>>, vector<4x32xbf16>
    tpu.vector_store %arg17[%c8_484, %c192_485], %409 {strides = array<i32>} : memref<64x256xbf16, #tpu.memory_space<vmem>>, vector<4x32xbf16>,
    %c66_486 = arith.constant 66 : index
    %c0_487 = arith.constant 0 : index
    %411 = tpu.strided_load %arg15[%c66_486, %c0_487] {strides = array<i32: 2, 1>} : memref<88x32xf32, #tpu.memory_space<vmem>>, vector<4x32xf32>
    %412 = arith.truncf %411 : vector<4x32xf32> to vector<4x32xbf16>
    %c12 = arith.constant 12 : index
    %c0_488 = arith.constant 0 : index
    %413 = vector.load %arg17[%c12, %c0_488] : memref<64x256xbf16, #tpu.memory_space<vmem>>, vector<4x32xbf16>
    tpu.vector_store %arg17[%c12, %c0_488], %412 {strides = array<i32>} : memref<64x256xbf16, #tpu.memory_space<vmem>>, vector<4x32xbf16>,
    %c67_489 = arith.constant 67 : index
    %c0_490 = arith.constant 0 : index
    %414 = tpu.strided_load %arg15[%c67_489, %c0_490] {strides = array<i32: 2, 1>} : memref<88x32xf32, #tpu.memory_space<vmem>>, vector<4x32xf32>
    %415 = arith.truncf %414 : vector<4x32xf32> to vector<4x32xbf16>
    %c12_491 = arith.constant 12 : index
    %c32_492 = arith.constant 32 : index
    %416 = vector.load %arg17[%c12_491, %c32_492] : memref<64x256xbf16, #tpu.memory_space<vmem>>, vector<4x32xbf16>
    tpu.vector_store %arg17[%c12_491, %c32_492], %415 {strides = array<i32>} : memref<64x256xbf16, #tpu.memory_space<vmem>>, vector<4x32xbf16>,
    %c68_493 = arith.constant 68 : index
    %c0_494 = arith.constant 0 : index
    %417 = tpu.strided_load %arg15[%c68_493, %c0_494] {strides = array<i32: 2, 1>} : memref<88x32xf32, #tpu.memory_space<vmem>>, vector<4x32xf32>
    %418 = arith.truncf %417 : vector<4x32xf32> to vector<4x32xbf16>
    %c12_495 = arith.constant 12 : index
    %c64_496 = arith.constant 64 : index
    %419 = vector.load %arg17[%c12_495, %c64_496] : memref<64x256xbf16, #tpu.memory_space<vmem>>, vector<4x32xbf16>
    tpu.vector_store %arg17[%c12_495, %c64_496], %418 {strides = array<i32>} : memref<64x256xbf16, #tpu.memory_space<vmem>>, vector<4x32xbf16>,
    %c69_497 = arith.constant 69 : index
    %c0_498 = arith.constant 0 : index
    %420 = tpu.strided_load %arg15[%c69_497, %c0_498] {strides = array<i32: 2, 1>} : memref<88x32xf32, #tpu.memory_space<vmem>>, vector<4x32xf32>
    %421 = arith.truncf %420 : vector<4x32xf32> to vector<4x32xbf16>
    %c12_499 = arith.constant 12 : index
    %c96_500 = arith.constant 96 : index
    %422 = vector.load %arg17[%c12_499, %c96_500] : memref<64x256xbf16, #tpu.memory_space<vmem>>, vector<4x32xbf16>
    tpu.vector_store %arg17[%c12_499, %c96_500], %421 {strides = array<i32>} : memref<64x256xbf16, #tpu.memory_space<vmem>>, vector<4x32xbf16>,
    %c70_501 = arith.constant 70 : index
    %c0_502 = arith.constant 0 : index
    %423 = tpu.strided_load %arg15[%c70_501, %c0_502] {strides = array<i32: 2, 1>} : memref<88x32xf32, #tpu.memory_space<vmem>>, vector<4x32xf32>
    %424 = arith.truncf %423 : vector<4x32xf32> to vector<4x32xbf16>
    %c12_503 = arith.constant 12 : index
    %c128_504 = arith.constant 128 : index
    %425 = vector.load %arg17[%c12_503, %c128_504] : memref<64x256xbf16, #tpu.memory_space<vmem>>, vector<4x32xbf16>
    tpu.vector_store %arg17[%c12_503, %c128_504], %424 {strides = array<i32>} : memref<64x256xbf16, #tpu.memory_space<vmem>>, vector<4x32xbf16>,
    %c71_505 = arith.constant 71 : index
    %c0_506 = arith.constant 0 : index
    %426 = tpu.strided_load %arg15[%c71_505, %c0_506] {strides = array<i32: 2, 1>} : memref<88x32xf32, #tpu.memory_space<vmem>>, vector<4x32xf32>
    %427 = arith.truncf %426 : vector<4x32xf32> to vector<4x32xbf16>
    %c12_507 = arith.constant 12 : index
    %c160_508 = arith.constant 160 : index
    %428 = vector.load %arg17[%c12_507, %c160_508] : memref<64x256xbf16, #tpu.memory_space<vmem>>, vector<4x32xbf16>
    tpu.vector_store %arg17[%c12_507, %c160_508], %427 {strides = array<i32>} : memref<64x256xbf16, #tpu.memory_space<vmem>>, vector<4x32xbf16>,
    %c72_509 = arith.constant 72 : index
    %c0_510 = arith.constant 0 : index
    %429 = tpu.strided_load %arg15[%c72_509, %c0_510] {strides = array<i32: 2, 1>} : memref<88x32xf32, #tpu.memory_space<vmem>>, vector<4x32xf32>
    %430 = arith.truncf %429 : vector<4x32xf32> to vector<4x32xbf16>
    %c12_511 = arith.constant 12 : index
    %c192_512 = arith.constant 192 : index
    %431 = vector.load %arg17[%c12_511, %c192_512] : memref<64x256xbf16, #tpu.memory_space<vmem>>, vector<4x32xbf16>
    tpu.vector_store %arg17[%c12_511, %c192_512], %430 {strides = array<i32>} : memref<64x256xbf16, #tpu.memory_space<vmem>>, vector<4x32xbf16>,
    %c0_513 = arith.constant 0 : index
    %c0_514 = arith.constant 0 : index
    %432 = vector.load %arg17[%c0_513, %c0_514] : memref<64x256xbf16, #tpu.memory_space<vmem>>, vector<16x256xbf16>
    %c0_515 = arith.constant 0 : index
    %c0_516 = arith.constant 0 : index
    %433 = vector.load %arg8[%c0_515, %c0_516] : memref<256x32xbf16, #tpu.memory_space<vmem>>, vector<256x32xbf16>
    %cst_517 = arith.constant dense<0.000000e+00> : vector<16x32xf32>
    %434 = tpu.matmul %432, %433, %cst_517 {dimension_numbers = #tpu.dot_dimension_numbers<[1], [0], [0], [1], [0, 0, 1, 1], [], []>} : vector<16x256xbf16>, vector<256x32xbf16>, vector<16x32xf32> -> vector<16x32xf32>
    %c0_518 = arith.constant 0 : index
    %c0_519 = arith.constant 0 : index
    %435 = vector.load %arg9[%c0_518, %c0_519] : memref<1x32xf32, #tpu.memory_space<vmem>>, vector<1x32xf32>
    %436 = vector.broadcast %435 : vector<1x32xf32> to vector<16x32xf32>
    %437 = arith.addf %434, %436 : vector<16x32xf32>
    %cst_520 = arith.constant 0.000000e+00 : f32
    %438 = vector.broadcast %cst_520 : f32 to vector<16x32xf32>
    %439 = arith.maximumf %437, %438 : vector<16x32xf32>
    %440 = vector.extract_strided_slice %439 {offsets = [0, 0], sizes = [4, 32], strides = [1, 1]} : vector<16x32xf32> to vector<4x32xf32>
    %cst_521 = arith.constant dense<0.000000e+00> : vector<32xf32>
    %441 = vector.multi_reduction <add>, %440, %cst_521 [0] : vector<4x32xf32> to vector<32xf32>
    %442 = vector.shape_cast %441 : vector<32xf32> to vector<1x32xf32>
    %cst_522 = arith.constant 4.000000e+00 : f32
    %443 = vector.broadcast %cst_522 : f32 to vector<1x32xf32>
    %444 = arith.divf %442, %443 : vector<1x32xf32>
    %cst_523 = arith.constant dense<0xFF800000> : vector<32xf32>
    %445 = vector.multi_reduction <maximumf>, %440, %cst_523 [0] : vector<4x32xf32> to vector<32xf32>
    %446 = vector.shape_cast %445 : vector<32xf32> to vector<1x32xf32>
    %447 = vector.extract_strided_slice %439 {offsets = [4, 0], sizes = [4, 32], strides = [1, 1]} : vector<16x32xf32> to vector<4x32xf32>
    %cst_524 = arith.constant dense<0.000000e+00> : vector<32xf32>
    %448 = vector.multi_reduction <add>, %447, %cst_524 [0] : vector<4x32xf32> to vector<32xf32>
    %449 = vector.shape_cast %448 : vector<32xf32> to vector<1x32xf32>
    %cst_525 = arith.constant 4.000000e+00 : f32
    %450 = vector.broadcast %cst_525 : f32 to vector<1x32xf32>
    %451 = arith.divf %449, %450 : vector<1x32xf32>
    %cst_526 = arith.constant dense<0xFF800000> : vector<32xf32>
    %452 = vector.multi_reduction <maximumf>, %447, %cst_526 [0] : vector<4x32xf32> to vector<32xf32>
    %453 = vector.shape_cast %452 : vector<32xf32> to vector<1x32xf32>
    %454 = vector.extract_strided_slice %439 {offsets = [8, 0], sizes = [4, 32], strides = [1, 1]} : vector<16x32xf32> to vector<4x32xf32>
    %cst_527 = arith.constant dense<0.000000e+00> : vector<32xf32>
    %455 = vector.multi_reduction <add>, %454, %cst_527 [0] : vector<4x32xf32> to vector<32xf32>
    %456 = vector.shape_cast %455 : vector<32xf32> to vector<1x32xf32>
    %cst_528 = arith.constant 4.000000e+00 : f32
    %457 = vector.broadcast %cst_528 : f32 to vector<1x32xf32>
    %458 = arith.divf %456, %457 : vector<1x32xf32>
    %cst_529 = arith.constant dense<0xFF800000> : vector<32xf32>
    %459 = vector.multi_reduction <maximumf>, %454, %cst_529 [0] : vector<4x32xf32> to vector<32xf32>
    %460 = vector.shape_cast %459 : vector<32xf32> to vector<1x32xf32>
    %461 = vector.extract_strided_slice %439 {offsets = [12, 0], sizes = [4, 32], strides = [1, 1]} : vector<16x32xf32> to vector<4x32xf32>
    %cst_530 = arith.constant dense<0.000000e+00> : vector<32xf32>
    %462 = vector.multi_reduction <add>, %461, %cst_530 [0] : vector<4x32xf32> to vector<32xf32>
    %463 = vector.shape_cast %462 : vector<32xf32> to vector<1x32xf32>
    %cst_531 = arith.constant 4.000000e+00 : f32
    %464 = vector.broadcast %cst_531 : f32 to vector<1x32xf32>
    %465 = arith.divf %463, %464 : vector<1x32xf32>
    %cst_532 = arith.constant dense<0xFF800000> : vector<32xf32>
    %466 = vector.multi_reduction <maximumf>, %461, %cst_532 [0] : vector<4x32xf32> to vector<32xf32>
    %467 = vector.shape_cast %466 : vector<32xf32> to vector<1x32xf32>
    %468 = tpu.concatenate %444, %451, %458, %465 in 0 : vector<1x32xf32>, vector<1x32xf32>, vector<1x32xf32>, vector<1x32xf32> -> vector<4x32xf32>
    %469 = tpu.concatenate %446, %453, %460, %467 in 0 : vector<1x32xf32>, vector<1x32xf32>, vector<1x32xf32>, vector<1x32xf32> -> vector<4x32xf32>
    %470 = tpu.concatenate %468, %469 in 1 : vector<4x32xf32>, vector<4x32xf32> -> vector<4x64xf32>
    %471 = arith.truncf %470 : vector<4x64xf32> to vector<4x64xbf16>
    %c0_533 = arith.constant 0 : index
    %c0_534 = arith.constant 0 : index
    %472 = vector.load %arg10[%c0_533, %c0_534] : memref<64x32xbf16, #tpu.memory_space<vmem>>, vector<64x32xbf16>
    %cst_535 = arith.constant dense<0.000000e+00> : vector<4x32xf32>
    %473 = tpu.matmul %471, %472, %cst_535 {dimension_numbers = #tpu.dot_dimension_numbers<[1], [0], [0], [1], [0, 0, 1, 1], [], []>} : vector<4x64xbf16>, vector<64x32xbf16>, vector<4x32xf32> -> vector<4x32xf32>
    %c0_536 = arith.constant 0 : index
    %c0_537 = arith.constant 0 : index
    %474 = vector.load %arg11[%c0_536, %c0_537] : memref<1x32xf32, #tpu.memory_space<vmem>>, vector<1x32xf32>
    %475 = vector.broadcast %474 : vector<1x32xf32> to vector<4x32xf32>
    %476 = arith.addf %473, %475 : vector<4x32xf32>
    %cst_538 = arith.constant 0.000000e+00 : f32
    %477 = vector.broadcast %cst_538 : f32 to vector<4x32xf32>
    %478 = arith.maximumf %476, %477 : vector<4x32xf32>
    %479 = arith.truncf %478 : vector<4x32xf32> to vector<4x32xbf16>
    %c0_539 = arith.constant 0 : index
    %c0_540 = arith.constant 0 : index
    %480 = vector.load %arg12[%c0_539, %c0_540] : memref<32x10xbf16, #tpu.memory_space<vmem>>, vector<32x10xbf16>
    %cst_541 = arith.constant dense<0.000000e+00> : vector<4x10xf32>
    %481 = tpu.matmul %479, %480, %cst_541 {dimension_numbers = #tpu.dot_dimension_numbers<[1], [0], [0], [1], [0, 0, 1, 1], [], []>} : vector<4x32xbf16>, vector<32x10xbf16>, vector<4x10xf32> -> vector<4x10xf32>
    %c0_542 = arith.constant 0 : index
    %c0_543 = arith.constant 0 : index
    %482 = vector.load %arg13[%c0_542, %c0_543] : memref<1x10xf32, #tpu.memory_space<vmem>>, vector<1x10xf32>
    %483 = vector.broadcast %482 : vector<1x10xf32> to vector<4x10xf32>
    %484 = arith.addf %481, %483 : vector<4x10xf32>
    %485 = vector.shape_cast %484 : vector<4x10xf32> to vector<1x4x10xf32>
    %c0_544 = arith.constant 0 : index
    %c0_545 = arith.constant 0 : index
    %c0_546 = arith.constant 0 : index
    %486 = vector.load %arg14[%c0_544, %c0_545, %c0_546] : memref<1x4x10xf32, #tpu.memory_space<vmem>>, vector<1x4x10xf32>
    tpu.vector_store %arg14[%c0_544, %c0_545, %c0_546], %485 {strides = array<i32>} : memref<1x4x10xf32, #tpu.memory_space<vmem>>, vector<1x4x10xf32>,
    return
  }
  func.func @transform_0(%arg0: i32) -> (i32, i32, i32) {
    %c0_i32 = arith.constant 0 : i32
    %c0_i32_0 = arith.constant 0 : i32
    %c0_i32_1 = arith.constant 0 : i32
    return %arg0, %c0_i32, %c0_i32_0 : i32, i32, i32
  }
  func.func @transform_1(%arg0: i32) -> (i32, i32) {
    %c0_i32 = arith.constant 0 : i32
    %c0_i32_0 = arith.constant 0 : i32
    %c0_i32_1 = arith.constant 0 : i32
    return %c0_i32, %c0_i32_0 : i32, i32
  }
  func.func @transform_2(%arg0: i32) -> (i32, i32) {
    %c0_i32 = arith.constant 0 : i32
    %c0_i32_0 = arith.constant 0 : i32
    %c0_i32_1 = arith.constant 0 : i32
    return %c0_i32, %c0_i32_0 : i32, i32
  }
  func.func @transform_3(%arg0: i32) -> (i32, i32) {
    %c0_i32 = arith.constant 0 : i32
    %c0_i32_0 = arith.constant 0 : i32
    %c0_i32_1 = arith.constant 0 : i32
    return %c0_i32, %c0_i32_0 : i32, i32
  }
  func.func @transform_4(%arg0: i32) -> (i32, i32) {
    %c0_i32 = arith.constant 0 : i32
    %c0_i32_0 = arith.constant 0 : i32
    %c0_i32_1 = arith.constant 0 : i32
    return %c0_i32, %c0_i32_0 : i32, i32
  }
  func.func @transform_5(%arg0: i32) -> (i32, i32) {
    %c0_i32 = arith.constant 0 : i32
    %c0_i32_0 = arith.constant 0 : i32
    %c0_i32_1 = arith.constant 0 : i32
    return %c0_i32, %c0_i32_0 : i32, i32
  }
  func.func @transform_6(%arg0: i32) -> (i32, i32) {
    %c0_i32 = arith.constant 0 : i32
    %c0_i32_0 = arith.constant 0 : i32
    %c0_i32_1 = arith.constant 0 : i32
    return %c0_i32, %c0_i32_0 : i32, i32
  }
  func.func @transform_7(%arg0: i32) -> (i32, i32) {
    %c0_i32 = arith.constant 0 : i32
    %c0_i32_0 = arith.constant 0 : i32
    %c0_i32_1 = arith.constant 0 : i32
    return %c0_i32, %c0_i32_0 : i32, i32
  }
  func.func @transform_8(%arg0: i32) -> (i32, i32) {
    %c0_i32 = arith.constant 0 : i32
    %c0_i32_0 = arith.constant 0 : i32
    %c0_i32_1 = arith.constant 0 : i32
    return %c0_i32, %c0_i32_0 : i32, i32
  }
  func.func @transform_9(%arg0: i32) -> (i32, i32) {
    %c0_i32 = arith.constant 0 : i32
    %c0_i32_0 = arith.constant 0 : i32
    %c0_i32_1 = arith.constant 0 : i32
    return %c0_i32, %c0_i32_0 : i32, i32
  }
  func.func @transform_10(%arg0: i32) -> (i32, i32) {
    %c0_i32 = arith.constant 0 : i32
    %c0_i32_0 = arith.constant 0 : i32
    %c0_i32_1 = arith.constant 0 : i32
    return %c0_i32, %c0_i32_0 : i32, i32
  }
  func.func @transform_11(%arg0: i32) -> (i32, i32) {
    %c0_i32 = arith.constant 0 : i32
    %c0_i32_0 = arith.constant 0 : i32
    %c0_i32_1 = arith.constant 0 : i32
    return %c0_i32, %c0_i32_0 : i32, i32
  }
  func.func @transform_12(%arg0: i32) -> (i32, i32) {
    %c0_i32 = arith.constant 0 : i32
    %c0_i32_0 = arith.constant 0 : i32
    %c0_i32_1 = arith.constant 0 : i32
    return %c0_i32, %c0_i32_0 : i32, i32
  }
  func.func @transform_13(%arg0: i32) -> (i32, i32, i32) {
    %c0_i32 = arith.constant 0 : i32
    %c0_i32_0 = arith.constant 0 : i32
    %c0_i32_1 = arith.constant 0 : i32
    return %arg0, %c0_i32, %c0_i32_0 : i32, i32, i32
  }
}

</mosaic_0001>

<bundles_post_ra>
// kernel: tpu_custom_call.1
= control target key start
LH: loop header
LB: loop body
LE: loop exit
PB: predicated region body
PF: predicated region fallthrough
CT: control target
= control target key end

     0   :  { %s4051_s0 = inlined_call_operand.vmem [shape: bf16[8,16,32], index: 0, kind: input, shape index: {}]   ;;  %s4052_s1 = inlined_call_operand.vmem [shape: bf16[256,32], index: 1, kind: input, shape index: {}]   ;;  %s4053_s2 = inlined_call_operand.vmem [shape: f32[1,32], index: 2, kind: input, shape index: {}]   ;;  %s4054_s3 = inlined_call_operand.vmem [shape: bf16[256,32], index: 3, kind: input, shape index: {}]   ;;  %s4055_s4 = inlined_call_operand.vmem [shape: f32[1,32], index: 4, kind: input, shape index: {}]   ;;  %s4056_s5 = inlined_call_operand.vmem [shape: bf16[512,32], index: 5, kind: input, shape index: {}]   ;;  %s4057_s6 = inlined_call_operand.vmem [shape: f32[1,32], index: 6, kind: input, shape index: {}]   ;;  %s4058_s7 = inlined_call_operand.vmem [shape: bf16[256,32], index: 7, kind: input, shape index: {}]   ;;  %s4059_s8 = inlined_call_operand.vmem [shape: f32[1,32], index: 8, kind: input, shape index: {}]   ;;  %s4060_s9 = inlined_call_operand.vmem [shape: bf16[64,32], index: 9, kind: input, shape index: {}]   ;;  %s4061_s10 = inlined_call_operand.vmem [shape: f32[1,32], index: 10, kind: input, shape index: {}]   ;;  %s4062_s11 = inlined_call_operand.vmem [shape: bf16[32,10], index: 11, kind: input, shape index: {}]   ;;  %s4063_s12 = inlined_call_operand.vmem [shape: f32[1,10], index: 12, kind: input, shape index: {}]   ;;  %s4064_s13 = inlined_call_operand.hbm [shape: f32[2,4,10], index: 13, kind: output, shape index: {}]  }
   0x1   :  { %4075 = sst [smem:[#allocation13_spill]] %s4051_s0 }
   0x2   :  { %18 = vsyncpa [#allocation7], 0 }
   0x3   :  { %20 = vsyncpa [#allocation7 + $0x1], 0  ;;  %s3332_s25 = smov 0   ;;  %s3334_s26 = smov 0  }
   0x4   :  { %s3336_s27 = smov 0   ;;  %s3338_s28 = smov 0  }
   0x5 LB: > { %4076 = sst [smem:[#allocation9_spill]] %s3249_s27  ;;  %s3353_s29 = sadd.s32 4294967295, %s3253_s28   ;;  %s3253_s28 = sphi %s3338_s28, %s4088_s28   ;;  %s3249_s27 = sphi %s3336_s27, %s4090_s27   ;;  %s3245_s26 = sphi %s3334_s26, %s4092_s26   ;;  %s3241_s25 = sphi %s3332_s25, %s4091_s25  }
   0x6   : > { %s2697_s30 = sadd.s32 4294967294, %s3253_s28   ;;  %s3357_s14 = sadd.s32 1, %s3253_s28  }
   0x7   : > { %4077 = sst [smem:[#allocation10_spill]] %s3357_s14  ;;  %s311_s15 = sadd.s32 1, %s3249_s27 }
   0x8   : > { %s308_s16 = ssub.s32 %s3253_s28, %s3357_s14  ;;  %p321_p0 = scmp.ne.s32.totalorder %s3249_s27, %s3245_s26 }
   0x9   : > { %p309_p1 = scmp.eq.s32.totalorder %s308_s16, 0  ;;  %p322_p2 = scmp.eq.s32.totalorder %s3353_s29, 1 }
   0xa   : > { %p327_p3 = scmp.ne.s32.totalorder %s3245_s26, %s3241_s25  ;;  %p328_p4 = scmp.eq.s32.totalorder %s2697_s30, 1 }
   0xb   : > { %s3368_s17 = scalar_select %p309_p1, %s3249_s27, %s311_s15  }
   0xc   : > { %p3370_p5 = por %p322_p2, %p321_p0  ;;  %p3374_p6 = por %p328_p4, %p327_p3 }
   0xd   : > { %4078 = sst [smem:[#allocation11_spill]] %s3368_s17  ;;  %p2700_p7 = scmp.ge.s32.totalorder %s3253_s28, 1 }
   0xe   : > { %s4080_s19 = scalar_select %p3374_p6, 1, 0 }
   0xf   : > { %p392_p8 = scmp.lt.s32.totalorder %s3253_s28, 3 }
  0x10   : > { %4081 = sst [smem:[#allocation12_spill]] %s4080_s19 }
  0x11   : > { %p393_p9 = pnand %p2700_p7, %p392_p8 }
  0x12   : > { %s2702_s20 = sshll.u32 (!%p393_p9), %s3353_s29, 2  ;;  %vm445_vm0 = vcmask (!%p393_p9), 261120   ;;  %v3255_v0 = vmov (!%p393_p9), 0.0   ;;  %v3105_v1 = vld [vmem:[%s4052_s1 + $0x40] sm:$0xff] (!%p393_p9)   ;;  %v3107_v3 = vld [vmem:[%s4052_s1 + $0x48] sm:$0xff] (!%p393_p9)   ;;  %v3109_v5 = vld [vmem:[%s4052_s1 + $0x50] sm:$0xff] (!%p393_p9)  }
  0x13   : > { %396 = sbr.rel (%p393_p9) target bundleno = 2104 (0x838), region = 72  ;;  %p3381_p10 = scmp.lt.s32.totalorder (!%p393_p9), %s2702_s20, 7  ;;  %446 = vst.msk [vmem:[#allocation2] sm:$0xff] (!%p393_p9), %vm445_vm0, %v3255_v0  ;;  %447 = vst.msk [vmem:[#allocation2 + $0x8] sm:$0xff] (!%p393_p9), %vm445_vm0, %v3255_v0  ;;  %v3106_v2 = vld [vmem:[%s4052_s1] sm:$0xff] (!%p393_p9)   ;;  %2854 = vmatprep.subr.bf16.mxu0 (!%p393_p9), %v3105_v1  ;;  %v3108_v4 = vld [vmem:[%s4052_s1 + $0x8] sm:$0xff] (!%p393_p9)  }
  0x14   : > { %448 = vst.msk [vmem:[#allocation2 + $0x10] sm:$0xff] (!%p393_p9), %vm445_vm0, %v3255_v0  ;;  %449 = vst.msk [vmem:[#allocation2 + $0x18] sm:$0xff] (!%p393_p9), %vm445_vm0, %v3255_v0  ;;  %2855 = vmatpush3.bf16.msra.mxu0 (!%p393_p9), %v3106_v2  ;;  %s4083_s0 = sld [smem:[#allocation13_spill]] (!%p393_p9)  ;;  %v3110_v14 = vld [vmem:[%s4052_s1 + $0x10] sm:$0xff] (!%p393_p9)   ;;  %v3111_v19 = vld [vmem:[%s4052_s1 + $0x58] sm:$0xff] (!%p393_p9)   ;;  %vm469_vm1 = vcmask (!%p393_p9), 1048320  }
  0x15   : > { %450 = vst.msk [vmem:[#allocation2 + $0x20] sm:$0xff] (!%p393_p9), %vm445_vm0, %v3255_v0  ;;  %451 = vst.msk [vmem:[#allocation2 + $0x28] sm:$0xff] (!%p393_p9), %vm445_vm0, %v3255_v0  ;;  %2856 = vmatprep.subr.bf16.mxu0 (!%p393_p9), %v3107_v3  ;;  %v3112_v20 = vld [vmem:[%s4052_s1 + $0x18] sm:$0xff] (!%p393_p9)   ;;  %v3256_v21 = vmov (!%p393_p9), 0   ;;  %vm474_vm2 = vcmask (!%p393_p9), 1048064   ;;  %v3113_v22 = vld [vmem:[%s4052_s1 + $0x60] sm:$0xff] (!%p393_p9)  }
  0x16   : > { %452 = vst.msk [vmem:[#allocation2 + $0x30] sm:$0xff] (!%p393_p9), %vm445_vm0, %v3255_v0  ;;  %453 = vst.msk [vmem:[#allocation2 + $0x38] sm:$0xff] (!%p393_p9), %vm445_vm0, %v3255_v0  ;;  %v3114_v23 = vld [vmem:[%s4052_s1 + $0x20] sm:$0xff] (!%p393_p9)   ;;  %v3115_v24 = vld [vmem:[%s4052_s1 + $0x68] sm:$0xff] (!%p393_p9)   ;;  %s4073_s17 = smov (!%p393_p9), 32   ;;  %s4071_s21 = smov (!%p393_p9), 64  }
  0x17   : > { %454 = vst.msk [vmem:[#allocation2 + $0x40] sm:$0xff] (!%p393_p9), %vm445_vm0, %v3255_v0  ;;  %455 = vst.msk [vmem:[#allocation2 + $0x48] sm:$0xff] (!%p393_p9), %vm445_vm0, %v3255_v0  ;;  %v3116_v36 = vld [vmem:[%s4052_s1 + $0x28] sm:$0xff] (!%p393_p9)   ;;  %v3117_v40 = vld [vmem:[%s4052_s1 + $0x70] sm:$0xff] (!%p393_p9)   ;;  %s4069_s24 = smov (!%p393_p9), 96   ;;  %vm515_vm3 = vcmask (!%p393_p9), 523520  }
  0x18   : > { %456 = vst.msk [vmem:[#allocation2 + $0x50] sm:$0xff] (!%p393_p9), %vm445_vm0, %v3255_v0  ;;  %2857 = vmatpush3.bf16.msra.mxu0 (!%p393_p9), %v3108_v4  ;;  %v3118_v44 = vld [vmem:[%s4052_s1 + $0x30] sm:$0xff] (!%p393_p9)   ;;  %vm524_vm4 = vcmask (!%p393_p9), 785920   ;;  %s4084_s30 = smov (!%p393_p9), 64   ;;  %s4085_s27 = smov (!%p393_p9), 96   ;;  %vm457_vm5 = vcmask (!%p393_p9), 523264  }
  0x19   : > { %2858 = vmatprep.subr.bf16.mxu0 (!%p393_p9), %v3109_v5  ;;  %470 = vst.msk [vmem:[#allocation4 + $0x8] sm:$0xff] (!%p393_p9), %vm469_vm1, %v3256_v21  ;;  %471 = vst.msk [vmem:[#allocation4 + $0x18] sm:$0xff] (!%p393_p9), %vm469_vm1, %v3256_v21  ;;  %vm1396_vm6 = vcmask (!%p393_p9), 519168   ;;  %vm1441_vm7 = vcmask (!%p393_p9), 523268   ;;  %vm1405_vm8 = vcmask (!%p393_p9), 1043968   ;;  %vm1451_vm9 = vcmask (!%p393_p9), 1048068  }
  0x1a   : > { %s4094_s20 = smov (!%p3381_p10, %s2702_s20), 7  ;;  %472 = vst.msk [vmem:[#allocation4 + $0x28] sm:$0xff] %vm469_vm1, %v3256_v21  ;;  %473 = vst.msk [vmem:[#allocation4 + $0x38] sm:$0xff] %vm469_vm1, %v3256_v21  ;;  %vm1970_vm10 = vcmask 254976   ;;  %vm2025_vm11 = vcmask 257026   ;;  %vm2088_vm12 = vcmask 259076  }
  0x1b   : > { %s2815_s14 = sshll.u32 %s4094_s20, 3  ;;  %475 = vst.msk [vmem:[#allocation5 + $0x18] sm:$0xff] %vm474_vm2, %v3256_v21  ;;  %476 = vst.msk [vmem:[#allocation5 + $0x38] sm:$0xff] %vm474_vm2, %v3256_v21  ;;  %vm2151_vm13 = vcmask 261126   ;;  %vm1979_vm14 = vcmask 517376   ;;  %vm1988_vm15 = vcmask 779776  }
  0x1c   : > { %s3427_s19 = scalar_lea.vmem %s4083_s0, %s2815_s14  ;;  %2859 = vmatpush3.bf16.msra.mxu0 %v3110_v14  ;;  %v3120_v14 = vld [vmem:[%s4052_s1 + $0x38] sm:$0xff]   ;;  %458 = vst.msk [vmem:[#allocation3] sm:$0xff] %vm457_vm5, %v3255_v0  ;;  %459 = vst.msk [vmem:[#allocation3 + $0x8] sm:$0xff] %vm457_vm5, %v3255_v0  ;;  %vm1997_vm2 = vcmask 1042176   ;;  %s434_s15 = sand.u32 1, %s3245_s26  }
  0x1d   : > { %v2817_v6 = vld [vmem:[%s3427_s19] sm:$0xff]   ;;  %v2848_v7 = vld [vmem:[%s3427_s19 + $0x8] sm:$0xff]   ;;  %v3432_v8 = vld [vmem:[%s3427_s19 + $0x10] sm:$0xff]   ;;  %2860 = vmatprep.subr.bf16.mxu0 %v3111_v19  ;;  %460 = vst.msk [vmem:[#allocation3 + $0x10] sm:$0xff] %vm457_vm5, %v3255_v0  ;;  %s2701_s16 = sshll.u32 %s434_s15, 2  ;;  %s2812_s23 = sshll.u32 %s3353_s29, 6 }
  0x1e   : > { %v2818_v9 = vunpack.c.l.bf16 %v2817_v6  ;;  %v2819_v10 = vunpack.c.h.bf16 %v2817_v6  ;;  %v2822_v11 = vunpack.c.l.bf16 %v2848_v7  ;;  %v2823_v12 = vunpack.c.h.bf16 %v2848_v7  ;;  %v3435_v13 = vld [vmem:[%s3427_s19 + $0x18] sm:$0xff]   ;;  %461 = vst.msk [vmem:[#allocation3 + $0x18] sm:$0xff] %vm457_vm5, %v3255_v0  ;;  %462 = vst.msk [vmem:[#allocation3 + $0x20] sm:$0xff] %vm457_vm5, %v3255_v0  ;;  %s2625_s29 = scalar_lea.sflag [#allocation7], %s434_s15 }
  0x1f   : > { %v2826_v15 = vunpack.c.l.bf16 %v3432_v8  ;;  %v2827_v16 = vunpack.c.h.bf16 %v3432_v8  ;;  %v2830_v17 = vunpack.c.l.bf16 %v3435_v13  ;;  %v2831_v18 = vunpack.c.h.bf16 %v3435_v13  ;;  %463 = vst.msk [vmem:[#allocation3 + $0x28] sm:$0xff] %vm457_vm5, %v3255_v0  ;;  %464 = vst.msk [vmem:[#allocation3 + $0x30] sm:$0xff] %vm457_vm5, %v3255_v0 }
  0x20   : > { %481 = vst.msk [vmem:[#allocation2 + $0x3] sm:$0xff] %vm445_vm0, %v2818_v9  ;;  %482 = vst.msk [vmem:[#allocation2 + $0xb] sm:$0xff] %vm445_vm0, %v2819_v10  ;;  %2861 = vmatpush3.bf16.msra.mxu0 %v3112_v20 }
  0x21   : > { %488 = vst.msk [vmem:[#allocation2 + $0x19] sm:$0xff] %vm445_vm0, %v2822_v11  ;;  %489 = vst.msk [vmem:[#allocation2 + $0x21] sm:$0xff] %vm445_vm0, %v2823_v12  ;;  %2862 = vmatprep.subr.bf16.mxu0 %v3113_v22  ;;  %v3119_v12 = vld [vmem:[%s4052_s1 + $0x78] sm:$0xff]  }
  0x22   : > { %495 = vst.msk [vmem:[#allocation2 + $0x2f] sm:$0xff] %vm445_vm0, %v2826_v15  ;;  %496 = vst.msk [vmem:[#allocation2 + $0x37] sm:$0xff] %vm445_vm0, %v2827_v16 }
  0x23   : > { %502 = vst.msk [vmem:[#allocation2 + $0x45] sm:$0xff] %vm445_vm0, %v2830_v17  ;;  %503 = vst.msk [vmem:[#allocation2 + $0x4d] sm:$0xff] %vm445_vm0, %v2831_v18 }
  0x24   : > { %2863 = vmatpush3.bf16.msra.mxu0 %v3114_v23  ;;  %465 = vst.msk [vmem:[#allocation3 + $0x38] sm:$0xff] %vm457_vm5, %v3255_v0  ;;  %466 = vst.msk [vmem:[#allocation3 + $0x40] sm:$0xff] %vm457_vm5, %v3255_v0 }
  0x25   : > { %2864 = vmatprep.subr.bf16.mxu0 %v3115_v24  ;;  %467 = vst.msk [vmem:[#allocation3 + $0x48] sm:$0xff] %vm457_vm5, %v3255_v0  ;;  %468 = vst.msk [vmem:[#allocation3 + $0x50] sm:$0xff] %vm457_vm5, %v3255_v0 }
  0x27   : > { %v508_v25 = vld [vmem:[#allocation2 + $0x1] sm:$0xff]  ;;  %v509_v26 = vld [vmem:[#allocation2 + $0x9] sm:$0xff] }
  0x28   : > { %v517_v27 = vld [vmem:[#allocation2 + $0x2] sm:$0xff]  ;;  %v510_v28 = vpack.c.bf16 %v509_v26, %v508_v25  ;;  %v518_v29 = vld [vmem:[#allocation2 + $0xa] sm:$0xff]  ;;  %v558_v41 = vld [vmem:[#allocation2 + $0x17] sm:$0xff]  ;;  %2865 = vmatpush3.bf16.msra.mxu0 %v3116_v36 }
  0x29   : > { %v538_v30 = vld [vmem:[#allocation2 + $0x5] sm:$0xff]  ;;  %v539_v31 = vld [vmem:[#allocation2 + $0xd] sm:$0xff]  ;;  %v519_v32 = vpack.c.bf16 %v518_v29, %v517_v27  ;;  %v586_v46 = vld [vmem:[#allocation2 + $0x1b] sm:$0xff]  ;;  %2866 = vmatprep.subr.bf16.mxu0 %v3117_v40 }
  0x2a   : > { %v546_v33 = vld [vmem:[#allocation2 + $0x6] sm:$0xff]  ;;  %v547_v34 = vld [vmem:[#allocation2 + $0xe] sm:$0xff]  ;;  %512 = vrot.lane.b32.xlu0 %v510_v28, %s4073_s17  ;;  %v540_v35 = vpack.c.bf16 %v539_v31, %v538_v30  ;;  %v566_v48 = vld [vmem:[#allocation2 + $0x18] sm:$0xff] }
  0x2b   : > { %521 = vrot.lane.b32.xlu1 %v519_v32, %s4071_s21  ;;  %v548_v37 = vpack.c.bf16 %v547_v34, %v546_v33  ;;  %v526_v38 = vld [vmem:[#allocation2 + $0x3] sm:$0xff]  ;;  %v527_v39 = vld [vmem:[#allocation2 + $0xb] sm:$0xff]  ;;  %v574_v54 = vld [vmem:[#allocation2 + $0x19] sm:$0xff] }
  0x2c   : > { %v559_v42 = vld [vmem:[#allocation2 + $0x1f] sm:$0xff]  ;;  %v528_v43 = vpack.c.bf16 %v527_v39, %v526_v38  ;;  %2867 = vmatpush3.bf16.msra.mxu0 %v3118_v44  ;;  %v505_v57 = vld [vmem:[#allocation2 + $0x8] sm:$0xff]  ;;  %v607_v59 = vld [vmem:[#allocation2 + $0x35] sm:$0xff] }
  0x2d   : > { %v560_v45 = vpack.c.bf16 %v559_v42, %v558_v41  ;;  %v587_v47 = vld [vmem:[#allocation2 + $0x23] sm:$0xff]  ;;  %v606_v58 = vld [vmem:[#allocation2 + $0x2d] sm:$0xff]  ;;  %v554_v63 = vld [vmem:[#allocation2 + $0x16] sm:$0xff]  ;;  %2868 = vmatprep.subr.bf16.mxu0 %v3119_v12 }
  0x2e   : > { %542 = vrot.lane.b32.xlu0 %v540_v35, %s4073_s17  ;;  %v567_v49 = vld [vmem:[#allocation2 + $0x20] sm:$0xff]  ;;  %v588_v50 = vpack.c.bf16 %v587_v47, %v586_v46  ;;  %v535_v62 = vld [vmem:[#allocation2 + $0xc] sm:$0xff]  ;;  %v603_v20 = vld [vmem:[#allocation2 + $0x34] sm:$0xff]  ;;  %v608_v28 = vpack.c.bf16 %v607_v59, %v606_v58 }
  0x2f   : > { %550 = vrot.lane.b32.xlu1 %v548_v37, %s4071_s21  ;;  %v568_v51 = vpack.c.bf16 %v567_v49, %v566_v48  ;;  %v594_v52 = vld [vmem:[#allocation2 + $0x1c] sm:$0xff]  ;;  %v595_v53 = vld [vmem:[#allocation2 + $0x24] sm:$0xff]  ;;  %v634_v2 = vld [vmem:[#allocation2 + $0x31] sm:$0xff] }
  0x30   : > { %v575_v55 = vld [vmem:[#allocation2 + $0x21] sm:$0xff]  ;;  %v596_v1 = vpack.c.bf16 %v595_v53, %v594_v52  ;;  %v635_v3 = vld [vmem:[#allocation2 + $0x39] sm:$0xff]  ;;  %v602_v19 = vld [vmem:[#allocation2 + $0x2c] sm:$0xff]  ;;  %2869 = vmatpush3.bf16.msra.mxu0 %v3120_v14 }
  0x31   : > { %v504_v56 = vld [vmem:[#allocation2] sm:$0xff]  ;;  %v576_v9 = vpack.c.bf16 %v575_v55, %v574_v54  ;;  %v630_v21 = vld [vmem:[#allocation2 + $0x30] sm:$0xff]  ;;  %v604_v24 = vpack.c.bf16 %v603_v20, %v602_v19  ;;  %v631_v25 = vld [vmem:[#allocation2 + $0x38] sm:$0xff]  ;;  %v636_v35 = vpack.c.bf16 %v635_v3, %v634_v2 }
  0x32   : > { %530 = vrot.lane.b32.xlu0 %v528_v43, %s4069_s24  ;;  %v506_v60 = vpack.c.bf16 %v505_v57, %v504_v56  ;;  %v534_v61 = vld [vmem:[#allocation2 + $0x4] sm:$0xff]  ;;  %v582_v6 = vld [vmem:[#allocation2 + $0x1a] sm:$0xff]  ;;  %v614_v22 = vld [vmem:[#allocation2 + $0x2e] sm:$0xff]  ;;  %v632_v31 = vpack.c.bf16 %v631_v25, %v630_v21 }
  0x33   : > { %562 = vrot.lane.b32.xlu1 %v560_v45, %s4073_s17  ;;  %v536_v4 = vpack.c.bf16 %v535_v62, %v534_v61  ;;  %v555_v5 = vld [vmem:[#allocation2 + $0x1e] sm:$0xff]  ;;  %v615_v23 = vld [vmem:[#allocation2 + $0x36] sm:$0xff]  ;;  %v651_v27 = vld [vmem:[#allocation2 + $0x4a] sm:$0xff]  ;;  %605 = vst.msk [vmem:[#allocation4 + $0x20] sm:$0xff] %vm445_vm0, %v604_v24 }
  0x34   : > { %v583_v7 = vld [vmem:[#allocation2 + $0x22] sm:$0xff]  ;;  %507 = vst.msk [vmem:[#allocation4] sm:$0xff] %vm445_vm0, %v506_v60  ;;  %v556_v10 = vpack.c.bf16 %v555_v5, %v554_v63  ;;  %v642_v29 = vld [vmem:[#allocation2 + $0x32] sm:$0xff]  ;;  %v643_v30 = vld [vmem:[#allocation2 + $0x3a] sm:$0xff]  ;;  %v616_v39 = vpack.c.bf16 %v615_v23, %v614_v22 }
  0x35   : > { %v584_v11 = vpack.c.bf16 %v583_v7, %v582_v6  ;;  %537 = vst.msk [vmem:[#allocation4 + $0x8] sm:$0xff] %vm445_vm0, %v536_v4  ;;  %v650_v26 = vld [vmem:[#allocation2 + $0x42] sm:$0xff]  ;;  %v679_v34 = vld [vmem:[#allocation2 + $0x4e] sm:$0xff]  ;;  %633 = vst.msk [vmem:[#allocation4 + $0x28] sm:$0xff] %vm445_vm0, %v632_v31  ;;  %v644_v42 = vpack.c.bf16 %v643_v30, %v642_v29 }
  0x36   : > { %590 = vrot.lane.b32.xlu0 %v588_v50, %s4073_s17  ;;  %557 = vst.msk [vmem:[#allocation4 + $0x10] sm:$0xff] %vm445_vm0, %v556_v10  ;;  %v652_v32 = vpack.c.bf16 %v651_v27, %v650_v26  ;;  %v678_v33 = vld [vmem:[#allocation2 + $0x46] sm:$0xff]  ;;  %v622_v37 = vld [vmem:[#allocation2 + $0x2f] sm:$0xff]  ;;  %v623_v38 = vld [vmem:[#allocation2 + $0x37] sm:$0xff] }
  0x37   : > { %570 = vrot.lane.b32.xlu1 %v568_v51, %s4071_s21  ;;  %585 = vst.msk [vmem:[#allocation4 + $0x18] sm:$0xff] %vm445_vm0, %v584_v11  ;;  %v680_v36 = vpack.c.bf16 %v679_v34, %v678_v33  ;;  %v654_v40 = vld [vmem:[#allocation2 + $0x43] sm:$0xff]  ;;  %v655_v41 = vld [vmem:[#allocation2 + $0x4b] sm:$0xff]  ;;  %v624_v45 = vpack.c.bf16 %v623_v38, %v622_v37  ;;  %v3127_v34 = vld [vmem:[%s4054_s3 + $0x58] sm:$0xff]  }
  0x38   : > { %653 = vst.msk [vmem:[#allocation4 + $0x30] sm:$0xff] %vm445_vm0, %v652_v32  ;;  %v682_v43 = vld [vmem:[#allocation2 + $0x47] sm:$0xff]  ;;  %v683_v44 = vld [vmem:[#allocation2 + $0x4f] sm:$0xff]  ;;  %v656_v48 = vpack.c.bf16 %v655_v41, %v654_v40  ;;  %v3569_v37 = vld [vmem:[%s4053_s2] ss:$0 sm:$0xff] }
  0x39   : > { %681 = vst.msk [vmem:[#allocation4 + $0x38] sm:$0xff] %vm445_vm0, %v680_v36  ;;  %v662_v46 = vld [vmem:[#allocation2 + $0x44] sm:$0xff]  ;;  %v663_v47 = vld [vmem:[#allocation2 + $0x4c] sm:$0xff]  ;;  %v684_v51 = vpack.c.bf16 %v683_v44, %v682_v43 }
  0x3a   : > { %598 = vrot.lane.b32.xlu0 %v596_v1, %s4071_s21  ;;  %v690_v49 = vld [vmem:[#allocation2 + $0x48] sm:$0xff]  ;;  %v691_v50 = vld [vmem:[#allocation2 + $0x50] sm:$0xff]  ;;  %v664_v54 = vpack.c.bf16 %v663_v47, %v662_v46  ;;  %v3122_v29 = vld [vmem:[%s4054_s3] sm:$0xff]  }
  0x3b   : > { %578 = vrot.lane.b32.xlu1 %v576_v9, %s4069_s24  ;;  %v670_v52 = vld [vmem:[#allocation2 + $0x45] sm:$0xff]  ;;  %v671_v53 = vld [vmem:[#allocation2 + $0x4d] sm:$0xff]  ;;  %v692_v55 = vpack.c.bf16 %v691_v50, %v690_v49 }
  0x3c   : > { %v672_v56 = vpack.c.bf16 %v671_v53, %v670_v52  ;;  %v3123_v30 = vld [vmem:[%s4054_s3 + $0x48] sm:$0xff]   ;;  %v3125_v32 = vld [vmem:[%s4054_s3 + $0x50] sm:$0xff]   ;;  %v3129_v46 = vld [vmem:[%s4054_s3 + $0x60] sm:$0xff]  }
  0x3d   : > { %v3124_v31 = vld [vmem:[%s4054_s3 + $0x8] sm:$0xff]   ;;  %v3126_v33 = vld [vmem:[%s4054_s3 + $0x10] sm:$0xff]   ;;  %v3130_v47 = vld [vmem:[%s4054_s3 + $0x20] sm:$0xff]  }
  0x3e   : > { %610 = vrot.lane.b32.xlu0 %v608_v28, %s4073_s17  ;;  %v3121_v28 = vld [vmem:[%s4054_s3 + $0x40] sm:$0xff]  }
  0x3f   : > { %638 = vrot.lane.b32.xlu1 %v636_v35, %s4073_s17  ;;  %2894 = vmatprep.subr.bf16.mxu1 %v3121_v28  ;;  %v3128_v35 = vld [vmem:[%s4054_s3 + $0x18] sm:$0xff]  }
  0x40   : > { %2895 = vmatpush3.bf16.msra.mxu1 %v3122_v29 }
  0x41   : > { %2896 = vmatprep.subr.bf16.mxu1 %v3123_v30  ;;  %v3136_v30 = vld [vmem:[%s4054_s3 + $0x38] sm:$0xff]  }
  0x42   : > { %618 = vrot.lane.b32.xlu0 %v616_v39, %s4071_s21 }
  0x43   : > { %646 = vrot.lane.b32.xlu1 %v644_v42, %s4071_s21 }
  0x44   : > { %2897 = vmatpush3.bf16.msra.mxu1 %v3124_v31 }
  0x45   : > { %2898 = vmatprep.subr.bf16.mxu1 %v3125_v32 }
  0x46   : > { %626 = vrot.lane.b32.xlu0 %v624_v45, %s4069_s24 }
  0x47   : > { %658 = vrot.lane.b32.xlu1 %v656_v48, %s4073_s17 }
  0x48   : > { %2899 = vmatpush3.bf16.msra.mxu1 %v3126_v33 }
  0x49   : > { %2900 = vmatprep.subr.bf16.mxu1 %v3127_v34 }
  0x4a   : > { %686 = vrot.lane.b32.xlu0 %v684_v51, %s4073_s17 }
  0x4b   : > { %666 = vrot.lane.b32.xlu1 %v664_v54, %s4071_s21  ;;  %v3131_v54 = vld [vmem:[%s4054_s3 + $0x68] sm:$0xff]  }
  0x4c   : > { %2901 = vmatpush3.bf16.msra.mxu1 %v3128_v35 }
  0x4d   : > { %2902 = vmatprep.subr.bf16.mxu1 %v3129_v46 }
  0x4e   : > { %694 = vrot.lane.b32.xlu0 %v692_v55, %s4071_s21 }
  0x4f   : > { %674 = vrot.lane.b32.xlu1 %v672_v56, %s4069_s24 }
  0x50   : > { %2903 = vmatpush3.bf16.msra.mxu1 %v3130_v47 }
  0x51   : > { %2904 = vmatprep.subr.bf16.mxu1 %v3131_v54 }
  0x9c   : > { %v513_v57 = vpop.permute.xlu0 %512 }
  0x9d   : > { %516 = vst.msk [vmem:[#allocation4] sm:$0xff] %vm515_vm3, %v513_v57  ;;  %v522_v58 = vpop.permute.xlu1 %521  ;;  %v3132_v57 = vld [vmem:[%s4054_s3 + $0x28] sm:$0xff]  }
  0x9e   : > { %525 = vst.msk [vmem:[#allocation4] sm:$0xff] %vm524_vm4, %v522_v58  ;;  %2905 = vmatpush3.bf16.msra.mxu1 %v3132_v57 }
  0xa0   : > { %v543_v59 = vpop.permute.xlu0 %542 }
  0xa1   : > { %545 = vst.msk [vmem:[#allocation4 + $0x8] sm:$0xff] %vm515_vm3, %v543_v59  ;;  %v551_v60 = vpop.permute.xlu1 %550 }
  0xa2   : > { %553 = vst.msk [vmem:[#allocation4 + $0x8] sm:$0xff] %vm524_vm4, %v551_v60 }
  0xa4   : > { %v531_v61 = vpop.permute.xlu0 %530 }
  0xa5   : > { %533 = vst.msk [vmem:[#allocation4] sm:$0xff] %vm469_vm1, %v531_v61  ;;  %v563_v62 = vpop.permute.xlu1 %562  ;;  %v3133_v61 = vld [vmem:[%s4054_s3 + $0x70] sm:$0xff]  }
  0xa6   : > { %565 = vst.msk [vmem:[#allocation4 + $0x10] sm:$0xff] %vm515_vm3, %v563_v62  ;;  %2906 = vmatprep.subr.bf16.mxu1 %v3133_v61 }
  0xa8   : > { %v591_v63 = vpop.permute.xlu0 %590 }
  0xa9   : > { %593 = vst.msk [vmem:[#allocation4 + $0x18] sm:$0xff] %vm515_vm3, %v591_v63  ;;  %v571_v1 = vpop.permute.xlu1 %570  ;;  %v699_v2 = vld [vmem:[#allocation4 + $0x8] sm:$0xff] }
  0xaa   : > { %573 = vst.msk [vmem:[#allocation4 + $0x10] sm:$0xff] %vm524_vm4, %v571_v1  ;;  %873 = vmatprep.mubr.bf16.mxu0 %v699_v2 }
  0xac   : > { %v599_v3 = vpop.permute.xlu0 %598  ;;  %v698_v4 = vld [vmem:[#allocation4] sm:$0xff] }
  0xad   : > { %601 = vst.msk [vmem:[#allocation4 + $0x18] sm:$0xff] %vm524_vm4, %v599_v3  ;;  %v579_v5 = vpop.permute.xlu1 %578  ;;  %874 = vmatmul.mubr.bf16.vlgmr.msra.gmra.mrb[0].mxu0 %v698_v4 }
  0xae   : > { %581 = vst.msk [vmem:[#allocation4 + $0x10] sm:$0xff] %vm469_vm1, %v579_v5 }
  0xb0   : > { %v611_v6 = vpop.permute.xlu0 %610 }
  0xb1   : > { %613 = vst.msk [vmem:[#allocation4 + $0x20] sm:$0xff] %vm515_vm3, %v611_v6  ;;  %v639_v7 = vpop.permute.xlu1 %638 }
  0xb2   : > { %641 = vst.msk [vmem:[#allocation4 + $0x28] sm:$0xff] %vm515_vm3, %v639_v7 }
  0xb4   : > { %v619_v9 = vpop.permute.xlu0 %618  ;;  %v701_v10 = vld [vmem:[#allocation4 + $0x18] sm:$0xff] }
  0xb5   : > { %621 = vst.msk [vmem:[#allocation4 + $0x20] sm:$0xff] %vm524_vm4, %v619_v9  ;;  %v647_v11 = vpop.permute.xlu1 %646  ;;  %881 = vmatprep.mubr.bf16.mxu0 %v701_v10  ;;  %v700_v12 = vld [vmem:[#allocation4 + $0x10] sm:$0xff] }
  0xb6   : > { %649 = vst.msk [vmem:[#allocation4 + $0x28] sm:$0xff] %vm524_vm4, %v647_v11  ;;  %882 = vmatmul.mubr.bf16.gmra.mrb[4].mxu0 %v700_v12 }
  0xb8   : > { %v627_v14 = vpop.permute.xlu0 %626 }
  0xb9   : > { %629 = vst.msk [vmem:[#allocation4 + $0x20] sm:$0xff] %vm469_vm1, %v627_v14  ;;  %v659_v19 = vpop.permute.xlu1 %658 }
  0xba   : > { %661 = vst.msk [vmem:[#allocation4 + $0x30] sm:$0xff] %vm515_vm3, %v659_v19 }
  0xbc   : > { %v687_v20 = vpop.permute.xlu0 %686 }
  0xbd   : > { %689 = vst.msk [vmem:[#allocation4 + $0x38] sm:$0xff] %vm515_vm3, %v687_v20  ;;  %v667_v21 = vpop.permute.xlu1 %666  ;;  %v703_v22 = vld [vmem:[#allocation4 + $0x28] sm:$0xff] }
  0xbe   : > { %669 = vst.msk [vmem:[#allocation4 + $0x30] sm:$0xff] %vm524_vm4, %v667_v21  ;;  %889 = vmatprep.mubr.bf16.mxu0 %v703_v22  ;;  %v3134_v21 = vld [vmem:[%s4054_s3 + $0x30] sm:$0xff]   ;;  %v3135_v22 = vld [vmem:[%s4054_s3 + $0x78] sm:$0xff]  }
  0xbf   : > { %2907 = vmatpush3.bf16.msra.mxu1 %v3134_v21 }
  0xc0   : > { %v695_v23 = vpop.permute.xlu0 %694  ;;  %v702_v24 = vld [vmem:[#allocation4 + $0x20] sm:$0xff]  ;;  %2908 = vmatprep.subr.bf16.mxu1 %v3135_v22 }
  0xc1   : > { %697 = vst.msk [vmem:[#allocation4 + $0x38] sm:$0xff] %vm524_vm4, %v695_v23  ;;  %v675_v25 = vpop.permute.xlu1 %674  ;;  %890 = vmatmul.mubr.bf16.gmra.mrb[8].mxu0 %v702_v24 }
  0xc2   : > { %677 = vst.msk [vmem:[#allocation4 + $0x30] sm:$0xff] %vm469_vm1, %v675_v25 }
  0xc3   : > { %2909 = vmatpush3.bf16.msra.mxu1 %v3136_v30 }
  0xc8   : > { %v705_v26 = vld [vmem:[#allocation4 + $0x38] sm:$0xff] }
  0xc9   : > { %897 = vmatprep.mubr.bf16.mxu0 %v705_v26  ;;  %v704_v27 = vld [vmem:[#allocation4 + $0x30] sm:$0xff] }
  0xca   : > { %898 = vmatmul.mubr.bf16.gmra.mrb[12].mxu0 %v704_v27 }
 0x180   : > { %v2870_v36 = vpop.f32.mrb[0].mxu0 }
 0x181   : > { %v2871_v38 = vpop.f32.mrb[1].mxu0 }
 0x182   : > { %v2872_v39 = vadd.f32 %v2871_v38, %v2870_v36  ;;  %v2873_v40 = vpop.f32.mrb[2].mxu0 }
 0x183   : > { %v2874_v41 = vpop.f32.mrb[3].mxu0 }
 0x184   : > { %v876_v42 = vadd.f32 %v2872_v39, %v3569_v37  ;;  %v2875_v43 = vadd.f32 %v2874_v41, %v2873_v40 }
 0x186   : > { %v906_v44 = vmax.f32 %v876_v42, 0.0  ;;  %v879_v45 = vadd.f32 %v2875_v43, %v3569_v37 }
 0x188   : > { %914 = vst.msk [vmem:[#allocation2 + $0x3] sm:$0xff] %vm445_vm0, %v906_v44  ;;  %v907_v48 = vmax.f32 %v879_v45, 0.0 }
 0x189   : > { %v2876_v49 = vpop.f32.mrb[4].mxu0 }
 0x18a   : > { %915 = vst.msk [vmem:[#allocation2 + $0xb] sm:$0xff] %vm445_vm0, %v907_v48  ;;  %v2877_v50 = vpop.f32.mrb[5].mxu0 }
 0x18b   : > { %v2878_v51 = vadd.f32 %v2877_v50, %v2876_v49  ;;  %v2879_v52 = vpop.f32.mrb[6].mxu0 }
 0x18c   : > { %v2880_v53 = vpop.f32.mrb[7].mxu0 }
 0x18d   : > { %v884_v55 = vadd.f32 %v2878_v51, %v3569_v37  ;;  %v2881_v56 = vadd.f32 %v2880_v53, %v2879_v52 }
 0x18f   : > { %v908_v58 = vmax.f32 %v884_v55, 0.0  ;;  %v887_v59 = vadd.f32 %v2881_v56, %v3569_v37  ;;  %v926_v60 = vld [vmem:[#allocation2 + $0x1] sm:$0xff] }
 0x190   : > { %v922_v9 = vld [vmem:[#allocation2] sm:$0xff] }
 0x191   : > { %916 = vst.msk [vmem:[#allocation2 + $0x19] sm:$0xff] %vm445_vm0, %v908_v58  ;;  %v909_v62 = vmax.f32 %v887_v59, 0.0  ;;  %v954_v63 = vld [vmem:[#allocation2 + $0x5] sm:$0xff]  ;;  %v955_v1 = vld [vmem:[#allocation2 + $0xd] sm:$0xff] }
 0x192   : > { %v927_v2 = vld [vmem:[#allocation2 + $0x9] sm:$0xff]  ;;  %v956_v3 = vpack.c.bf16 %v955_v1, %v954_v63 }
 0x193   : > { %v928_v4 = vpack.c.bf16 %v927_v2, %v926_v60  ;;  %v962_v5 = vld [vmem:[#allocation2 + $0x6] sm:$0xff]  ;;  %v963_v6 = vld [vmem:[#allocation2 + $0xe] sm:$0xff]  ;;  %917 = vst.msk [vmem:[#allocation2 + $0x21] sm:$0xff] %vm445_vm0, %v909_v62 }
 0x194   : > { %v935_v7 = vld [vmem:[#allocation2 + $0xa] sm:$0xff]  ;;  %v2882_v14 = vpop.f32.mrb[8].mxu0  ;;  %958 = vrot.lane.b32.xlu1 %v956_v3, %s4073_s17  ;;  %v934_v24 = vld [vmem:[#allocation2 + $0x2] sm:$0xff]  ;;  %v964_v28 = vpack.c.bf16 %v963_v6, %v962_v5 }
 0x195   : > { %v943_v10 = vld [vmem:[#allocation2 + $0xb] sm:$0xff]  ;;  %930 = vrot.lane.b32.xlu0 %v928_v4, %s4073_s17  ;;  %v2883_v23 = vpop.f32.mrb[9].mxu0  ;;  %v936_v29 = vpack.c.bf16 %v935_v7, %v934_v24  ;;  %v942_v34 = vld [vmem:[#allocation2 + $0x3] sm:$0xff] }
 0x196   : > { %v951_v11 = vld [vmem:[#allocation2 + $0xc] sm:$0xff]  ;;  %v950_v12 = vld [vmem:[#allocation2 + $0x4] sm:$0xff]  ;;  %v2884_v26 = vadd.f32 %v2883_v23, %v2882_v14  ;;  %v2885_v27 = vpop.f32.mrb[10].mxu0  ;;  %v944_v38 = vpack.c.bf16 %v943_v10, %v942_v34 }
 0x197   : > { %v952_v19 = vpack.c.bf16 %v951_v11, %v950_v12  ;;  %v923_v20 = vld [vmem:[#allocation2 + $0x8] sm:$0xff]  ;;  %v2886_v31 = vpop.f32.mrb[11].mxu0 }
 0x198   : > { %v924_v25 = vpack.c.bf16 %v923_v20, %v922_v9  ;;  %1961 = vst.msk [vmem:[#allocation2 + $0xb] sm:$0xff] %vm445_vm0, %v3255_v0  ;;  %v892_v32 = vadd.f32 %v2884_v26, %v3569_v37  ;;  %v2887_v33 = vadd.f32 %v2886_v31, %v2885_v27  ;;  %966 = vrot.lane.b32.xlu1 %v964_v28, %s4084_s30  ;;  %v974_v39 = vld [vmem:[#allocation2 + $0x17] sm:$0xff] }
 0x199   : > { %953 = vst.msk [vmem:[#allocation4 + $0x8] sm:$0xff] %vm445_vm0, %v952_v19  ;;  %938 = vrot.lane.b32.xlu0 %v936_v29, %s4084_s30  ;;  %v970_v41 = vld [vmem:[#allocation2 + $0x16] sm:$0xff] }
 0x19a   : > { %925 = vst.msk [vmem:[#allocation4] sm:$0xff] %vm445_vm0, %v924_v25  ;;  %v910_v35 = vmax.f32 %v892_v32, 0.0  ;;  %v895_v36 = vadd.f32 %v2887_v33, %v3569_v37  ;;  %v975_v40 = vld [vmem:[#allocation2 + $0x1f] sm:$0xff] }
 0x19b   : > { %v976_v42 = vpack.c.bf16 %v975_v40, %v974_v39  ;;  %v1002_v43 = vld [vmem:[#allocation2 + $0x1b] sm:$0xff]  ;;  %v1003_v44 = vld [vmem:[#allocation2 + $0x23] sm:$0xff] }
 0x19c   : > { %v983_v45 = vld [vmem:[#allocation2 + $0x20] sm:$0xff]  ;;  %918 = vst.msk [vmem:[#allocation2 + $0x2f] sm:$0xff] %vm445_vm0, %v910_v35  ;;  %v911_v46 = vmax.f32 %v895_v36, 0.0  ;;  %v1004_v56 = vpack.c.bf16 %v1003_v44, %v1002_v43  ;;  %v982_v57 = vld [vmem:[#allocation2 + $0x18] sm:$0xff] }
 0x19d   : > { %946 = vrot.lane.b32.xlu0 %v944_v38, %s4085_s27  ;;  %v1010_v47 = vld [vmem:[#allocation2 + $0x1c] sm:$0xff]  ;;  %v2888_v50 = vpop.f32.mrb[12].mxu0  ;;  %978 = vrot.lane.b32.xlu1 %v976_v42, %s4073_s17  ;;  %v1011_v51 = vld [vmem:[#allocation2 + $0x24] sm:$0xff]  ;;  %v984_v61 = vpack.c.bf16 %v983_v45, %v982_v57 }
 0x19e   : > { %v971_v48 = vld [vmem:[#allocation2 + $0x1e] sm:$0xff]  ;;  %919 = vst.msk [vmem:[#allocation2 + $0x37] sm:$0xff] %vm445_vm0, %v911_v46  ;;  %v2889_v55 = vpop.f32.mrb[13].mxu0  ;;  %v1012_v2 = vpack.c.bf16 %v1011_v51, %v1010_v47 }
 0x19f   : > { %v998_v49 = vld [vmem:[#allocation2 + $0x1a] sm:$0xff]  ;;  %v972_v53 = vpack.c.bf16 %v971_v48, %v970_v41  ;;  %v999_v54 = vld [vmem:[#allocation2 + $0x22] sm:$0xff]  ;;  %v2890_v59 = vadd.f32 %v2889_v55, %v2888_v50  ;;  %v2891_v60 = vpop.f32.mrb[14].mxu0 }
 0x1a0   : > { %v991_v52 = vld [vmem:[#allocation2 + $0x21] sm:$0xff]  ;;  %v1000_v58 = vpack.c.bf16 %v999_v54, %v998_v49  ;;  %v2892_v62 = vpop.f32.mrb[15].mxu0  ;;  %v990_v3 = vld [vmem:[#allocation2 + $0x19] sm:$0xff] }
 0x1a1   : > { %1963 = vst.msk [vmem:[#allocation2 + $0x21] sm:$0xff] %vm445_vm0, %v3255_v0  ;;  %973 = vst.msk [vmem:[#allocation4 + $0x10] sm:$0xff] %vm445_vm0, %v972_v53  ;;  %1006 = vrot.lane.b32.xlu0 %v1004_v56, %s4073_s17  ;;  %v900_v63 = vadd.f32 %v2890_v59, %v3569_v37  ;;  %v2893_v1 = vadd.f32 %v2892_v62, %v2891_v60  ;;  %986 = vrot.lane.b32.xlu1 %v984_v61, %s4084_s30  ;;  %v2833_v53 = vld [vmem:[%s3427_s19] sm:$0xff]   ;;  %v2851_v54 = vld [vmem:[%s3427_s19 + $0x8] sm:$0xff]   ;;  %s436_s19 = scalar_lea.vmem [#allocation6], %s2701_s16 }
 0x1a2   : > { %1001 = vst.msk [vmem:[#allocation4 + $0x18] sm:$0xff] %vm445_vm0, %v1000_v58  ;;  %v992_v6 = vpack.c.bf16 %v991_v52, %v990_v3  ;;  %v2834_v55 = vunpack.c.l.bf16 %v2833_v53  ;;  %v2835_v56 = vunpack.c.h.bf16 %v2833_v53  ;;  %v2838_v57 = vunpack.c.l.bf16 %v2851_v54  ;;  %s2638_s21 = sshll.u32 %s436_s19, 4  ;;  %s4011_s21 = int_to_ptr.vmem [resolvable:$true] %s2638_s21 }
 0x1a3   : > { %v912_v4 = vmax.f32 %v900_v63, 0.0  ;;  %v903_v5 = vadd.f32 %v2893_v1, %v3569_v37  ;;  %v1022_v7 = vld [vmem:[#allocation2 + $0x2d] sm:$0xff]  ;;  %v2839_v58 = vunpack.c.h.bf16 %v2851_v54  ;;  %v3095_v1 = vpack.i.bf16 %v2831_v18, %v2830_v17 }
 0x1a4   : > { %v1018_v21 = vld [vmem:[#allocation2 + $0x2c] sm:$0xff]  ;;  %v3090_v63 = vpack.i.bf16 %v2835_v56, %v2834_v55 }
 0x1a5   : > { %1014 = vrot.lane.b32.xlu0 %v1012_v2, %s4084_s30  ;;  %920 = vst.msk [vmem:[#allocation2 + $0x45] sm:$0xff] %vm445_vm0, %v912_v4  ;;  %v913_v9 = vmax.f32 %v903_v5, 0.0  ;;  %994 = vrot.lane.b32.xlu1 %v992_v6, %s4085_s27  ;;  %v1023_v10 = vld [vmem:[#allocation2 + $0x35] sm:$0xff]  ;;  %v3085_v62 = vpack.i.bf16 %v2839_v58, %v2838_v57  ;;  %v3100_v2 = vpack.i.bf16 %v2827_v16, %v2826_v15 }
 0x1a6   : > { %v1050_v11 = vld [vmem:[#allocation2 + $0x31] sm:$0xff]  ;;  %v1051_v12 = vld [vmem:[#allocation2 + $0x39] sm:$0xff]  ;;  %v1024_v14 = vpack.c.bf16 %v1023_v10, %v1022_v7 }
 0x1a7   : > { %v1052_v19 = vpack.c.bf16 %v1051_v12, %v1050_v11  ;;  %v1031_v20 = vld [vmem:[#allocation2 + $0x36] sm:$0xff]  ;;  %921 = vst.msk [vmem:[#allocation2 + $0x4d] sm:$0xff] %vm445_vm0, %v913_v9  ;;  %v1030_v28 = vld [vmem:[#allocation2 + $0x2e] sm:$0xff] }
 0x1a8   : > { %v1058_v22 = vld [vmem:[#allocation2 + $0x32] sm:$0xff]  ;;  %v1059_v24 = vld [vmem:[#allocation2 + $0x3a] sm:$0xff]  ;;  %v1032_v30 = vpack.c.bf16 %v1031_v20, %v1030_v28 }
 0x1a9   : > { %v1019_v37 = vld [vmem:[#allocation2 + $0x34] sm:$0xff]  ;;  %1026 = vrot.lane.b32.xlu0 %v1024_v14, %s4073_s17  ;;  %1054 = vrot.lane.b32.xlu1 %v1052_v19, %s4073_s17  ;;  %v1060_v31 = vpack.c.bf16 %v1059_v24, %v1058_v22 }
 0x1aa   : > { %v1046_v23 = vld [vmem:[#allocation2 + $0x30] sm:$0xff]  ;;  %v1020_v26 = vpack.c.bf16 %v1019_v37, %v1018_v21  ;;  %v1047_v27 = vld [vmem:[#allocation2 + $0x38] sm:$0xff] }
 0x1ab   : > { %v1039_v25 = vld [vmem:[#allocation2 + $0x37] sm:$0xff]  ;;  %v1048_v29 = vpack.c.bf16 %v1047_v27, %v1046_v23  ;;  %v1038_v32 = vld [vmem:[#allocation2 + $0x2f] sm:$0xff] }
 0x1ac   : > { %1965 = vst.msk [vmem:[#allocation2 + $0x37] sm:$0xff] %vm445_vm0, %v3255_v0  ;;  %1021 = vst.msk [vmem:[#allocation4 + $0x20] sm:$0xff] %vm445_vm0, %v1020_v26  ;;  %v1040_v33 = vpack.c.bf16 %v1039_v25, %v1038_v32  ;;  %v1070_v34 = vld [vmem:[#allocation2 + $0x43] sm:$0xff] }
 0x1ad   : > { %1049 = vst.msk [vmem:[#allocation4 + $0x28] sm:$0xff] %vm445_vm0, %v1048_v29  ;;  %1034 = vrot.lane.b32.xlu0 %v1032_v30, %s4084_s30  ;;  %1062 = vrot.lane.b32.xlu1 %v1060_v31, %s4084_s30  ;;  %v1066_v36 = vld [vmem:[#allocation2 + $0x42] sm:$0xff] }
 0x1ae   : > { %v1071_v35 = vld [vmem:[#allocation2 + $0x4b] sm:$0xff]  ;;  %v3137_v30 = vld [vmem:[%s4056_s5 + $0x40] sm:$0xff]  }
 0x1af   : > { %v1072_v38 = vpack.c.bf16 %v1071_v35, %v1070_v34  ;;  %v1098_v39 = vld [vmem:[#allocation2 + $0x47] sm:$0xff]  ;;  %v1099_v40 = vld [vmem:[#allocation2 + $0x4f] sm:$0xff]  ;;  %2934 = vmatprep.subr.bf16.mxu0 %v3137_v30 }
 0x1b0   : > { %v1079_v41 = vld [vmem:[#allocation2 + $0x4c] sm:$0xff]  ;;  %v1100_v49 = vpack.c.bf16 %v1099_v40, %v1098_v39  ;;  %v1078_v50 = vld [vmem:[#allocation2 + $0x44] sm:$0xff] }
 0x1b1   : > { %1042 = vrot.lane.b32.xlu0 %v1040_v33, %s4085_s27  ;;  %v1106_v42 = vld [vmem:[#allocation2 + $0x48] sm:$0xff]  ;;  %1074 = vrot.lane.b32.xlu1 %v1072_v38, %s4073_s17  ;;  %v1107_v45 = vld [vmem:[#allocation2 + $0x50] sm:$0xff]  ;;  %v1080_v52 = vpack.c.bf16 %v1079_v41, %v1078_v50  ;;  %v3138_v31 = vld [vmem:[%s4056_s5] sm:$0xff]  }
 0x1b2   : > { %v1067_v43 = vld [vmem:[#allocation2 + $0x4a] sm:$0xff]  ;;  %v1108_v59 = vpack.c.bf16 %v1107_v45, %v1106_v42  ;;  %v3140_v33 = vld [vmem:[%s4056_s5 + $0xc0] sm:$0xff]   ;;  %2935 = vmatpush3.bf16.msra.mxu0 %v3138_v31  ;;  %v3147_v42 = vld [vmem:[%s4056_s5 + $0x58] sm:$0xff]  }
 0x1b3   : > { %v1094_v44 = vld [vmem:[#allocation2 + $0x46] sm:$0xff]  ;;  %v1068_v47 = vpack.c.bf16 %v1067_v43, %v1066_v36  ;;  %v1095_v48 = vld [vmem:[#allocation2 + $0x4e] sm:$0xff]  ;;  %2962 = vmatprep.subr.bf16.mxu1 %v3140_v33 }
 0x1b4   : > { %v1087_v46 = vld [vmem:[#allocation2 + $0x4d] sm:$0xff]  ;;  %v1096_v51 = vpack.c.bf16 %v1095_v48, %v1094_v44  ;;  %v1086_v60 = vld [vmem:[#allocation2 + $0x45] sm:$0xff]  ;;  %v3149_v44 = vld [vmem:[%s4056_s5 + $0x18] sm:$0xff]  }
 0x1b5   : > { %1967 = vst.msk [vmem:[#allocation2 + $0x4d] sm:$0xff] %vm445_vm0, %v3255_v0  ;;  %1069 = vst.msk [vmem:[#allocation4 + $0x30] sm:$0xff] %vm445_vm0, %v1068_v47  ;;  %1102 = vrot.lane.b32.xlu0 %v1100_v49, %s4073_s17  ;;  %1082 = vrot.lane.b32.xlu1 %v1080_v52, %s4084_s30  ;;  %v1088_v61 = vpack.c.bf16 %v1087_v46, %v1086_v60  ;;  %v3139_v32 = vld [vmem:[%s4056_s5 + $0x48] sm:$0xff]   ;;  %v3142_v34 = vld [vmem:[%s4056_s5 + $0x80] sm:$0xff]  }
 0x1b6   : > { %1097 = vst.msk [vmem:[#allocation4 + $0x38] sm:$0xff] %vm445_vm0, %v1096_v51  ;;  %v3144_v35 = vld [vmem:[%s4056_s5 + $0xc8] sm:$0xff]   ;;  %2936 = vmatprep.subr.bf16.mxu0 %v3139_v32  ;;  %v3143_v38 = vld [vmem:[%s4056_s5 + $0x50] sm:$0xff]   ;;  %v3748_v46 = vld [vmem:[%s4055_s4] ss:$0 sm:$0xff] }
 0x1b7   : > { %v3141_v36 = vld [vmem:[%s4056_s5 + $0x8] sm:$0xff]   ;;  %v3148_v40 = vld [vmem:[%s4056_s5 + $0xd0] sm:$0xff]   ;;  %v3152_v60 = vld [vmem:[%s4056_s5 + $0xd8] sm:$0xff]  }
 0x1b8   : > { %v3146_v39 = vld [vmem:[%s4056_s5 + $0x88] sm:$0xff]   ;;  %2937 = vmatpush3.bf16.msra.mxu0 %v3141_v36  ;;  %v3145_v41 = vld [vmem:[%s4056_s5 + $0x10] sm:$0xff]  }
 0x1b9   : > { %1110 = vrot.lane.b32.xlu0 %v1108_v59, %s4084_s30  ;;  %1090 = vrot.lane.b32.xlu1 %v1088_v61, %s4085_s27  ;;  %v3150_v43 = vld [vmem:[%s4056_s5 + $0x90] sm:$0xff]   ;;  %v3151_v59 = vld [vmem:[%s4056_s5 + $0x60] sm:$0xff]  }
 0x1ba   : > { %2938 = vmatprep.subr.bf16.mxu0 %v3143_v38  ;;  %v3153_v61 = vld [vmem:[%s4056_s5 + $0x20] sm:$0xff]   ;;  %v3160_v36 = vld [vmem:[%s4056_s5 + $0xe8] sm:$0xff]   ;;  %v3161_v38 = vld [vmem:[%s4056_s5 + $0x30] sm:$0xff]  }
 0x1bc   : > { %2939 = vmatpush3.bf16.msra.mxu0 %v3145_v41  ;;  %v3162_v41 = vld [vmem:[%s4056_s5 + $0xa8] sm:$0xff]  }
 0x1bd   : > { %3086 = vrot.lane.b32.xlu0 %v3085_v62, %s4073_s17  ;;  %3091 = vrot.lane.b32.xlu1 %v3090_v63, %s4073_s17  ;;  %v3154_v63 = vld [vmem:[%s4056_s5 + $0x98] sm:$0xff]  }
 0x1be   : > { %2940 = vmatprep.subr.bf16.mxu0 %v3147_v42 }
 0x1c0   : > { %2941 = vmatpush3.bf16.msra.mxu0 %v3149_v44 }
 0x1c1   : > { %3096 = vrot.lane.b32.xlu0 %v3095_v1, %s4073_s17  ;;  %3101 = vrot.lane.b32.xlu1 %v3100_v2, %s4073_s17  ;;  %s4086_s17 = smov 32  }
 0x1c2   : > { %2942 = vmatprep.subr.bf16.mxu0 %v3151_v59 }
 0x1c4   : > { %2943 = vmatpush3.bf16.msra.mxu0 %v3153_v61 }
 0x206   : > { %v959_v3 = vpop.permute.xlu1 %958 }
 0x207   : > { %v931_v4 = vpop.permute.xlu0 %930  ;;  %961 = vst.msk [vmem:[#allocation4 + $0x8] sm:$0xff] %vm515_vm3, %v959_v3 }
 0x208   : > { %933 = vst.msk [vmem:[#allocation4] sm:$0xff] %vm515_vm3, %v931_v4 }
 0x20a   : > { %v967_v5 = vpop.permute.xlu1 %966 }
 0x20b   : > { %v939_v13 = vpop.permute.xlu0 %938  ;;  %969 = vst.msk [vmem:[#allocation4 + $0x8] sm:$0xff] %vm524_vm4, %v967_v5 }
 0x20c   : > { %941 = vst.msk [vmem:[#allocation4] sm:$0xff] %vm524_vm4, %v939_v13 }
 0x20f   : > { %v947_v17 = vpop.permute.xlu0 %946  ;;  %v979_v8 = vpop.permute.xlu1 %978 }
 0x210   : > { %949 = vst.msk [vmem:[#allocation4] sm:$0xff] %vm469_vm1, %v947_v17 }
 0x211   : > { %981 = vst.msk [vmem:[#allocation4 + $0x10] sm:$0xff] %vm515_vm3, %v979_v8 }
 0x212   : > { %v1115_v15 = vld [vmem:[#allocation4 + $0x8] sm:$0xff] }
 0x213   : > { %v1007_v16 = vpop.permute.xlu0 %1006  ;;  %v987_v18 = vpop.permute.xlu1 %986  ;;  %1289 = vmatprep.mubr.bf16.mxu1 %v1115_v15 }
 0x214   : > { %1009 = vst.msk [vmem:[#allocation4 + $0x18] sm:$0xff] %vm515_vm3, %v1007_v16 }
 0x215   : > { %989 = vst.msk [vmem:[#allocation4 + $0x10] sm:$0xff] %vm524_vm4, %v987_v18 }
 0x217   : > { %v1114_v6 = vld [vmem:[#allocation4] sm:$0xff]  ;;  %v1015_v7 = vpop.permute.xlu0 %1014  ;;  %v995_v9 = vpop.permute.xlu1 %994 }
 0x218   : > { %1017 = vst.msk [vmem:[#allocation4 + $0x18] sm:$0xff] %vm524_vm4, %v1015_v7  ;;  %1290 = vmatmul.mubr.bf16.vlgmr.msra.gmra.mrb[0].mxu1 %v1114_v6 }
 0x219   : > { %997 = vst.msk [vmem:[#allocation4 + $0x10] sm:$0xff] %vm469_vm1, %v995_v9  ;;  %2963 = vmatpush3.bf16.msra.mxu1 %v3142_v34 }
 0x21a   : > { %2964 = vmatprep.subr.bf16.mxu1 %v3144_v35  ;;  %v3159_v35 = vld [vmem:[%s4056_s5 + $0x70] sm:$0xff]  }
 0x21b   : > { %v1027_v10 = vpop.permute.xlu0 %1026  ;;  %v1055_v11 = vpop.permute.xlu1 %1054 }
 0x21c   : > { %1029 = vst.msk [vmem:[#allocation4 + $0x20] sm:$0xff] %vm515_vm3, %v1027_v10  ;;  %1057 = vst.msk [vmem:[#allocation4 + $0x28] sm:$0xff] %vm515_vm3, %v1055_v11 }
 0x21d   : > { %2965 = vmatpush3.bf16.msra.mxu1 %v3146_v39 }
 0x21e   : > { %2966 = vmatprep.subr.bf16.mxu1 %v3148_v40 }
 0x21f   : > { %v1035_v12 = vpop.permute.xlu0 %1034  ;;  %v1117_v14 = vld [vmem:[#allocation4 + $0x18] sm:$0xff]  ;;  %v1063_v19 = vpop.permute.xlu1 %1062 }
 0x220   : > { %1037 = vst.msk [vmem:[#allocation4 + $0x20] sm:$0xff] %vm524_vm4, %v1035_v12  ;;  %1297 = vmatprep.mubr.bf16.mxu1 %v1117_v14  ;;  %v1116_v20 = vld [vmem:[#allocation4 + $0x10] sm:$0xff]  ;;  %1065 = vst.msk [vmem:[#allocation4 + $0x28] sm:$0xff] %vm524_vm4, %v1063_v19 }
 0x221   : > { %1298 = vmatmul.mubr.bf16.gmra.mrb[4].mxu1 %v1116_v20 }
 0x222   : > { %2967 = vmatpush3.bf16.msra.mxu1 %v3150_v43 }
 0x223   : > { %v1043_v21 = vpop.permute.xlu0 %1042  ;;  %v1075_v22 = vpop.permute.xlu1 %1074  ;;  %2968 = vmatprep.subr.bf16.mxu1 %v3152_v60  ;;  %v3164_v60 = vld [vmem:[%s4056_s5 + $0xf0] sm:$0xff]  }
 0x224   : > { %1045 = vst.msk [vmem:[#allocation4 + $0x20] sm:$0xff] %vm469_vm1, %v1043_v21 }
 0x225   : > { %1077 = vst.msk [vmem:[#allocation4 + $0x30] sm:$0xff] %vm515_vm3, %v1075_v22 }
 0x226   : > { %2969 = vmatpush3.bf16.msra.mxu1 %v3154_v63 }
 0x227   : > { %v1103_v37 = vpop.permute.xlu0 %1102  ;;  %v1083_v23 = vpop.permute.xlu1 %1082  ;;  %v1119_v24 = vld [vmem:[#allocation4 + $0x28] sm:$0xff] }
 0x228   : > { %1105 = vst.msk [vmem:[#allocation4 + $0x38] sm:$0xff] %vm515_vm3, %v1103_v37  ;;  %1305 = vmatprep.mubr.bf16.mxu1 %v1119_v24  ;;  %v3155_v37 = vld [vmem:[%s4056_s5 + $0x68] sm:$0xff]  }
 0x229   : > { %1085 = vst.msk [vmem:[#allocation4 + $0x30] sm:$0xff] %vm524_vm4, %v1083_v23  ;;  %v3156_v23 = vld [vmem:[%s4056_s5 + $0xe0] sm:$0xff]   ;;  %v3157_v24 = vld [vmem:[%s4056_s5 + $0x28] sm:$0xff]   ;;  %2944 = vmatprep.subr.bf16.mxu0 %v3155_v37 }
 0x22a   : > { %2970 = vmatprep.subr.bf16.mxu1 %v3156_v23  ;;  %2945 = vmatpush3.bf16.msra.mxu0 %v3157_v24 }
 0x22b   : > { %v1111_v25 = vpop.permute.xlu0 %1110  ;;  %v1118_v26 = vld [vmem:[#allocation4 + $0x20] sm:$0xff]  ;;  %v1091_v27 = vpop.permute.xlu1 %1090  ;;  %2946 = vmatprep.subr.bf16.mxu0 %v3159_v35 }
 0x22c   : > { %1113 = vst.msk [vmem:[#allocation4 + $0x38] sm:$0xff] %vm524_vm4, %v1111_v25  ;;  %1306 = vmatmul.mubr.bf16.gmra.mrb[8].mxu1 %v1118_v26  ;;  %vm2055_vm4 = vcmask 1044226  }
 0x22d   : > { %1093 = vst.msk [vmem:[#allocation4 + $0x30] sm:$0xff] %vm469_vm1, %v1091_v27  ;;  %v3158_v27 = vld [vmem:[%s4056_s5 + $0xa0] sm:$0xff]   ;;  %vm2035_vm1 = vcmask 519426  }
 0x22e   : > { %2971 = vmatpush3.bf16.msra.mxu1 %v3158_v27  ;;  %2947 = vmatpush3.bf16.msra.mxu0 %v3161_v38 }
 0x22f   : > { %v3092_v50 = vpop.permute.xlu1 %3091  ;;  %v3087_v4 = vpop.permute.xlu0 %3086  ;;  %2972 = vmatprep.subr.bf16.mxu1 %v3160_v36 }
 0x230   : > { %v3093_v54 = vunpack.i.l.bf16 %v3092_v50  ;;  %v3094_v57 = vunpack.i.h.bf16 %v3092_v50  ;;  %v3088_v8 = vunpack.i.l.bf16 %v3087_v4  ;;  %v3089_v18 = vunpack.i.h.bf16 %v3087_v4  ;;  %v3166_v4 = vld [vmem:[%s4056_s5 + $0xb0] sm:$0xff]  }
 0x232   : > { %2973 = vmatpush3.bf16.msra.mxu1 %v3162_v41 }
 0x233   : > { %v1121_v28 = vld [vmem:[#allocation4 + $0x38] sm:$0xff]  ;;  %v3102_v31 = vpop.permute.xlu1 %3101  ;;  %2974 = vmatprep.subr.bf16.mxu1 %v3164_v60 }
 0x234   : > { %1313 = vmatprep.mubr.bf16.mxu1 %v1121_v28  ;;  %v1120_v29 = vld [vmem:[#allocation4 + $0x30] sm:$0xff]  ;;  %v3103_v42 = vunpack.i.l.bf16 %v3102_v31 }
 0x235   : > { %1314 = vmatmul.mubr.bf16.gmra.mrb[12].mxu1 %v1120_v29 }
 0x236   : > { %2975 = vmatpush3.bf16.msra.mxu1 %v3166_v4 }
 0x2eb   : > { %v2910_v45 = vpop.f32.mrb[0].mxu1 }
 0x2ec   : > { %v2911_v47 = vpop.f32.mrb[1].mxu1 }
 0x2ed   : > { %v2912_v48 = vadd.f32 %v2911_v47, %v2910_v45  ;;  %v2913_v49 = vpop.f32.mrb[2].mxu1 }
 0x2ee   : > { %v2914_v51 = vpop.f32.mrb[3].mxu1 }
 0x2ef   : > { %v1292_v52 = vadd.f32 %v2912_v48, %v3748_v46  ;;  %v2915_v53 = vadd.f32 %v2914_v51, %v2913_v49  ;;  %v3104_v48 = vunpack.i.h.bf16 %v3102_v31 }
 0x2f1   : > { %v1322_v55 = vmax.f32 %v1292_v52, 0.0  ;;  %v1295_v56 = vadd.f32 %v2915_v53, %v3748_v46 }
 0x2f3   : > { %v1323_v58 = vmax.f32 %v1295_v56, 0.0  ;;  %1330 = vst.msk [vmem:[#allocation3 + $0x3] sm:$0xff] %vm445_vm0, %v1322_v55  ;;  %v3163_v55 = vld [vmem:[%s4056_s5 + $0x78] sm:$0xff]  }
 0x2f4   : > { %v2916_v62 = vpop.f32.mrb[4].mxu1  ;;  %1344 = vst.msk [vmem:[#allocation3 + $0x3] sm:$0xff] %vm515_vm3, %v3093_v54  ;;  %2948 = vmatprep.subr.bf16.mxu0 %v3163_v55 }
 0x2f5   : > { %v2917_v1 = vpop.f32.mrb[5].mxu1  ;;  %1331 = vst.msk [vmem:[#allocation3 + $0xb] sm:$0xff] %vm445_vm0, %v1323_v58 }
 0x2f6   : > { %v2918_v2 = vadd.f32 %v2917_v1, %v2916_v62  ;;  %v2919_v3 = vpop.f32.mrb[6].mxu1  ;;  %1345 = vst.msk [vmem:[#allocation3 + $0xb] sm:$0xff] %vm515_vm3, %v3094_v57 }
 0x2f7   : > { %v2920_v5 = vpop.f32.mrb[7].mxu1 }
 0x2f8   : > { %v1300_v13 = vadd.f32 %v2918_v2, %v3748_v46  ;;  %v2921_v17 = vadd.f32 %v2920_v5, %v2919_v3  ;;  %v3165_v3 = vld [vmem:[%s4056_s5 + $0x38] sm:$0xff]  }
 0x2f9   : > { %2949 = vmatpush3.bf16.msra.mxu0 %v3165_v3 }
 0x2fa   : > { %v1324_v15 = vmax.f32 %v1300_v13, 0.0  ;;  %v1303_v16 = vadd.f32 %v2921_v17, %v3748_v46  ;;  %v3097_v17 = vpop.permute.xlu0 %3096 }
 0x2fb   : > { %v3099_v37 = vunpack.i.h.bf16 %v3097_v17 }
 0x2fc   : > { %v1325_v6 = vmax.f32 %v1303_v16, 0.0  ;;  %1346 = vst.msk [vmem:[#allocation3 + $0x19] sm:$0xff] %vm445_vm0, %v1324_v15 }
 0x2fd   : > { %v1432_v7 = vld [vmem:[#allocation3 + $0x6] ss:$2 sm:$0xff]  ;;  %1360 = vst.msk [vmem:[#allocation3 + $0x19] sm:$0xff] %vm515_vm3, %v3088_v8  ;;  %v1412_v9 = vld [vmem:[#allocation3 + $0x3] ss:$2 sm:$0xff] }
 0x2fe   : > { %v1399_v10 = vld [vmem:[#allocation3 + $0x1] ss:$2 sm:$0xff]  ;;  %1347 = vst.msk [vmem:[#allocation3 + $0x21] sm:$0xff] %vm445_vm0, %v1325_v6  ;;  %v1413_v11 = vpack.c.bf16 %v1412_v9, %v1412_v9  ;;  %v1433_v12 = vpack.c.bf16 %v1432_v7, %v1432_v7  ;;  %v1408_v14 = vld [vmem:[#allocation3 + $0x2] ss:$2 sm:$0xff] }
 0x2ff   : > { %v1394_v19 = vld [vmem:[#allocation3] ss:$2 sm:$0xff]  ;;  %1361 = vst.msk [vmem:[#allocation3 + $0x21] sm:$0xff] %vm515_vm3, %v3089_v18  ;;  %v2922_v20 = vpop.f32.mrb[8].mxu1  ;;  %v1409_v21 = vpack.c.bf16 %v1408_v14, %v1408_v14  ;;  %v1400_v26 = vpack.c.bf16 %v1399_v10, %v1399_v10  ;;  %v1424_v32 = vld [vmem:[#allocation3 + $0x5] ss:$2 sm:$0xff] }
 0x300   : > { %v1395_v22 = vpack.c.bf16 %v1394_v19, %v1394_v19  ;;  %v2923_v25 = vpop.f32.mrb[9].mxu1  ;;  %1415 = vrot.lane.b32.xlu0 %v1413_v11, %s4084_s30  ;;  %1434 = vst.msk [vmem:[#allocation5 + $0x18] sm:$0xf] %vm1396_vm6, %v1433_v12  ;;  %v1420_v28 = vld [vmem:[#allocation3 + $0x4] ss:$2 sm:$0xff]  ;;  %v1425_v43 = vpack.c.bf16 %v1424_v32, %v1424_v32  ;;  %v3098_v19 = vunpack.i.l.bf16 %v3097_v17 }
 0x301   : > { %v2924_v29 = vadd.f32 %v2923_v25, %v2922_v20  ;;  %v2925_v30 = vpop.f32.mrb[10].mxu1  ;;  %1410 = vst.msk [vmem:[#allocation5 + $0x8] sm:$0xf] %vm1396_vm6, %v1409_v21  ;;  %v1421_v33 = vpack.c.bf16 %v1420_v28, %v1420_v28  ;;  %v3167_v18 = vld [vmem:[%s4056_s5 + $0xf8] sm:$0xff]  }
 0x302   : > { %1397 = vst.msk [vmem:[#allocation5] sm:$0xf] %vm1396_vm6, %v1395_v22  ;;  %v2926_v34 = vpop.f32.mrb[11].mxu1  ;;  %v3168_v12 = vld [vmem:[%s4056_s5 + $0xb8] sm:$0xff]   ;;  %2976 = vmatprep.subr.bf16.mxu1 %v3167_v18 }
 0x303   : > { %v1308_v39 = vadd.f32 %v2924_v29, %v3748_v46  ;;  %v2927_v40 = vadd.f32 %v2926_v34, %v2925_v30  ;;  %1422 = vst.msk [vmem:[#allocation5 + $0x10] sm:$0xf] %vm1396_vm6, %v1421_v33  ;;  %2977 = vmatpush3.bf16.msra.mxu1 %v3168_v12 }
 0x304   : > { %1402 = vrot.lane.b32.xlu0 %v1400_v26, %s4084_s30  ;;  %3020 = vmatprep.subr.bf16.mxu1 %v3255_v0 }
 0x305   : > { %v1326_v44 = vmax.f32 %v1308_v39, 0.0  ;;  %v1311_v45 = vadd.f32 %v2927_v40, %v3748_v46 }
 0x306   : > { %v1486_v47 = vld [vmem:[#allocation3 + $0x1c] ss:$2 sm:$0xff]  ;;  %v1461_v49 = vld [vmem:[#allocation3 + $0x19] ss:$2 sm:$0xff] }
 0x307   : > { %v1444_v50 = vld [vmem:[#allocation3 + $0x17] ss:$2 sm:$0xff]  ;;  %v1487_v51 = vpack.c.bf16 %v1486_v47, %v1486_v47  ;;  %1362 = vst.msk [vmem:[#allocation3 + $0x2f] sm:$0xff] %vm445_vm0, %v1326_v44  ;;  %v1327_v52 = vmax.f32 %v1311_v45, 0.0  ;;  %v1462_v53 = vpack.c.bf16 %v1461_v49, %v1461_v49  ;;  %v1454_v54 = vld [vmem:[#allocation3 + $0x18] ss:$2 sm:$0xff] }
 0x308   : > { %v2928_v56 = vpop.f32.mrb[12].mxu1  ;;  %1376 = vst.msk [vmem:[#allocation3 + $0x2f] sm:$0xff] %vm515_vm3, %v3103_v42  ;;  %1427 = vrot.lane.b32.xlu0 %v1425_v43, %s4084_s30  ;;  %v1455_v57 = vpack.c.bf16 %v1454_v54, %v1454_v54  ;;  %v1436_v58 = vld [vmem:[#allocation3 + $0x16] ss:$2 sm:$0xff]  ;;  %v1445_v63 = vpack.c.bf16 %v1444_v50, %v1444_v50  ;;  %v1477_v8 = vld [vmem:[#allocation3 + $0x1b] ss:$2 sm:$0xff] }
 0x309   : > { %v1470_v59 = vld [vmem:[#allocation3 + $0x1a] ss:$2 sm:$0xff]  ;;  %1363 = vst.msk [vmem:[#allocation3 + $0x37] sm:$0xff] %vm445_vm0, %v1327_v52  ;;  %v2929_v61 = vpop.f32.mrb[13].mxu1  ;;  %v1464_v62 = vrot.slane %v1462_v53, 4  ;;  %v1489_v1 = vrot.slane %v1487_v51, 4  ;;  %v1437_v2 = vpack.c.bf16 %v1436_v58, %v1436_v58  ;;  %v1478_v20 = vpack.c.bf16 %v1477_v8, %v1477_v8 }
 0x30a   : > { %v2930_v5 = vadd.f32 %v2929_v61, %v2928_v56  ;;  %1377 = vst.msk [vmem:[#allocation3 + $0x37] sm:$0xff] %vm515_vm3, %v3104_v48  ;;  %v2931_v13 = vpop.f32.mrb[14].mxu1  ;;  %v1457_v15 = vrot.slane %v1455_v57, 4  ;;  %v1471_v16 = vpack.c.bf16 %v1470_v59, %v1470_v59  ;;  %v1447_v14 = vrot.slane %v1445_v63, 4 }
 0x30b   : > { %v2932_v6 = vpop.f32.mrb[15].mxu1  ;;  %1465 = vrot.lane.b32.xlu1 %v1464_v62, %s4084_s30  ;;  %1491 = vst.msk [vmem:[#allocation5 + $0x18] sm:$0xf0] %vm1441_vm7, %v1489_v1  ;;  %v1439_v7 = vrot.slane %v1437_v2, 4  ;;  %v1480_v24 = vrot.slane %v1478_v20, 4 }
 0x30c   : > { %v1316_v9 = vadd.f32 %v2930_v5, %v3748_v46  ;;  %v2933_v10 = vadd.f32 %v2932_v6, %v2931_v13  ;;  %1459 = vst.msk [vmem:[#allocation5 + $0x8] sm:$0xf0] %vm1441_vm7, %v1457_v15  ;;  %v1473_v11 = vrot.slane %v1471_v16, 4 }
 0x30d   : > { %1442 = vst.msk [vmem:[#allocation5] sm:$0xf0] %vm1441_vm7, %v1439_v7 }
 0x30e   : > { %v1328_v21 = vmax.f32 %v1316_v9, 0.0  ;;  %v1319_v22 = vadd.f32 %v2933_v10, %v3748_v46  ;;  %1475 = vst.msk [vmem:[#allocation5 + $0x10] sm:$0xf0] %vm1441_vm7, %v1473_v11 }
 0x30f   : > { %1448 = vrot.lane.b32.xlu1 %v1447_v14, %s4084_s30 }
 0x310   : > { %1378 = vst.msk [vmem:[#allocation3 + $0x45] sm:$0xff] %vm445_vm0, %v1328_v21  ;;  %v1329_v23 = vmax.f32 %v1319_v22, 0.0  ;;  %v2751_v22 = vld [vmem:[%s4057_s6] ss:$0 sm:$0xff] }
 0x311   : > { %1392 = vst.msk [vmem:[#allocation3 + $0x45] sm:$0xff] %vm515_vm3, %v3098_v19  ;;  %v1509_v25 = vld [vmem:[#allocation3 + $0x2f] ss:$2 sm:$0xff]  ;;  %v1505_v28 = vld [vmem:[#allocation3 + $0x2e] ss:$2 sm:$0xff] }
 0x312   : > { %v1497_v26 = vld [vmem:[#allocation3 + $0x2d] ss:$2 sm:$0xff]  ;;  %1379 = vst.msk [vmem:[#allocation3 + $0x4d] sm:$0xff] %vm445_vm0, %v1329_v23  ;;  %v1510_v46 = vpack.c.bf16 %v1509_v25, %v1509_v25  ;;  %v1493_v29 = vld [vmem:[#allocation3 + $0x2c] ss:$2 sm:$0xff]  ;;  %v1506_v30 = vpack.c.bf16 %v1505_v28, %v1505_v28 }
 0x313   : > { %v1590_v27 = vld [vmem:[#allocation5 + $0x18] sm:$0xff]  ;;  %1393 = vst.msk [vmem:[#allocation3 + $0x4d] sm:$0xff] %vm515_vm3, %v3099_v37  ;;  %1481 = vrot.lane.b32.xlu1 %v1480_v24, %s4084_s30  ;;  %v1494_v31 = vpack.c.bf16 %v1493_v29, %v1493_v29  ;;  %v1498_v34 = vpack.c.bf16 %v1497_v26, %v1497_v26  ;;  %vm2045_vm3 = vcmask 781826  }
 0x314   : > { %1939 = vmatprep.mubr.bf16.mxu1 %v1590_v27  ;;  %v1529_v32 = vld [vmem:[#allocation3 + $0x32] ss:$2 sm:$0xff]  ;;  %1512 = vrot.lane.b32.xlu0 %v1510_v46, %s4084_s30  ;;  %v1521_v38 = vld [vmem:[#allocation3 + $0x31] ss:$2 sm:$0xff]  ;;  %1507 = vst.msk [vmem:[#allocation5 + $0x28] sm:$0xf] %vm1396_vm6, %v1506_v30 }
 0x315   : > { %v1517_v33 = vld [vmem:[#allocation3 + $0x30] ss:$2 sm:$0xff]  ;;  %v1530_v35 = vpack.c.bf16 %v1529_v32, %v1529_v32  ;;  %1495 = vst.msk [vmem:[#allocation5 + $0x20] sm:$0xf] %vm1396_vm6, %v1494_v31  ;;  %v1522_v39 = vpack.c.bf16 %v1521_v38, %v1521_v38 }
 0x316   : > { %v1518_v36 = vpack.c.bf16 %v1517_v33, %v1517_v33 }
 0x317   : > { %1531 = vst.msk [vmem:[#allocation5 + $0x38] sm:$0xf] %vm1396_vm6, %v1530_v35 }
 0x318   : > { %1519 = vst.msk [vmem:[#allocation5 + $0x30] sm:$0xf] %vm1396_vm6, %v1518_v36  ;;  %1500 = vrot.lane.b32.xlu0 %v1498_v34, %s4084_s30  ;;  %vm2098_vm6 = vcmask 521476  }
 0x31a   : > { %v1581_v40 = vld [vmem:[#allocation3 + $0x48] ss:$2 sm:$0xff]  ;;  %v1556_v41 = vld [vmem:[#allocation3 + $0x45] ss:$2 sm:$0xff] }
 0x31b   : > { %v1540_v42 = vld [vmem:[#allocation3 + $0x43] ss:$2 sm:$0xff]  ;;  %v1582_v43 = vpack.c.bf16 %v1581_v40, %v1581_v40  ;;  %v1557_v44 = vpack.c.bf16 %v1556_v41, %v1556_v41  ;;  %v1549_v45 = vld [vmem:[#allocation3 + $0x44] ss:$2 sm:$0xff] }
 0x31c   : > { %v1533_v47 = vld [vmem:[#allocation3 + $0x42] ss:$2 sm:$0xff]  ;;  %1524 = vrot.lane.b32.xlu0 %v1522_v39, %s4084_s30  ;;  %v1550_v48 = vpack.c.bf16 %v1549_v45, %v1549_v45  ;;  %v1541_v52 = vpack.c.bf16 %v1540_v42, %v1540_v42  ;;  %v1572_v55 = vld [vmem:[#allocation3 + $0x47] ss:$2 sm:$0xff] }
 0x31d   : > { %v1534_v49 = vpack.c.bf16 %v1533_v47, %v1533_v47  ;;  %v1565_v50 = vld [vmem:[#allocation3 + $0x46] ss:$2 sm:$0xff]  ;;  %v1559_v51 = vrot.slane %v1557_v44, 4  ;;  %v1584_v53 = vrot.slane %v1582_v43, 4  ;;  %v1573_v60 = vpack.c.bf16 %v1572_v55, %v1572_v55 }
 0x31e   : > { %v1566_v54 = vpack.c.bf16 %v1565_v50, %v1565_v50  ;;  %v1552_v56 = vrot.slane %v1550_v48, 4  ;;  %v1543_v59 = vrot.slane %v1541_v52, 4  ;;  %v3169_v44 = vld [vmem:[%s4058_s7 + $0x40] sm:$0xff]  }
 0x31f   : > { %v1536_v57 = vrot.slane %v1534_v49, 4  ;;  %1560 = vrot.lane.b32.xlu1 %v1559_v51, %s4084_s30  ;;  %1586 = vst.msk [vmem:[#allocation5 + $0x38] sm:$0xf0] %vm1441_vm7, %v1584_v53  ;;  %v1575_v61 = vrot.slane %v1573_v60, 4  ;;  %v3170_v45 = vld [vmem:[%s4058_s7] sm:$0xff]   ;;  %2990 = vmatprep.subr.bf16.mxu0 %v3169_v44 }
 0x320   : > { %v1568_v58 = vrot.slane %v1566_v54, 4  ;;  %1554 = vst.msk [vmem:[#allocation5 + $0x28] sm:$0xf0] %vm1441_vm7, %v1552_v56 }
 0x321   : > { %1538 = vst.msk [vmem:[#allocation5 + $0x20] sm:$0xf0] %vm1441_vm7, %v1536_v57 }
 0x322   : > { %1570 = vst.msk [vmem:[#allocation5 + $0x30] sm:$0xf0] %vm1441_vm7, %v1568_v58  ;;  %vm2108_vm7 = vcmask 783876  }
 0x323   : > { %1544 = vrot.lane.b32.xlu1 %v1543_v59, %s4084_s30 }
 0x326   : > { %v1594_v16 = vld [vmem:[#allocation5 + $0x38] sm:$0xff] }
 0x327   : > { %1576 = vrot.lane.b32.xlu1 %v1575_v61, %s4084_s30 }
 0x372   : > { %v1416_v62 = vpop.permute.xlu0 %1415 }
 0x373   : > { %1418 = vst.msk [vmem:[#allocation5 + $0x8] sm:$0xf] %vm1405_vm8, %v1416_v62 }
 0x376   : > { %v1403_v63 = vpop.permute.xlu0 %1402 }
 0x377   : > { %1406 = vst.msk [vmem:[#allocation5] sm:$0xf] %vm1405_vm8, %v1403_v63  ;;  %v3171_v63 = vld [vmem:[%s4058_s7 + $0x48] sm:$0xff]  }
 0x37a   : > { %v1428_v1 = vpop.permute.xlu0 %1427 }
 0x37b   : > { %1430 = vst.msk [vmem:[#allocation5 + $0x10] sm:$0xf] %vm1405_vm8, %v1428_v1  ;;  %v3172_v1 = vld [vmem:[%s4058_s7 + $0x8] sm:$0xff]  }
 0x37d   : > { %v1466_v2 = vpop.permute.xlu1 %1465 }
 0x37e   : > { %1468 = vst.msk [vmem:[#allocation5 + $0x8] sm:$0xf0] %vm1451_vm9, %v1466_v2 }
 0x381   : > { %v1449_v3 = vpop.permute.xlu1 %1448 }
 0x382   : > { %1452 = vst.msk [vmem:[#allocation5] sm:$0xf0] %vm1451_vm9, %v1449_v3 }
 0x385   : > { %v1482_v4 = vpop.permute.xlu1 %1481  ;;  %v1588_v5 = vld [vmem:[#allocation5 + $0x8] sm:$0xff] }
 0x386   : > { %1484 = vst.msk [vmem:[#allocation5 + $0x10] sm:$0xf0] %vm1451_vm9, %v1482_v4  ;;  %1890 = vmatprep.mubr.bf16.mxu0 %v1588_v5  ;;  %v1513_v13 = vpop.permute.xlu0 %1512 }
 0x387   : > { %1515 = vst.msk [vmem:[#allocation5 + $0x28] sm:$0xf] %vm1405_vm8, %v1513_v13 }
 0x389   : > { %v1587_v17 = vld [vmem:[#allocation5] sm:$0xff] }
 0x38a   : > { %1891 = vmatmul.mubr.bf16.vlgmr.msra.gmra.mrb[16].mxu0 %v1587_v17  ;;  %v1501_v8 = vpop.permute.xlu0 %1500 }
 0x38b   : > { %1503 = vst.msk [vmem:[#allocation5 + $0x20] sm:$0xf] %vm1405_vm8, %v1501_v8  ;;  %2991 = vmatpush3.bf16.msra.mxu0 %v3170_v45  ;;  %v3177_v45 = vld [vmem:[%s4058_s7 + $0x60] sm:$0xff]  }
 0x38c   : > { %2992 = vmatprep.subr.bf16.mxu0 %v3171_v63 }
 0x38d   : > { %v1589_v15 = vld [vmem:[#allocation5 + $0x10] sm:$0xff] }
 0x38e   : > { %1940 = vmatmul.mubr.bf16.vlgmr.msra.gmra.mrb[16].mxu1 %v1589_v15  ;;  %v1525_v18 = vpop.permute.xlu0 %1524 }
 0x38f   : > { %1947 = vmatprep.mubr.bf16.mxu1 %v1594_v16  ;;  %1527 = vst.msk [vmem:[#allocation5 + $0x30] sm:$0xf] %vm1405_vm8, %v1525_v18  ;;  %2993 = vmatpush3.bf16.msra.mxu0 %v3172_v1  ;;  %vm2161_vm8 = vcmask 523526  }
 0x391   : > { %v1561_v6 = vpop.permute.xlu1 %1560 }
 0x392   : > { %1563 = vst.msk [vmem:[#allocation5 + $0x28] sm:$0xf0] %vm1451_vm9, %v1561_v6 }
 0x395   : > { %v1545_v7 = vpop.permute.xlu1 %1544 }
 0x396   : > { %1547 = vst.msk [vmem:[#allocation5 + $0x20] sm:$0xf0] %vm1451_vm9, %v1545_v7 }
 0x399   : > { %v1577_v9 = vpop.permute.xlu1 %1576  ;;  %v1592_v10 = vld [vmem:[#allocation5 + $0x28] sm:$0xff] }
 0x39a   : > { %1579 = vst.msk [vmem:[#allocation5 + $0x30] sm:$0xf0] %vm1451_vm9, %v1577_v9  ;;  %1898 = vmatprep.mubr.bf16.mxu0 %v1592_v10  ;;  %vm2171_vm9 = vcmask 785926  }
 0x39d   : > { %v1591_v11 = vld [vmem:[#allocation5 + $0x20] sm:$0xff] }
 0x39e   : > { %1899 = vmatmul.mubr.bf16.gmra.mrb[20].mxu0 %v1591_v11 }
 0x3a1   : > { %v1593_v12 = vld [vmem:[#allocation5 + $0x30] sm:$0xff] }
 0x3a2   : > { %1948 = vmatmul.mubr.bf16.gmra.mrb[20].mxu1 %v1593_v12 }
 0x45d   : > { %v2950_v14 = vpop.f32.mrb[16].mxu0 }
 0x45e   : > { %v2951_v19 = vpop.f32.mrb[17].mxu0 }
 0x45f   : > { %v2952_v20 = vadd.f32 %v2951_v19, %v2950_v14  ;;  %v2953_v21 = vpop.f32.mrb[18].mxu0 }
 0x460   : > { %v2954_v37 = vpop.f32.mrb[19].mxu0 }
 0x461   : > { %v2955_v23 = vadd.f32 %v2954_v37, %v2953_v21  ;;  %v2978_v24 = vpop.f32.mrb[16].mxu1  ;;  %v1893_v26 = vadd.f32 %v2952_v20, %v2751_v22  ;;  %v3173_v37 = vld [vmem:[%s4058_s7 + $0x50] sm:$0xff]  }
 0x462   : > { %v2979_v25 = vpop.f32.mrb[17].mxu1  ;;  %2994 = vmatprep.subr.bf16.mxu0 %v3173_v37 }
 0x463   : > { %v2980_v27 = vadd.f32 %v2979_v25, %v2978_v24  ;;  %v2981_v46 = vpop.f32.mrb[18].mxu1  ;;  %v1896_v29 = vadd.f32 %v2955_v23, %v2751_v22  ;;  %v3174_v23 = vld [vmem:[%s4058_s7 + $0x10] sm:$0xff]  }
 0x464   : > { %v2982_v28 = vpop.f32.mrb[19].mxu1  ;;  %2995 = vmatpush3.bf16.msra.mxu0 %v3174_v23 }
 0x465   : > { %v1942_v30 = vadd.f32 %v2980_v27, %v1893_v26  ;;  %v2983_v31 = vadd.f32 %v2982_v28, %v2981_v46 }
 0x467   : > { %v1956_v32 = vmax.f32 %v1942_v30, 0.0  ;;  %v1945_v33 = vadd.f32 %v2983_v31, %v1896_v29  ;;  %v3175_v29 = vld [vmem:[%s4058_s7 + $0x58] sm:$0xff]  }
 0x468   : > { %v3176_v30 = vld [vmem:[%s4058_s7 + $0x18] sm:$0xff]   ;;  %2996 = vmatprep.subr.bf16.mxu0 %v3175_v29 }
 0x469   : > { %1960 = vst.msk [vmem:[#allocation2 + $0x3] sm:$0xff] %vm445_vm0, %v1956_v32  ;;  %v1957_v34 = vmax.f32 %v1945_v33, 0.0  ;;  %2997 = vmatpush3.bf16.msra.mxu0 %v3176_v30 }
 0x46a   : > { %2998 = vmatprep.subr.bf16.mxu0 %v3177_v45  ;;  %v3187_v45 = vld [vmem:[%s4060_s9 + $0x10] sm:$0xff]  }
 0x46b   : > { %1962 = vst.msk [vmem:[#allocation2 + $0x19] sm:$0xff] %vm445_vm0, %v1957_v34 }
 0x470   : > { %v2004_v35 = vld [vmem:[#allocation2 + $0x5] ss:$2 sm:$0xf]  ;;  %v2012_v41 = vld [vmem:[#allocation2 + $0x6] ss:$2 sm:$0xf] }
 0x471   : > { %v1973_v36 = vld [vmem:[#allocation2 + $0x1] ss:$2 sm:$0xf]  ;;  %v2956_v38 = vpop.f32.mrb[20].mxu0  ;;  %v2005_v39 = vpack.c.bf16 %v2004_v35, %v2004_v35  ;;  %v2013_v55 = vpack.c.bf16 %v2012_v41, %v2012_v41 }
 0x472   : > { %v1974_v40 = vpack.c.bf16 %v1973_v36, %v1973_v36  ;;  %v2957_v42 = vpop.f32.mrb[21].mxu0  ;;  %v1982_v43 = vld [vmem:[#allocation2 + $0x2] ss:$2 sm:$0xf] }
 0x473   : > { %v2958_v47 = vadd.f32 %v2957_v42, %v2956_v38  ;;  %v2959_v48 = vpop.f32.mrb[22].mxu0  ;;  %2007 = vrot.lane.b32.xlu1 %v2005_v39, %s4086_s17  ;;  %v2065_v49 = vld [vmem:[#allocation2 + $0x1b] ss:$2 sm:$0xf]  ;;  %v1983_v56 = vpack.c.bf16 %v1982_v43, %v1982_v43 }
 0x474   : > { %1976 = vrot.lane.b32.xlu0 %v1974_v40, %s4086_s17  ;;  %v2960_v50 = vpop.f32.mrb[23].mxu0  ;;  %v2066_v51 = vpack.c.bf16 %v2065_v49, %v2065_v49  ;;  %v1991_v52 = vld [vmem:[#allocation2 + $0x3] ss:$2 sm:$0xf] }
 0x475   : > { %v2961_v53 = vadd.f32 %v2960_v50, %v2959_v48  ;;  %v2984_v54 = vpop.f32.mrb[20].mxu1  ;;  %v2074_v57 = vld [vmem:[#allocation2 + $0x1c] ss:$2 sm:$0xf]  ;;  %v1901_v60 = vadd.f32 %v2958_v47, %v2751_v22  ;;  %v1992_v4 = vpack.c.bf16 %v1991_v52, %v1991_v52  ;;  %v3179_v52 = vld [vmem:[%s4058_s7 + $0x68] sm:$0xff]  }
 0x476   : > { %v2985_v58 = vpop.f32.mrb[21].mxu1  ;;  %v2028_v59 = vld [vmem:[#allocation2 + $0x17] ss:$2 sm:$0xf]  ;;  %v2068_v3 = vrot.slane %v2066_v51, 6  ;;  %v2075_v5 = vpack.c.bf16 %v2074_v57, %v2074_v57  ;;  %v3178_v48 = vld [vmem:[%s4058_s7 + $0x20] sm:$0xff]  }
 0x477   : > { %v2986_v61 = vadd.f32 %v2985_v58, %v2984_v54  ;;  %v2987_v62 = vpop.f32.mrb[22].mxu1  ;;  %2015 = vrot.lane.b32.xlu1 %v2013_v55, %s4084_s30  ;;  %v1904_v13 = vadd.f32 %v2961_v53, %v2751_v22  ;;  %v2029_v15 = vpack.c.bf16 %v2028_v59, %v2028_v59  ;;  %v2048_v16 = vld [vmem:[#allocation2 + $0x19] ss:$2 sm:$0xf]  ;;  %2999 = vmatpush3.bf16.msra.mxu0 %v3178_v48  ;;  %v3180_v57 = vld [vmem:[%s4058_s7 + $0x28] sm:$0xff]  }
 0x478   : > { %1985 = vrot.lane.b32.xlu0 %v1983_v56, %s4084_s30  ;;  %v2988_v2 = vpop.f32.mrb[23].mxu1  ;;  %v2000_v18 = vld [vmem:[#allocation2 + $0x4] ss:$2 sm:$0xf]  ;;  %v2077_v19 = vrot.slane %v2075_v5, 6  ;;  %v2049_v20 = vpack.c.bf16 %v2048_v16, %v2048_v16  ;;  %3000 = vmatprep.subr.bf16.mxu0 %v3179_v52  ;;  %v3182_v16 = vld [vmem:[%s4058_s7 + $0x30] sm:$0xff]  }
 0x479   : > { %v1950_v17 = vadd.f32 %v2986_v61, %v1901_v60  ;;  %v2989_v8 = vadd.f32 %v2988_v2, %v2987_v62  ;;  %v2038_v6 = vld [vmem:[#allocation2 + $0x18] ss:$2 sm:$0xf]  ;;  %v2001_v7 = vpack.c.bf16 %v2000_v18, %v2000_v18  ;;  %v1968_v9 = vld [vmem:[#allocation2] ss:$2 sm:$0xf] }
 0x47a   : > { %v1969_v12 = vpack.c.bf16 %v1968_v9, %v1968_v9  ;;  %v2058_v14 = vld [vmem:[#allocation2 + $0x1a] ss:$2 sm:$0xf]  ;;  %v2031_v25 = vrot.slane %v2029_v15, 6  ;;  %v2039_v26 = vpack.c.bf16 %v2038_v6, %v2038_v6  ;;  %v2051_v31 = vrot.slane %v2049_v20, 6  ;;  %v3181_v60 = vld [vmem:[%s4058_s7 + $0x70] sm:$0xff]  }
 0x47b   : > { %v1958_v10 = vmax.f32 %v1950_v17, 0.0  ;;  %v1953_v11 = vadd.f32 %v2989_v8, %v1904_v13  ;;  %2069 = vrot.lane.b32.xlu1 %v2068_v3, %s4086_s17  ;;  %2002 = vst.msk [vmem:[#allocation4 + $0x8] sm:$0x3] %vm1970_vm10, %v2001_v7  ;;  %v2059_v21 = vpack.c.bf16 %v2058_v14, %v2058_v14  ;;  %v2020_v22 = vld [vmem:[#allocation2 + $0x16] ss:$2 sm:$0xf]  ;;  %3001 = vmatpush3.bf16.msra.mxu0 %v3180_v57 }
 0x47c   : > { %1994 = vrot.lane.b32.xlu0 %v1992_v4, %s4085_s27  ;;  %1971 = vst.msk [vmem:[#allocation4] sm:$0x3] %vm1970_vm10, %v1969_v12  ;;  %v2021_v27 = vpack.c.bf16 %v2020_v22, %v2020_v22  ;;  %v2041_v32 = vrot.slane %v2039_v26, 6  ;;  %3002 = vmatprep.subr.bf16.mxu0 %v3181_v60  ;;  %v3183_v7 = vld [vmem:[%s4058_s7 + $0x78] sm:$0xff]   ;;  %vm2181_vm10 = vcmask 1048326  }
 0x47d   : > { %1964 = vst.msk [vmem:[#allocation2 + $0x2f] sm:$0xff] %vm445_vm0, %v1958_v10  ;;  %v1959_v24 = vmax.f32 %v1953_v11, 0.0  ;;  %v2061_v46 = vrot.slane %v2059_v21, 6 }
 0x47e   : > { %v2023_v28 = vrot.slane %v2021_v27, 6 }
 0x47f   : > { %1966 = vst.msk [vmem:[#allocation2 + $0x45] sm:$0xff] %vm445_vm0, %v1959_v24  ;;  %2078 = vrot.lane.b32.xlu1 %v2077_v19, %s4084_s30  ;;  %3003 = vmatpush3.bf16.msra.mxu0 %v3182_v16  ;;  %v3184_v19 = vld [vmem:[%s4058_s7 + $0x38] sm:$0xff]  }
 0x480   : > { %2032 = vrot.lane.b32.xlu0 %v2031_v25, %s4086_s17  ;;  %2063 = vst.msk [vmem:[#allocation4 + $0x8] sm:$0xc] %vm2025_vm11, %v2061_v46  ;;  %2026 = vst.msk [vmem:[#allocation4] sm:$0xc] %vm2025_vm11, %v2023_v28  ;;  %3004 = vmatprep.subr.bf16.mxu0 %v3183_v7  ;;  %vm2118_vm11 = vcmask 1046276  }
 0x483   : > { %2052 = vrot.lane.b32.xlu1 %v2051_v31, %s4085_s27  ;;  %3005 = vmatpush3.bf16.msra.mxu0 %v3184_v19 }
 0x484   : > { %2042 = vrot.lane.b32.xlu0 %v2041_v32, %s4084_s30  ;;  %v2128_v33 = vld [vmem:[#allocation2 + $0x31] ss:$2 sm:$0xf]  ;;  %v2137_v38 = vld [vmem:[#allocation2 + $0x32] ss:$2 sm:$0xf] }
 0x485   : > { %v2091_v34 = vld [vmem:[#allocation2 + $0x2d] ss:$2 sm:$0xf]  ;;  %v2129_v35 = vpack.c.bf16 %v2128_v33, %v2128_v33  ;;  %v2101_v39 = vld [vmem:[#allocation2 + $0x2e] ss:$2 sm:$0xf]  ;;  %v2138_v42 = vpack.c.bf16 %v2137_v38, %v2137_v38 }
 0x486   : > { %v2092_v36 = vpack.c.bf16 %v2091_v34, %v2091_v34  ;;  %v2102_v43 = vpack.c.bf16 %v2101_v39, %v2101_v39  ;;  %v2191_v44 = vld [vmem:[#allocation2 + $0x47] ss:$2 sm:$0xf]  ;;  %v2200_v49 = vld [vmem:[#allocation2 + $0x48] ss:$2 sm:$0xf] }
 0x487   : > { %v2131_v40 = vrot.slane %v2129_v35, 4  ;;  %v2154_v47 = vld [vmem:[#allocation2 + $0x43] ss:$2 sm:$0xf]  ;;  %v2192_v50 = vpack.c.bf16 %v2191_v44, %v2191_v44  ;;  %v2140_v53 = vrot.slane %v2138_v42, 4  ;;  %v2201_v1 = vpack.c.bf16 %v2200_v49, %v2200_v49 }
 0x488   : > { %v2094_v41 = vrot.slane %v2092_v36, 4  ;;  %v2164_v51 = vld [vmem:[#allocation2 + $0x44] ss:$2 sm:$0xf]  ;;  %v2104_v54 = vrot.slane %v2102_v43, 4  ;;  %v2155_v55 = vpack.c.bf16 %v2154_v47, %v2154_v47  ;;  %v3188_v47 = vld [vmem:[%s4060_s9 + $0x18] sm:$0xff]  }
 0x489   : > { %2132 = vrot.lane.b32.xlu1 %v2131_v40, %s4086_s17  ;;  %v2121_v56 = vld [vmem:[#allocation2 + $0x30] ss:$2 sm:$0xf]  ;;  %v2184_v62 = vld [vmem:[#allocation2 + $0x46] ss:$2 sm:$0xf]  ;;  %v2165_v13 = vpack.c.bf16 %v2164_v51, %v2164_v51 }
 0x48a   : > { %2095 = vrot.lane.b32.xlu0 %v2094_v41, %s4086_s17  ;;  %v2122_v58 = vpack.c.bf16 %v2121_v56, %v2121_v56  ;;  %v2083_v59 = vld [vmem:[#allocation2 + $0x2c] ss:$2 sm:$0xf]  ;;  %v2194_v63 = vrot.slane %v2192_v50, 2  ;;  %v2185_v3 = vpack.c.bf16 %v2184_v62, %v2184_v62  ;;  %v2157_v5 = vrot.slane %v2155_v55, 2  ;;  %v3185_v43 = vld [vmem:[%s4060_s9] sm:$0xff]  }
 0x48b   : > { %v2084_v61 = vpack.c.bf16 %v2083_v59, %v2083_v59  ;;  %v2146_v4 = vld [vmem:[#allocation2 + $0x42] ss:$2 sm:$0xf]  ;;  %v2174_v17 = vld [vmem:[#allocation2 + $0x45] ss:$2 sm:$0xf]  ;;  %3021 = vmatpush3.bf16.msra.mxu1 %v3185_v43 }
 0x48c   : > { %v2124_v2 = vrot.slane %v2122_v58, 4  ;;  %v2147_v15 = vpack.c.bf16 %v2146_v4, %v2146_v4  ;;  %v2111_v18 = vld [vmem:[#allocation2 + $0x2f] ss:$2 sm:$0xf]  ;;  %v2187_v6 = vrot.slane %v2185_v3, 2  ;;  %v2203_v10 = vrot.slane %v2201_v1, 2  ;;  %3022 = vmatprep.subr.bf16.mxu1 %v3255_v0 }
 0x48d   : > { %2141 = vrot.lane.b32.xlu1 %v2140_v53, %s4084_s30  ;;  %v2086_v8 = vrot.slane %v2084_v61, 4  ;;  %v2167_v11 = vrot.slane %v2165_v13, 2  ;;  %v2175_v12 = vpack.c.bf16 %v2174_v17, %v2174_v17  ;;  %v2112_v14 = vpack.c.bf16 %v2111_v18, %v2111_v18  ;;  %v3186_v44 = vld [vmem:[%s4060_s9 + $0x8] sm:$0xff]   ;;  %v2784_v49 = vld [vmem:[%s4059_s8] ss:$0 sm:$0xff] }
 0x48e   : > { %2105 = vrot.lane.b32.xlu0 %v2104_v54, %s4084_s30  ;;  %2126 = vst.msk [vmem:[#allocation4 + $0x8] sm:$0x30] %vm2088_vm12, %v2124_v2  ;;  %v2149_v9 = vrot.slane %v2147_v15, 2 }
 0x48f   : > { %2089 = vst.msk [vmem:[#allocation4] sm:$0x30] %vm2088_vm12, %v2086_v8  ;;  %v2177_v20 = vrot.slane %v2175_v12, 2  ;;  %v2114_v21 = vrot.slane %v2112_v14, 4  ;;  %3023 = vmatpush3.bf16.msra.mxu1 %v3186_v44  ;;  %vm2388_vm12 = vcmask 257024  }
 0x490   : > { %2189 = vst.msk [vmem:[#allocation4 + $0x8] sm:$0xc0] %vm2151_vm13, %v2187_v6  ;;  %2152 = vst.msk [vmem:[#allocation4] sm:$0xc0] %vm2151_vm13, %v2149_v9  ;;  %3024 = vmatprep.subr.bf16.mxu1 %v3255_v0  ;;  %vm2416_vm13 = vcmask 261124  }
 0x491   : > { %2195 = vrot.lane.b32.xlu1 %v2194_v63, %s4086_s17 }
 0x492   : > { %2158 = vrot.lane.b32.xlu0 %v2157_v5, %s4086_s17 }
 0x493   : > { %3025 = vmatpush3.bf16.msra.mxu1 %v3187_v45 }
 0x494   : > { %3026 = vmatprep.subr.bf16.mxu1 %v3255_v0 }
 0x495   : > { %2204 = vrot.lane.b32.xlu1 %v2203_v10, %s4084_s30 }
 0x496   : > { %2168 = vrot.lane.b32.xlu0 %v2167_v11, %s4084_s30  ;;  %s3191_s30 = scalar_lea.vmem %s4011_s21, 64 }
 0x497   : > { %3027 = vmatpush3.bf16.msra.mxu1 %v3188_v47  ;;  %p3192_p11 = scmp.ne.s32.totalorder %s4011_s21, %s3191_s30 }
 0x498   : > { %3032 = vmatprep.subr.bf16.mxu1 %v3255_v0 }
 0x499   : > { %2178 = vrot.lane.b32.xlu1 %v2177_v20, %s4085_s27  ;;  %p3193_p12 = pnand %p3192_p11, %p3370_p5 }
 0x49a   : > { %2115 = vrot.lane.b32.xlu0 %v2114_v21, %s4085_s27  ;;  %s3261_s27 = smov [#allocation6]  }
 0x49b   : > { %p3194_p13 = pneg %p3193_p12  ;;  %s3195_s20 = sshll.u32 %s3261_s27, 4  ;;  %s3196_s20 = int_to_ptr.vmem [resolvable:$false] %s3195_s20 }
 0x49c   : > { %s3197_s16 = scalar_lea.vmem %s3196_s20, 128  ;;  %p3198_p0 = scmp.lt.s32.totalorder %s4011_s21, %s3196_s20 }
 0x49d   : > { %p3199_p1 = scmp.lt.s32.totalorder %s3197_s16, %s3191_s30 }
 0x49f   : > { %p3200_p2 = por %p3199_p1, %p3198_p0 }
 0x4a1   : > { %p3201_p3 = pnand %p3200_p2, %p3194_p13 }
 0x4e5   : > { %v2008_v22 = vpop.permute.xlu1 %2007 }
 0x4e6   : > { %v1977_v37 = vpop.permute.xlu0 %1976  ;;  %2010 = vst.msk [vmem:[#allocation4 + $0x8] sm:$0x3] %vm1979_vm14, %v2008_v22 }
 0x4e7   : > { %1980 = vst.msk [vmem:[#allocation4] sm:$0x3] %vm1979_vm14, %v1977_v37  ;;  %vm2457_vm14 = vcmask 1040384  }
 0x4e9   : > { %v2016_v23 = vpop.permute.xlu1 %2015 }
 0x4ea   : > { %v1986_v24 = vpop.permute.xlu0 %1985  ;;  %2018 = vst.msk [vmem:[#allocation4 + $0x8] sm:$0x3] %vm1988_vm15, %v2016_v23 }
 0x4eb   : > { %1989 = vst.msk [vmem:[#allocation4] sm:$0x3] %vm1988_vm15, %v1986_v24  ;;  %vm2459_vm15 = vcmask 1041408  }
 0x4ed   : > { %v2070_v25 = vpop.permute.xlu1 %2069 }
 0x4ee   : > { %v1995_v26 = vpop.permute.xlu0 %1994  ;;  %2072 = vst.msk [vmem:[#allocation4 + $0x8] sm:$0xc] %vm2035_vm1, %v2070_v25 }
 0x4ef   : > { %1998 = vst.msk [vmem:[#allocation4] sm:$0x3] %vm1997_vm2, %v1995_v26  ;;  %vm2461_vm2 = vcmask 1042432  }
 0x4f1   : > { %v2079_v27 = vpop.permute.xlu1 %2078 }
 0x4f2   : > { %v2033_v46 = vpop.permute.xlu0 %2032  ;;  %2081 = vst.msk [vmem:[#allocation4 + $0x8] sm:$0xc] %vm2045_vm3, %v2079_v27 }
 0x4f3   : > { %2036 = vst.msk [vmem:[#allocation4] sm:$0xc] %vm2035_vm1, %v2033_v46  ;;  %vm3260_vm1 = vmmov 0  }
 0x4f4   : > { %3028 = vmatprep.mubr.msk.bf16.mxu1 %vm3260_vm1, %v3255_v0 }
 0x4f5   : > { %v2053_v28 = vpop.permute.xlu1 %2052 }
 0x4f6   : > { %v2043_v29 = vpop.permute.xlu0 %2042 }
 0x4f7   : > { %2046 = vst.msk [vmem:[#allocation4] sm:$0xc] %vm2045_vm3, %v2043_v29 }
 0x4f8   : > { %2056 = vst.msk [vmem:[#allocation4] sm:$0xc] %vm2055_vm4, %v2053_v28 }
 0x4fb   : > { %v2133_v30 = vpop.permute.xlu1 %2132 }
 0x4fc   : > { %v2096_v31 = vpop.permute.xlu0 %2095  ;;  %2135 = vst.msk [vmem:[#allocation4 + $0x8] sm:$0x30] %vm2098_vm6, %v2133_v30 }
 0x4fd   : > { %2099 = vst.msk [vmem:[#allocation4] sm:$0x30] %vm2098_vm6, %v2096_v31 }
 0x4ff   : > { %v2142_v32 = vpop.permute.xlu1 %2141 }
 0x500   : > { %v2106_v33 = vpop.permute.xlu0 %2105  ;;  %2144 = vst.msk [vmem:[#allocation4 + $0x8] sm:$0x30] %vm2108_vm7, %v2142_v32 }
 0x501   : > { %2109 = vst.msk [vmem:[#allocation4] sm:$0x30] %vm2108_vm7, %v2106_v33 }
 0x503   : > { %v2196_v34 = vpop.permute.xlu1 %2195 }
 0x504   : > { %v2159_v35 = vpop.permute.xlu0 %2158  ;;  %2198 = vst.msk [vmem:[#allocation4 + $0x8] sm:$0xc0] %vm2161_vm8, %v2196_v34 }
 0x505   : > { %2162 = vst.msk [vmem:[#allocation4] sm:$0xc0] %vm2161_vm8, %v2159_v35 }
 0x507   : > { %v2205_v36 = vpop.permute.xlu1 %2204 }
 0x508   : > { %v2169_v38 = vpop.permute.xlu0 %2168  ;;  %2207 = vst.msk [vmem:[#allocation4 + $0x8] sm:$0xc0] %vm2171_vm9, %v2205_v36 }
 0x509   : > { %2172 = vst.msk [vmem:[#allocation4] sm:$0xc0] %vm2171_vm9, %v2169_v38 }
 0x50b   : > { %v2179_v39 = vpop.permute.xlu1 %2178 }
 0x50c   : > { %v2116_v40 = vpop.permute.xlu0 %2115  ;;  %2182 = vst.msk [vmem:[#allocation4] sm:$0xc0] %vm2181_vm10, %v2179_v39 }
 0x50d   : > { %2119 = vst.msk [vmem:[#allocation4] sm:$0x30] %vm2118_vm11, %v2116_v40 }
 0x50f   : > { %v2209_v41 = vld [vmem:[#allocation4 + $0x8] sm:$0xff] }
 0x510   : > { %2377 = vmatprep.mubr.bf16.mxu0 %v2209_v41 }
 0x514   : > { %v2208_v42 = vld [vmem:[#allocation4] sm:$0xff] }
 0x515   : > { %2378 = vmatmul.mubr.bf16.vlgmr.msra.gmra.mrb[24].mxu0 %v2208_v42 }
 0x5e8   : > { %v3006_v48 = vpop.f32.mrb[24].mxu0 }
 0x5e9   : > { %v3007_v50 = vpop.f32.mrb[25].mxu0 }
 0x5ea   : > { %v3008_v51 = vadd.f32 %v3007_v50, %v3006_v48  ;;  %v3009_v52 = vpop.f32.mrb[26].mxu0 }
 0x5eb   : > { %v3010_v53 = vpop.f32.mrb[27].mxu0 }
 0x5ec   : > { %v2380_v54 = vadd.f32 %v3008_v51, %v2784_v49  ;;  %v3011_v55 = vadd.f32 %v3010_v53, %v3009_v52 }
 0x5ee   : > { %v2386_v56 = vmax.f32 %v2380_v54, 0.0  ;;  %v2383_v57 = vadd.f32 %v3011_v55, %v2784_v49 }
 0x5f0   : > { %v2389_v58 = vsel %vm2388_vm12, %v2386_v56, 0.0  ;;  %v2398_v59 = vsel %vm2388_vm12, %v2386_v56, -inf  ;;  %v2406_v60 = vrot.slane %v2386_v56, 4  ;;  %v2417_v61 = vsel %vm2416_vm13, %v2386_v56, -inf }
 0x5f1   : > { %v2390_v62 = vrot.slane %v2389_v58, 4  ;;  %v2399_v63 = vrot.slane %v2398_v59, 4  ;;  %v2418_v1 = vrot.slane %v2417_v61, 4  ;;  %v2387_v2 = vmax.f32 %v2383_v57, 0.0 }
 0x5f2   : > { %v2408_v3 = vsel %vm2388_vm12, %v2406_v60, 0.0 }
 0x5f3   : > { %v2391_v4 = vadd.f32 %v2390_v62, %v2389_v58  ;;  %v2400_v5 = vmax.f32 %v2398_v59, %v2399_v63  ;;  %v2409_v13 = vrot.slane %v2408_v3, 4  ;;  %v2419_v17 = vmax.f32 %v2417_v61, %v2418_v1 }
 0x5f4   : > { %v2424_v8 = vsel %vm2388_vm12, %v2387_v2, 0.0  ;;  %v2432_v15 = vsel %vm2388_vm12, %v2387_v2, -inf  ;;  %v2440_v16 = vrot.slane %v2387_v2, 4  ;;  %v2450_v18 = vsel %vm2416_vm13, %v2387_v2, -inf }
 0x5f5   : > { %v2392_v6 = vrot.slane %v2391_v4, 2  ;;  %v2401_v7 = vrot.slane %v2400_v5, 2  ;;  %v2410_v9 = vadd.f32 %v2409_v13, %v2408_v3  ;;  %v2420_v10 = vrot.slane %v2419_v17, 2  ;;  %v3189_v3 = vld [vmem:[%s4062_s11] sm:$0xff]  }
 0x5f6   : > { %v2425_v11 = vrot.slane %v2424_v8, 4  ;;  %v2433_v12 = vrot.slane %v2432_v15, 4  ;;  %v2442_v14 = vsel %vm2388_vm12, %v2440_v16, 0.0  ;;  %v2451_v19 = vrot.slane %v2450_v18, 4  ;;  %v2801_v13 = vld [vmem:[%s4061_s10] ss:$0 sm:$0xff] }
 0x5f7   : > { %v2393_v20 = vadd.f32 %v2392_v6, %v2391_v4  ;;  %v2411_v21 = vrot.slane %v2410_v9, 2  ;;  %v2443_v22 = vrot.slane %v2442_v14, 4  ;;  %v2402_v37 = vmax.f32 %v2400_v5, %v2401_v7  ;;  %v3190_v5 = vld [vmem:[%s4062_s11 + $0x8] sm:$0xff]  }
 0x5f8   : > { %v2426_v23 = vadd.f32 %v2425_v11, %v2424_v8  ;;  %v2434_v24 = vmax.f32 %v2432_v15, %v2433_v12  ;;  %v2421_v25 = vmax.f32 %v2419_v17, %v2420_v10  ;;  %v2452_v26 = vmax.f32 %v2450_v18, %v2451_v19 }
 0x5f9   : > { %v2403_v27 = vrot.slane %v2402_v37, 1  ;;  %v2412_v46 = vadd.f32 %v2411_v21, %v2410_v9  ;;  %v2444_v28 = vadd.f32 %v2443_v22, %v2442_v14  ;;  %v2394_v29 = vrot.slane %v2393_v20, 1 }
 0x5fa   : > { %v2427_v30 = vrot.slane %v2426_v23, 2  ;;  %v2422_v31 = vrot.slane %v2421_v25, 1  ;;  %v2435_v32 = vrot.slane %v2434_v24, 2  ;;  %v2453_v33 = vrot.slane %v2452_v26, 2 }
 0x5fb   : > { %v2404_v34 = vmax.f32 %v2402_v37, %v2403_v27  ;;  %v2413_v35 = vrot.slane %v2412_v46, 1  ;;  %v2445_v36 = vrot.slane %v2444_v28, 2  ;;  %v2395_v38 = vadd.f32 %v2394_v29, %v2393_v20 }
 0x5fc   : > { %v2423_v39 = vmax.f32 %v2421_v25, %v2422_v31  ;;  %v2436_v40 = vmax.f32 %v2434_v24, %v2435_v32  ;;  %v2454_v41 = vmax.f32 %v2452_v26, %v2453_v33  ;;  %v2428_v42 = vadd.f32 %v2427_v30, %v2426_v23 }
 0x5fd   : > { %v2414_v43 = vadd.f32 %v2413_v35, %v2412_v46  ;;  %v2446_v44 = vadd.f32 %v2445_v36, %v2444_v28  ;;  %v2397_v52 = vmul.f32 0.25, %v2395_v38 }
 0x5fe   : > { %v2437_v45 = vrot.slane %v2436_v40, 1  ;;  %v2455_v47 = vrot.slane %v2454_v41, 1  ;;  %v2429_v48 = vrot.slane %v2428_v42, 1  ;;  %v2463_v49 = vsel %vm2457_vm14, %v2404_v34, %v2423_v39 }
 0x5ff   : > { %v2415_v50 = vmul.f32 0.25, %v2414_v43  ;;  %v2447_v51 = vrot.slane %v2446_v44, 1 }
 0x600   : > { %v2438_v53 = vmax.f32 %v2436_v40, %v2437_v45  ;;  %v2456_v54 = vmax.f32 %v2454_v41, %v2455_v47  ;;  %v2430_v55 = vadd.f32 %v2429_v48, %v2428_v42 }
 0x601   : > { %v2448_v56 = vadd.f32 %v2447_v51, %v2446_v44  ;;  %v2458_v57 = vsel %vm2457_vm14, %v2397_v52, %v2415_v50 }
 0x602   : > { %v2464_v58 = vsel %vm2459_vm15, %v2463_v49, %v2438_v53  ;;  %v2431_v59 = vmul.f32 0.25, %v2430_v55 }
 0x603   : > { %v2465_v60 = vsel %vm2461_vm2, %v2464_v58, %v2456_v54  ;;  %v2449_v61 = vmul.f32 0.25, %v2448_v56 }
 0x604   : > { %2467 = vrot.lane.b32.xlu0 %v2465_v60, %s4086_s17  ;;  %v2460_v62 = vsel %vm2459_vm15, %v2458_v57, %v2431_v59  ;;  %s4009_s17 = scalar_lea.hbm %s4064_s13, %s2812_s23 }
 0x605   : > { %v2462_v63 = vsel %vm2461_vm2, %v2460_v62, %v2449_v61 }
 0x676   : > { %v2468_v1 = vpop.permute.xlu0 %2467 }
 0x677   : > { %v2470_v2 = vsel %vm445_vm0, %v2462_v63, %v2468_v1 }
 0x678   : > { %v2471_v4 = vpack.c.bf16 %v2470_v2, %v2470_v2 }
 0x67a   : > { %3029 = vmatmul.mubr.msk.bf16.vlgmr.msra.gmra.mrb[24].mxu1 %vm457_vm5, %v2471_v4  ;;  %vm2622_vm5 = vcmask 76800  }
 0x67b   : > { %3033 = vmatpush3.bf16.msra.mxu1 %v3189_v3  ;;  %3036 = vmatprep.mubr.msk.bf16.mxu1 %vm3260_vm1, %v3255_v0 }
 0x67c   : > { %3034 = vmatprep.subr.bf16.mxu1 %v3255_v0  ;;  %v2807_v0 = vld [vmem:[%s4063_s12] ss:$0 sm:$0xff] }
 0x67f   : > { %3035 = vmatpush3.bf16.msra.mxu1 %v3190_v5 }
 0x74d   : > { %v2548_v17 = vpop.f32.mrb[24].mxu1 }
 0x74e   : > { %v2549_v8 = vadd.f32 %v2801_v13, %v2548_v17  ;;  %v3030_v15 = vpop.f32.mrb[25].mxu1 }
 0x74f   : > { %v2551_v16 = vpop.f32.mrb[26].mxu1 }
 0x750   : > { %v2554_v18 = vmax.f32 %v2549_v8, 0.0  ;;  %v3031_v6 = vpop.f32.mrb[27].mxu1 }
 0x752   : > { %v2555_v7 = vpack.c.bf16 %v2554_v18, %v2554_v18 }
 0x754   : > { %3037 = vmatmul.mubr.msk.bf16.vlgmr.msra.gmra.mrb[28].mxu1 %vm445_vm0, %v2555_v7 }
 0x827   : > { %v2616_v9 = vpop.f32.mrb[28].mxu1 }
 0x828   : > { %v2617_v10 = vadd.f32 %v2807_v0, %v2616_v9  ;;  %v3038_v11 = vpop.f32.mrb[29].mxu1 }
 0x829   : > { %v2619_v12 = vpop.f32.mrb[30].mxu1 }
 0x82a   : > { %v3039_v14 = vpop.f32.mrb[31].mxu1  ;;  %2623 = vst.msk [vmem:[%s436_s19] sm:$0xf] %vm2622_vm5, %v2617_v10 }
 0x82b   : > { %3204 = shalt.err (!%p3201_p3)
}
 0x82c   : > { %s3205_s15 = scalar_lea.hbm %s4009_s17, 64  ;;  %s3209_s23 = scalar_lea.hbm %s4064_s13, 128 }
 0x82d   : > { %p3206_p4 = scmp.ne.s32.totalorder %s4009_s17, %s3205_s15  ;;  %p3210_p9 = scmp.lt.u32.totalorder %s4009_s17, %s4064_s13 }
 0x82e   : > { %p3211_p10 = scmp.lt.u32.totalorder %s3209_s23, %s3205_s15  ;;  %p3213_p12 = scmp.lt.u32.totalorder %s3205_s15, %s4009_s17 }
 0x82f   : > { %p3207_p7 = pnand %p3206_p4, %p3370_p5 }
 0x830   : > { %p3212_p11 = por %p3211_p10, %p3210_p9 }
 0x831   : > { %p3208_p8 = pneg %p3207_p7 }
 0x832   : > { %p3214_p13 = por %p3213_p12, %p3212_p11 }
 0x834   : > { %p3215_p0 = pnand %p3214_p13, %p3208_p8 }
 0x836   : > { %3218 = shalt.err (!%p3215_p0)
}
 0x837   : > { %3040 = dma.vmem_to_hbm [thread:$0]  (%p3370_p5), %s4011_s21, 64, %s4009_s17, %s2625_s29  }
 0x838 PF: > { %p3046_p1 = scmp.ge.s32.totalorder %s3253_s28, 2  ;;  %s2650_s30 = sand.u32 1, %s3241_s25  }
 0x839   : > { %s2651_s27 = scalar_lea.sflag [#allocation7], %s2650_s30 }
 0x83a   : > { %p3043_p2 = pnand %p3046_p1, %p3374_p6 }
 0x83c   : > { %3236 = dma.done.wait (!%p3043_p2), %s2651_s27, 64  }
 0x83d   : > { %3238 = vsyncadd (!%p3043_p2), %s2651_s27, 4294967232  ;;  %s4088_s28 = sld [smem:[#allocation10_spill]]  ;;  %s4089_s20 = sld [smem:[#allocation9_spill]] }
 0x83e   : > { %s4090_s27 = sld [smem:[#allocation11_spill]]  ;;  %s4091_s25 = smov %s3245_s26 }
 0x843   : > { %p23_p3 = scmp.ge.s32.totalorder %s4088_s28, 4   ;;  %s4092_s26 = smov %s4089_s20 }
 0x845   :  { %25 = sbr.rel (!%p23_p3) target bundleno = 5 (0x5), region = 164 }
 0x84c   :  { %2656 = vsyncpa [#allocation7], 1 }
 0x84d   :  { %2658 = vsyncpa [#allocation7 + $0x1], 1 }

</bundles_post_ra>
